<compile_context>
chip_gen: v6e
topology: v6e:2x2x1
jax: 0.10.0
libtpu: 0.0.40
codegen_flags: <defaults>
</compile_context>

<pallas_src>
import math
import functools

import jax
import jax.numpy as jnp
from jax import lax
from jax.experimental import pallas as pl
from jax.experimental.pallas import tpu as pltpu
import numpy as np


def _round_up(n, m):
    return ((n + m - 1) // m) * m


# ----------------------------------------------------------------------------
# Fused decoder-stack kernel: one grid step = one decoder layer (whole batch)
# ----------------------------------------------------------------------------
def _decoder_stack_kernel(x_ref, enc_ref, selfb_ref, crossb_ref,
                          norm_ref, attw_ref, attb_ref,
                          w1_ref, b1_ref, w2_ref, b2_ref,
                          fa_ref, fb_ref,
                          out_ref, acc_ref, *, heads, B, T, S):
    """Shapes seen by the kernel (T/S already sublane-padded):

    x_ref     : (B*T, D) f32    embedded + PE'd target activations (layer 0)
    enc_ref   : (B*S, D) bf16   encoder outputs (pre-cast, pre-flattened)
    selfb_ref : (B, T, T) f32   additive self-attention mask (0 / -1e9)
    crossb_ref: (B, 1, S) f32   additive cross-attention mask (0 / -1e9)
    norm_ref  : (6, D)          [a1,b1,a2,b2,a3,b3] for norm_1/2/3 of this layer
    attw_ref  : (8, D, D) bf16  [Wq1,Wk1,Wv1,Wo1,Wq2,Wk2,Wv2,Wo2] (stored (in,out))
    attb_ref  : (8, D) f32      matching biases
    w1_ref    : (D, F)  b1_ref: (1, F)  w2_ref: (F, D)  b2_ref: (1, D)
    fa_ref    : (1, D)  fb_ref: (1, D)  final decoder Norm
    out_ref   : (B, T*D) f32    lane-dense output slab
    acc_ref   : (B*T, D) f32    VMEM-resident running activations
    """
    f32 = jnp.float32
    bf16 = jnp.bfloat16
    layer = pl.program_id(0)
    last_layer = pl.num_programs(0) - 1

    # Layer 0: load activations into the resident accumulator.
    @pl.when(layer == 0)
    def _():
        acc_ref[...] = x_ref[...]

    x = acc_ref[...]                       # (B*T, D) f32
    D = x.shape[-1]
    dk = D // heads
    scale = 1.0 / math.sqrt(dk)

    enc_b = enc_ref[...]                   # (B*S, D) bf16
    self_bias = selfb_ref[...]             # (B, T, T)
    cross_bias = crossb_ref[...]           # (B, 1, S)
    norm_ab = norm_ref[...]                # (6, D)
    attb = attb_ref[...]                   # (8, D)

    def norm(v, idx):
        # PyTorch Norm: alpha * (x - mean) / (x.std(-1, unbiased) + eps) + bias
        alpha = norm_ab[2 * idx: 2 * idx + 1]       # (1, D)
        bias = norm_ab[2 * idx + 1: 2 * idx + 2]    # (1, D)
        mean = jnp.mean(v, axis=-1, keepdims=True)
        var = jnp.sum((v - mean) ** 2, axis=-1, keepdims=True) / (v.shape[-1] - 1)
        inv = pl.reciprocal(jnp.sqrt(var) + 1e-6, approx=True)   # EUP, not VPU div
        return alpha * (v - mean) * inv + bias

    def mha(q_rows_b16, kv_rows_b16, n_q, n_kv, bias, base):
        # q_rows: (B*n_q, D) bf16; kv_rows: (B*n_kv, D) bf16; bias: additive mask
        wq = attw_ref[base + 0]            # (D, D) bf16
        wk = attw_ref[base + 1]
        wv = attw_ref[base + 2]
        wo = attw_ref[base + 3]
        bq = attb[base + 0: base + 1]      # (1, D) f32
        bk = attb[base + 1: base + 2]
        bv = attb[base + 2: base + 3]
        bo = attb[base + 3: base + 4]

        # Projections on batch-folded rows: one matmul each (M = B*rows).
        q = (jnp.dot(q_rows_b16, wq, preferred_element_type=f32) + bq).astype(bf16)
        k = (jnp.dot(kv_rows_b16, wk, preferred_element_type=f32) + bk).astype(bf16)
        v = (jnp.dot(kv_rows_b16, wv, preferred_element_type=f32) + bv).astype(bf16)
        # Tile-aligned leading-dim splits (n_q, n_kv are multiples of 8).
        q3 = q.reshape(B, n_q, D)
        k3 = k.reshape(B, n_kv, D)
        v3 = v.reshape(B, n_kv, D)

        o_heads = []
        for h in range(heads):             # static unroll over heads
            sl = slice(h * dk, (h + 1) * dk)
            s = jnp.einsum('btd,bsd->bts', q3[:, :, sl], k3[:, :, sl],
                           preferred_element_type=f32) * scale + bias   # (B,n_q,n_kv)
            m = jnp.max(s, axis=-1, keepdims=True)
            p = jnp.exp(s - m)
            p = p * pl.reciprocal(jnp.sum(p, axis=-1, keepdims=True), approx=True)
            o_heads.append(jnp.einsum('bts,bsd->btd', p.astype(bf16), v3[:, :, sl],
                                      preferred_element_type=f32))      # (B,n_q,dk)
        # Concat over heads + single D-wide output projection on folded rows.
        o = jnp.concatenate(o_heads, axis=-1)                           # (B,n_q,D)
        o2 = o.reshape(B * n_q, D).astype(bf16)
        return jnp.dot(o2, wo, preferred_element_type=f32) + bo         # (B*n_q, D)

    # x = x + attn_1(norm_1(x), ..., trg_mask)          (dropout = identity)
    x2 = norm(x, 0)
    x2b = x2.astype(bf16)
    x = x + mha(x2b, x2b, T, T, self_bias, 0)
    # x = x + attn_2(norm_2(x), e_outputs, e_outputs, src_mask)
    x2 = norm(x, 1)
    x = x + mha(x2.astype(bf16), enc_b, T, S, cross_bias, 4)
    # x = x + ff(norm_3(x))
    x2 = norm(x, 2)
    ff_h = jnp.maximum(
        jnp.dot(x2.astype(bf16), w1_ref[...], preferred_element_type=f32) + b1_ref[...],
        0.0)
    x = x + jnp.dot(ff_h.astype(bf16), w2_ref[...], preferred_element_type=f32) + b2_ref[...]

    acc_ref[...] = x

    # Final decoder Norm fused into the last layer step; lane-dense writeback.
    @pl.when(layer == last_layer)
    def _():
        mean = jnp.mean(x, axis=-1, keepdims=True)
        var = jnp.sum((x - mean) ** 2, axis=-1, keepdims=True) / (x.shape[-1] - 1)
        inv = pl.reciprocal(jnp.sqrt(var) + 1e-6, approx=True)
        y = fa_ref[...] * (x - mean) * inv + fb_ref[...]                # (B*T, D)
        y3 = y.reshape(B, T, D)
        # (B, T*D) lane-dense slab via lane-concat (proven ops only).
        out_ref[...] = jnp.concatenate([y3[:, t, :] for t in range(T)], axis=-1)


# ----------------------------------------------------------------------------
# Pallas wrapper
# ----------------------------------------------------------------------------
def run_decoder_stack(x, enc, src_mask, trg_mask, params, heads):
    B, T, D = x.shape
    S = enc.shape[1]
    N, _, F = params["ff_w1"].shape
    f32 = jnp.float32
    bf16 = jnp.bfloat16
    assert D % heads == 0

    T_pad = _round_up(T, 8)
    S_pad = _round_up(S, 8)
    NEG = -1e9

    # Pad + flatten activations; pre-cast encoder outputs to bf16 (streamed bf16).
    x_p = jnp.pad(x.astype(f32), ((0, 0), (0, T_pad - T), (0, 0)))
    x_p = x_p.reshape(B * T_pad, D)
    enc_p = jnp.pad(enc.astype(f32), ((0, 0), (0, S_pad - S), (0, 0)))
    enc_p = enc_p.astype(bf16).reshape(B * S_pad, D)

    # Additive masks (0 / -1e9) precomputed once; padded key columns masked out.
    self_bias = jnp.where(trg_mask > 0, 0.0, NEG).astype(f32)          # (B, T, T)
    self_bias = jnp.pad(self_bias, ((0, 0), (0, T_pad - T), (0, T_pad - T)),
                        constant_values=NEG)
    cross_bias = jnp.where(src_mask > 0, 0.0, NEG).astype(f32)         # (B, 1, S)
    cross_bias = jnp.pad(cross_bias, ((0, 0), (0, 0), (0, S_pad - S)),
                         constant_values=NEG)

    # Stream matmul weights as bf16 (halves HBM bytes); f32 accumulation in-kernel.
    attn_w = params["attn_w"].astype(bf16)
    ff_w1 = params["ff_w1"].astype(bf16)
    ff_w2 = params["ff_w2"].astype(bf16)

    # VMEM budget estimate with 128-lane padding of D-minor arrays; double-buffered
    # layer weights dominate.  Cap at 48 MiB (headroom on v7x's 64 MiB physical VMEM).
    LANE = 128
    lp = lambda n: _round_up(n, LANE)
    w_per_layer = (8 * D * lp(D) + D * lp(F) + F * lp(D)) * 2 \
                  + (6 * lp(D) + 8 * lp(D) + lp(F) + lp(D)) * 4
    act = (3 * B * T_pad * lp(D) + B * S_pad * lp(D)
           + B * T_pad * lp(T_pad) + B * lp(S_pad)
           + B * T_pad * lp(F)) * 4
    vmem_limit = int(min(48 * 2 ** 20, max(16 * 2 ** 20, 2 * (2 * w_per_layer + act))))

    kernel = functools.partial(_decoder_stack_kernel, heads=heads,
                               B=B, T=T_pad, S=S_pad)
    out = pl.pallas_call(
        kernel,
        out_shape=jax.ShapeDtypeStruct((B, T_pad * D), f32),
        grid=(N,),
        in_specs=[
            pl.BlockSpec((B * T_pad, D), lambda l: (0, 0)),             # x (flat)
            pl.BlockSpec((B * S_pad, D), lambda l: (0, 0)),             # enc (flat, bf16)
            pl.BlockSpec((B, T_pad, T_pad), lambda l: (0, 0, 0)),       # self bias
            pl.BlockSpec((B, 1, S_pad), lambda l: (0, 0, 0)),           # cross bias
            pl.BlockSpec((None, 6, D), lambda l: (l, 0, 0)),            # norm alpha/bias
            pl.BlockSpec((None, 8, D, D), lambda l: (l, 0, 0, 0)),      # attn weights
            pl.BlockSpec((None, 8, D), lambda l: (l, 0, 0)),            # attn biases
            pl.BlockSpec((None, D, F), lambda l: (l, 0, 0)),            # ff w1
            pl.BlockSpec((None, 1, F), lambda l: (l, 0, 0)),            # ff b1
            pl.BlockSpec((None, F, D), lambda l: (l, 0, 0)),            # ff w2
            pl.BlockSpec((None, 1, D), lambda l: (l, 0, 0)),            # ff b2
            pl.BlockSpec((1, D), lambda l: (0, 0)),                     # final norm alpha
            pl.BlockSpec((1, D), lambda l: (0, 0)),                     # final norm bias
        ],
        out_specs=pl.BlockSpec((B, T_pad * D), lambda l: (0, 0)),
        scratch_shapes=[pltpu.VMEM((B * T_pad, D), f32)],
        compiler_params=pltpu.CompilerParams(
            dimension_semantics=("arbitrary",),
            vmem_limit_bytes=vmem_limit),
    )(x_p, enc_p, self_bias, cross_bias,
      params["norm_ab"], attn_w, params["attn_b"],
      ff_w1, params["ff_b1"], ff_w2, params["ff_b2"],
      params["norm_alpha"], params["norm_bias"])

    return out.reshape(B, T_pad, D)[:, :T, :]


def decoder_forward(trg, e_outputs, src_mask, trg_mask, params, d_model, heads):
    # glue: embedding gather + sqrt(d_model) scaling + positional encoding
    T = trg.shape[1]
    x = params["embed"][trg] * math.sqrt(d_model) + params["pe"][:T]
    return run_decoder_stack(x.astype(jnp.float32), e_outputs,
                             src_mask, trg_mask, params, heads)


# ----------------------------------------------------------------------------
# Pure-JAX reference (mirrors the PyTorch forward, used only for verification)
# ----------------------------------------------------------------------------
def _ref_norm(x, alpha, bias, eps=1e-6):
    mean = jnp.mean(x, axis=-1, keepdims=True)
    var = jnp.sum((x - mean) ** 2, axis=-1, keepdims=True) / (x.shape[-1] - 1)
    return alpha * (x - mean) / (jnp.sqrt(var) + eps) + bias


def _ref_mha(q_in, kv_in, mask, w, b, heads):
    hp = jax.lax.Precision.HIGHEST
    B, T, D = q_in.shape
    S = kv_in.shape[1]
    dk = D // heads
    q = jnp.matmul(q_in, w[0], precision=hp) + b[0]
    k = jnp.matmul(kv_in, w[1], precision=hp) + b[1]
    v = jnp.matmul(kv_in, w[2], precision=hp) + b[2]
    q = q.reshape(B, T, heads, dk).transpose(0, 2, 1, 3)
    k = k.reshape(B, S, heads, dk).transpose(0, 2, 1, 3)
    v = v.reshape(B, S, heads, dk).transpose(0, 2, 1, 3)
    s = jnp.matmul(q, jnp.swapaxes(k, -1, -2), precision=hp) / math.sqrt(dk)
    s = jnp.where(mask[:, None] > 0, s, -1e9)
    p = jax.nn.softmax(s, axis=-1)
    o = jnp.matmul(p, v, precision=hp).transpose(0, 2, 1, 3).reshape(B, T, D)
    return jnp.matmul(o, w[3], precision=hp) + b[3]


def decoder_forward_ref(trg, e_outputs, src_mask, trg_mask, params, d_model, heads):
    hp = jax.lax.Precision.HIGHEST
    T = trg.shape[1]
    x = params["embed"][trg] * math.sqrt(d_model) + params["pe"][:T]
    x = x.astype(jnp.float32)
    N = params["attn_w"].shape[0]
    for l in range(N):
        nab = params["norm_ab"][l]
        aw, ab = params["attn_w"][l], params["attn_b"][l]
        x2 = _ref_norm(x, nab[0], nab[1])
        x = x + _ref_mha(x2, x2, trg_mask, aw[0:4], ab[0:4], heads)
        x2 = _ref_norm(x, nab[2], nab[3])
        x = x + _ref_mha(x2, e_outputs, src_mask, aw[4:8], ab[4:8], heads)
        x2 = _ref_norm(x, nab[4], nab[5])
        h = jax.nn.relu(jnp.matmul(x2, params["ff_w1"][l], precision=hp) + params["ff_b1"][l])
        x = x + jnp.matmul(h, params["ff_w2"][l], precision=hp) + params["ff_b2"][l]
    return _ref_norm(x, params["norm_alpha"][0], params["norm_bias"][0])


# ----------------------------------------------------------------------------
# Deterministic parameter init (shapes per the PyTorch module's __init__),
# stacked along the layer axis for the fused kernel.
# ----------------------------------------------------------------------------
def init_params(key, vocab_size, d_model, N, heads, d_ff=2048, max_len=64):
    k_embed, *k_layers = jax.random.split(key, 1 + N)
    embed = jax.random.normal(k_embed, (vocab_size, d_model), jnp.float32)

    # sinusoidal positional encoding
    pos = jnp.arange(max_len, dtype=jnp.float32)[:, None]
    i = jnp.arange(0, d_model, 2, dtype=jnp.float32)
    div = jnp.power(10000.0, i / d_model)
    pe = jnp.zeros((max_len, d_model), jnp.float32)
    pe = pe.at[:, 0::2].set(jnp.sin(pos / div))
    pe = pe.at[:, 1::2].set(jnp.cos(pos / div))

    def linear(k, fan_in, fan_out):
        kw, kb = jax.random.split(k)
        w = jax.random.normal(kw, (fan_in, fan_out), jnp.float32) / math.sqrt(fan_in)
        b = jax.random.normal(kb, (1, fan_out), jnp.float32) * 0.02
        return w, b  # stored as (in, out): y = x @ W + b

    ones = jnp.ones((d_model,), jnp.float32)
    zeros = jnp.zeros((d_model,), jnp.float32)
    norm_ab, attn_w, attn_b = [], [], []
    ff_w1, ff_b1, ff_w2, ff_b2 = [], [], [], []
    for lk in k_layers:
        ks = jax.random.split(lk, 10)
        ws, bs = [], []
        for j in range(8):  # Wq1,Wk1,Wv1,Wo1,Wq2,Wk2,Wv2,Wo2
            w, b = linear(ks[j], d_model, d_model)
            ws.append(w)
            bs.append(b)
        w1, b1 = linear(ks[8], d_model, d_ff)
        w2, b2 = linear(ks[9], d_ff, d_model)
        norm_ab.append(jnp.stack([ones, zeros, ones, zeros, ones, zeros]))
        attn_w.append(jnp.stack(ws))
        attn_b.append(jnp.concatenate(bs, axis=0))
        ff_w1.append(w1); ff_b1.append(b1); ff_w2.append(w2); ff_b2.append(b2)

    return {
        "embed": embed,
        "pe": pe,
        "norm_ab": jnp.stack(norm_ab),   # (N, 6, D)
        "attn_w": jnp.stack(attn_w),     # (N, 8, D, D)
        "attn_b": jnp.stack(attn_b),     # (N, 8, D)
        "ff_w1": jnp.stack(ff_w1),       # (N, D, F)
        "ff_b1": jnp.stack(ff_b1),       # (N, 1, F)
        "ff_w2": jnp.stack(ff_w2),       # (N, F, D)
        "ff_b2": jnp.stack(ff_b2),       # (N, 1, D)
        "norm_alpha": jnp.ones((1, d_model), jnp.float32),
        "norm_bias": jnp.zeros((1, d_model), jnp.float32),
    }


# ----------------------------------------------------------------------------
if __name__ == "__main__":
    vocab_size, d_model, N, heads = 50, 32, 2, 4
    d_ff = 2048          # FeedForward default in the reference module
    B, T, S = 2, 8, 12   # batch, target length, source length

    params = init_params(jax.random.PRNGKey(0), vocab_size, d_model, N, heads, d_ff)

    k1, k2 = jax.random.split(jax.random.PRNGKey(1))
    trg = jax.random.randint(k1, (B, T), 0, vocab_size)
    e_outputs = jax.random.normal(k2, (B, S, d_model), jnp.float32)
    src_mask = jnp.ones((B, 1, S), jnp.float32).at[:, :, S - 2:].set(0.0)
    trg_mask = jnp.broadcast_to(
        jnp.tril(jnp.ones((T, T), jnp.float32)), (B, T, T)
    ) + jnp.zeros((B, T, T), jnp.float32)

    out = decoder_forward(trg, e_outputs, src_mask, trg_mask, params, d_model, heads)
    out = jax.block_until_ready(out)

    ref = decoder_forward_ref(trg, e_outputs, src_mask, trg_mask, params, d_model, heads)
    # bf16 matmul inputs (f32 accumulation) + approx reciprocals (softmax + norms)
    # introduce small (<~5e-3) deviations from the f32 HIGHEST reference.
    np.testing.assert_allclose(np.asarray(out), np.asarray(ref), rtol=2e-2, atol=2e-2)

    print("KERNEL_OK")
</pallas_src>

<mosaic_0001>
module attributes {stable_mosaic.version = 11 : i64} {
  func.func @_decoder_stack_kernel(%arg0: i32, %arg1: memref<16x32xf32, #tpu.memory_space<vmem>>, %arg2: memref<32x32xbf16, #tpu.memory_space<vmem>>, %arg3: memref<2x8x8xf32, #tpu.memory_space<vmem>>, %arg4: memref<2x1x16xf32, #tpu.memory_space<vmem>>, %arg5: memref<1x6x32xf32, #tpu.memory_space<vmem>>, %arg6: memref<1x8x32x32xbf16, #tpu.memory_space<vmem>>, %arg7: memref<1x8x32xf32, #tpu.memory_space<vmem>>, %arg8: memref<1x32x2048xbf16, #tpu.memory_space<vmem>>, %arg9: memref<1x1x2048xf32, #tpu.memory_space<vmem>>, %arg10: memref<1x2048x32xbf16, #tpu.memory_space<vmem>>, %arg11: memref<1x1x32xf32, #tpu.memory_space<vmem>>, %arg12: memref<1x32xf32, #tpu.memory_space<vmem>>, %arg13: memref<1x32xf32, #tpu.memory_space<vmem>>, %arg14: memref<2x256xf32, #tpu.memory_space<vmem>>, %arg15: memref<16x32xf32, #tpu.memory_space<vmem>>) attributes {dimension_semantics = [#tpu.dimension_semantics<arbitrary>], iteration_bounds = array<i64: 2>, scalar_prefetch = 0 : i64, scratch_operands = 1 : i64, tpu.core_type = #tpu.core_type<tc>, window_params = [{pipeline_mode = #tpu.pipeline_mode<synchronous>, transform_indices = @transform_0, window_bounds = array<i64: 16, 32>}, {pipeline_mode = #tpu.pipeline_mode<synchronous>, transform_indices = @transform_1, window_bounds = array<i64: 32, 32>}, {pipeline_mode = #tpu.pipeline_mode<synchronous>, transform_indices = @transform_2, window_bounds = array<i64: 2, 8, 8>}, {pipeline_mode = #tpu.pipeline_mode<synchronous>, transform_indices = @transform_3, window_bounds = array<i64: 2, 1, 16>}, {transform_indices = @transform_4, window_bounds = array<i64: 1, 6, 32>}, {transform_indices = @transform_5, window_bounds = array<i64: 1, 8, 32, 32>}, {transform_indices = @transform_6, window_bounds = array<i64: 1, 8, 32>}, {transform_indices = @transform_7, window_bounds = array<i64: 1, 32, 2048>}, {transform_indices = @transform_8, window_bounds = array<i64: 1, 1, 2048>}, {transform_indices = @transform_9, window_bounds = array<i64: 1, 2048, 32>}, {transform_indices = @transform_10, window_bounds = array<i64: 1, 1, 32>}, {pipeline_mode = #tpu.pipeline_mode<synchronous>, transform_indices = @transform_11, window_bounds = array<i64: 1, 32>}, {pipeline_mode = #tpu.pipeline_mode<synchronous>, transform_indices = @transform_12, window_bounds = array<i64: 1, 32>}, {pipeline_mode = #tpu.pipeline_mode<synchronous>, transform_indices = @transform_13, window_bounds = array<i64: 2, 256>}]} {
    %c0_i32 = arith.constant 0 : i32
    %0 = arith.cmpi eq, %arg0, %c0_i32 : i32
    %1 = arith.extui %0 : i1 to i32
    %c0_i32_0 = arith.constant 0 : i32
    %2 = arith.cmpi ne, %1, %c0_i32_0 : i32
    scf.if %2 {
      %c0_121 = arith.constant 0 : index
      %c0_122 = arith.constant 0 : index
      %335 = vector.load %arg1[%c0_121, %c0_122] : memref<16x32xf32, #tpu.memory_space<vmem>>, vector<16x32xf32>
      %c0_123 = arith.constant 0 : index
      %c0_124 = arith.constant 0 : index
      %336 = vector.load %arg15[%c0_123, %c0_124] : memref<16x32xf32, #tpu.memory_space<vmem>>, vector<16x32xf32>
      tpu.vector_store %arg15[%c0_123, %c0_124], %335 {strides = array<i32>} : memref<16x32xf32, #tpu.memory_space<vmem>>, vector<16x32xf32>,
    } else {
    }
    %c0 = arith.constant 0 : index
    %c0_1 = arith.constant 0 : index
    %3 = vector.load %arg15[%c0, %c0_1] : memref<16x32xf32, #tpu.memory_space<vmem>>, vector<16x32xf32>
    %c0_2 = arith.constant 0 : index
    %c0_3 = arith.constant 0 : index
    %4 = vector.load %arg2[%c0_2, %c0_3] : memref<32x32xbf16, #tpu.memory_space<vmem>>, vector<32x32xbf16>
    %c0_4 = arith.constant 0 : index
    %c0_5 = arith.constant 0 : index
    %c0_6 = arith.constant 0 : index
    %5 = vector.load %arg3[%c0_4, %c0_5, %c0_6] : memref<2x8x8xf32, #tpu.memory_space<vmem>>, vector<2x8x8xf32>
    %c0_7 = arith.constant 0 : index
    %c0_8 = arith.constant 0 : index
    %c0_9 = arith.constant 0 : index
    %6 = vector.load %arg4[%c0_7, %c0_8, %c0_9] : memref<2x1x16xf32, #tpu.memory_space<vmem>>, vector<2x1x16xf32>
    %c0_10 = arith.constant 0 : index
    %c0_11 = arith.constant 0 : index
    %c0_12 = arith.constant 0 : index
    %7 = vector.load %arg5[%c0_10, %c0_11, %c0_12] : memref<1x6x32xf32, #tpu.memory_space<vmem>>, vector<1x6x32xf32>
    %8 = vector.shape_cast %7 : vector<1x6x32xf32> to vector<6x32xf32>
    %c0_13 = arith.constant 0 : index
    %c0_14 = arith.constant 0 : index
    %c0_15 = arith.constant 0 : index
    %9 = vector.load %arg7[%c0_13, %c0_14, %c0_15] : memref<1x8x32xf32, #tpu.memory_space<vmem>>, vector<1x8x32xf32>
    %10 = vector.shape_cast %9 : vector<1x8x32xf32> to vector<8x32xf32>
    %11 = vector.extract_strided_slice %8 {offsets = [0, 0], sizes = [1, 32], strides = [1, 1]} : vector<6x32xf32> to vector<1x32xf32>
    %12 = vector.extract_strided_slice %8 {offsets = [1, 0], sizes = [1, 32], strides = [1, 1]} : vector<6x32xf32> to vector<1x32xf32>
    %cst = arith.constant dense<0.000000e+00> : vector<16xf32>
    %13 = vector.multi_reduction <add>, %3, %cst [1] : vector<16x32xf32> to vector<16xf32>
    %14 = vector.shape_cast %13 : vector<16xf32> to vector<16x1xf32>
    %cst_16 = arith.constant 3.200000e+01 : f32
    %15 = vector.broadcast %cst_16 : f32 to vector<16x1xf32>
    %16 = arith.divf %14, %15 : vector<16x1xf32>
    %17 = vector.broadcast %16 : vector<16x1xf32> to vector<16x32xf32>
    %18 = arith.subf %3, %17 : vector<16x32xf32>
    %19 = arith.mulf %18, %18 : vector<16x32xf32>
    %cst_17 = arith.constant dense<0.000000e+00> : vector<16xf32>
    %20 = vector.multi_reduction <add>, %19, %cst_17 [1] : vector<16x32xf32> to vector<16xf32>
    %21 = vector.shape_cast %20 : vector<16xf32> to vector<16x1xf32>
    %cst_18 = arith.constant 3.100000e+01 : f32
    %22 = vector.broadcast %cst_18 : f32 to vector<16x1xf32>
    %23 = arith.divf %21, %22 : vector<16x1xf32>
    %24 = math.sqrt %23 : vector<16x1xf32>
    %cst_19 = arith.constant 9.99999997E-7 : f32
    %25 = vector.broadcast %cst_19 : f32 to vector<16x1xf32>
    %26 = arith.addf %24, %25 : vector<16x1xf32>
    %27 = tpu.reciprocal %26 {approx = true} : vector<16x1xf32> -> vector<16x1xf32>
    %28 = vector.broadcast %16 : vector<16x1xf32> to vector<16x32xf32>
    %29 = arith.subf %3, %28 : vector<16x32xf32>
    %30 = vector.broadcast %11 : vector<1x32xf32> to vector<16x32xf32>
    %31 = arith.mulf %30, %29 : vector<16x32xf32>
    %32 = vector.broadcast %27 : vector<16x1xf32> to vector<16x32xf32>
    %33 = arith.mulf %31, %32 : vector<16x32xf32>
    %34 = vector.broadcast %12 : vector<1x32xf32> to vector<16x32xf32>
    %35 = arith.addf %33, %34 : vector<16x32xf32>
    %36 = arith.truncf %35 : vector<16x32xf32> to vector<16x32xbf16>
    %c0_20 = arith.constant 0 : index
    %c0_21 = arith.constant 0 : index
    %c0_22 = arith.constant 0 : index
    %c0_23 = arith.constant 0 : index
    %37 = vector.load %arg6[%c0_20, %c0_21, %c0_22, %c0_23] : memref<1x8x32x32xbf16, #tpu.memory_space<vmem>>, vector<1x1x32x32xbf16>
    %38 = vector.shape_cast %37 : vector<1x1x32x32xbf16> to vector<32x32xbf16>
    %c0_24 = arith.constant 0 : index
    %c1 = arith.constant 1 : index
    %c0_25 = arith.constant 0 : index
    %c0_26 = arith.constant 0 : index
    %39 = vector.load %arg6[%c0_24, %c1, %c0_25, %c0_26] : memref<1x8x32x32xbf16, #tpu.memory_space<vmem>>, vector<1x1x32x32xbf16>
    %40 = vector.shape_cast %39 : vector<1x1x32x32xbf16> to vector<32x32xbf16>
    %c0_27 = arith.constant 0 : index
    %c2 = arith.constant 2 : index
    %c0_28 = arith.constant 0 : index
    %c0_29 = arith.constant 0 : index
    %41 = vector.load %arg6[%c0_27, %c2, %c0_28, %c0_29] : memref<1x8x32x32xbf16, #tpu.memory_space<vmem>>, vector<1x1x32x32xbf16>
    %42 = vector.shape_cast %41 : vector<1x1x32x32xbf16> to vector<32x32xbf16>
    %c0_30 = arith.constant 0 : index
    %c3 = arith.constant 3 : index
    %c0_31 = arith.constant 0 : index
    %c0_32 = arith.constant 0 : index
    %43 = vector.load %arg6[%c0_30, %c3, %c0_31, %c0_32] : memref<1x8x32x32xbf16, #tpu.memory_space<vmem>>, vector<1x1x32x32xbf16>
    %44 = vector.shape_cast %43 : vector<1x1x32x32xbf16> to vector<32x32xbf16>
    %45 = vector.extract_strided_slice %10 {offsets = [0, 0], sizes = [1, 32], strides = [1, 1]} : vector<8x32xf32> to vector<1x32xf32>
    %46 = vector.extract_strided_slice %10 {offsets = [1, 0], sizes = [1, 32], strides = [1, 1]} : vector<8x32xf32> to vector<1x32xf32>
    %47 = vector.extract_strided_slice %10 {offsets = [2, 0], sizes = [1, 32], strides = [1, 1]} : vector<8x32xf32> to vector<1x32xf32>
    %48 = vector.extract_strided_slice %10 {offsets = [3, 0], sizes = [1, 32], strides = [1, 1]} : vector<8x32xf32> to vector<1x32xf32>
    %cst_33 = arith.constant dense<0.000000e+00> : vector<16x32xf32>
    %49 = tpu.matmul %36, %38, %cst_33 {dimension_numbers = #tpu.dot_dimension_numbers<[1], [0], [0], [1], [0, 0, 1, 1], [], []>} : vector<16x32xbf16>, vector<32x32xbf16>, vector<16x32xf32> -> vector<16x32xf32>
    %50 = vector.broadcast %45 : vector<1x32xf32> to vector<16x32xf32>
    %51 = arith.addf %49, %50 : vector<16x32xf32>
    %52 = arith.truncf %51 : vector<16x32xf32> to vector<16x32xbf16>
    %cst_34 = arith.constant dense<0.000000e+00> : vector<16x32xf32>
    %53 = tpu.matmul %36, %40, %cst_34 {dimension_numbers = #tpu.dot_dimension_numbers<[1], [0], [0], [1], [0, 0, 1, 1], [], []>} : vector<16x32xbf16>, vector<32x32xbf16>, vector<16x32xf32> -> vector<16x32xf32>
    %54 = vector.broadcast %46 : vector<1x32xf32> to vector<16x32xf32>
    %55 = arith.addf %53, %54 : vector<16x32xf32>
    %56 = arith.truncf %55 : vector<16x32xf32> to vector<16x32xbf16>
    %cst_35 = arith.constant dense<0.000000e+00> : vector<16x32xf32>
    %57 = tpu.matmul %36, %42, %cst_35 {dimension_numbers = #tpu.dot_dimension_numbers<[1], [0], [0], [1], [0, 0, 1, 1], [], []>} : vector<16x32xbf16>, vector<32x32xbf16>, vector<16x32xf32> -> vector<16x32xf32>
    %58 = vector.broadcast %47 : vector<1x32xf32> to vector<16x32xf32>
    %59 = arith.addf %57, %58 : vector<16x32xf32>
    %60 = arith.truncf %59 : vector<16x32xf32> to vector<16x32xbf16>
    %61 = vector.shape_cast %52 : vector<16x32xbf16> to vector<2x8x32xbf16>
    %62 = vector.shape_cast %56 : vector<16x32xbf16> to vector<2x8x32xbf16>
    %63 = vector.shape_cast %60 : vector<16x32xbf16> to vector<2x8x32xbf16>
    %64 = vector.extract_strided_slice %61 {offsets = [0, 0, 0], sizes = [2, 8, 8], strides = [1, 1, 1]} : vector<2x8x32xbf16> to vector<2x8x8xbf16>
    %65 = vector.extract_strided_slice %62 {offsets = [0, 0, 0], sizes = [2, 8, 8], strides = [1, 1, 1]} : vector<2x8x32xbf16> to vector<2x8x8xbf16>
    "tpu.trace_start"() <{level = 10 : i32, message = "btd,bsd->bts"}> : () -> ()
    %cst_36 = arith.constant dense<0.000000e+00> : vector<2x8x8xf32>
    %66 = tpu.matmul %64, %65, %cst_36 {dimension_numbers = #tpu.dot_dimension_numbers<[2], [2], [1], [1], [0, 0, 0, 1, 1, 1], [0], [0]>} : vector<2x8x8xbf16>, vector<2x8x8xbf16>, vector<2x8x8xf32> -> vector<2x8x8xf32>
    "tpu.trace_stop"() : () -> ()
    %cst_37 = arith.constant 0.353553385 : f32
    %67 = vector.broadcast %cst_37 : f32 to vector<2x8x8xf32>
    %68 = arith.mulf %66, %67 : vector<2x8x8xf32>
    %69 = arith.addf %68, %5 : vector<2x8x8xf32>
    %cst_38 = arith.constant dense<0xFF800000> : vector<2x8xf32>
    %70 = vector.multi_reduction <maximumf>, %69, %cst_38 [2] : vector<2x8x8xf32> to vector<2x8xf32>
    %71 = vector.shape_cast %70 : vector<2x8xf32> to vector<2x8x1xf32>
    %72 = vector.broadcast %71 : vector<2x8x1xf32> to vector<2x8x8xf32>
    %73 = arith.subf %69, %72 : vector<2x8x8xf32>
    %74 = math.exp %73 : vector<2x8x8xf32>
    %cst_39 = arith.constant dense<0.000000e+00> : vector<2x8xf32>
    %75 = vector.multi_reduction <add>, %74, %cst_39 [2] : vector<2x8x8xf32> to vector<2x8xf32>
    %76 = vector.shape_cast %75 : vector<2x8xf32> to vector<2x8x1xf32>
    %77 = tpu.reciprocal %76 {approx = true} : vector<2x8x1xf32> -> vector<2x8x1xf32>
    %78 = vector.broadcast %77 : vector<2x8x1xf32> to vector<2x8x8xf32>
    %79 = arith.mulf %74, %78 : vector<2x8x8xf32>
    %80 = arith.truncf %79 : vector<2x8x8xf32> to vector<2x8x8xbf16>
    %81 = vector.extract_strided_slice %63 {offsets = [0, 0, 0], sizes = [2, 8, 8], strides = [1, 1, 1]} : vector<2x8x32xbf16> to vector<2x8x8xbf16>
    "tpu.trace_start"() <{level = 10 : i32, message = "bts,bsd->btd"}> : () -> ()
    %cst_40 = arith.constant dense<0.000000e+00> : vector<2x8x8xf32>
    %82 = tpu.matmul %80, %81, %cst_40 {dimension_numbers = #tpu.dot_dimension_numbers<[2], [1], [1], [2], [0, 0, 0, 1, 1, 2], [0], [0]>} : vector<2x8x8xbf16>, vector<2x8x8xbf16>, vector<2x8x8xf32> -> vector<2x8x8xf32>
    "tpu.trace_stop"() : () -> ()
    %83 = vector.extract_strided_slice %61 {offsets = [0, 0, 8], sizes = [2, 8, 8], strides = [1, 1, 1]} : vector<2x8x32xbf16> to vector<2x8x8xbf16>
    %84 = vector.extract_strided_slice %62 {offsets = [0, 0, 8], sizes = [2, 8, 8], strides = [1, 1, 1]} : vector<2x8x32xbf16> to vector<2x8x8xbf16>
    "tpu.trace_start"() <{level = 10 : i32, message = "btd,bsd->bts"}> : () -> ()
    %cst_41 = arith.constant dense<0.000000e+00> : vector<2x8x8xf32>
    %85 = tpu.matmul %83, %84, %cst_41 {dimension_numbers = #tpu.dot_dimension_numbers<[2], [2], [1], [1], [0, 0, 0, 1, 1, 1], [0], [0]>} : vector<2x8x8xbf16>, vector<2x8x8xbf16>, vector<2x8x8xf32> -> vector<2x8x8xf32>
    "tpu.trace_stop"() : () -> ()
    %cst_42 = arith.constant 0.353553385 : f32
    %86 = vector.broadcast %cst_42 : f32 to vector<2x8x8xf32>
    %87 = arith.mulf %85, %86 : vector<2x8x8xf32>
    %88 = arith.addf %87, %5 : vector<2x8x8xf32>
    %cst_43 = arith.constant dense<0xFF800000> : vector<2x8xf32>
    %89 = vector.multi_reduction <maximumf>, %88, %cst_43 [2] : vector<2x8x8xf32> to vector<2x8xf32>
    %90 = vector.shape_cast %89 : vector<2x8xf32> to vector<2x8x1xf32>
    %91 = vector.broadcast %90 : vector<2x8x1xf32> to vector<2x8x8xf32>
    %92 = arith.subf %88, %91 : vector<2x8x8xf32>
    %93 = math.exp %92 : vector<2x8x8xf32>
    %cst_44 = arith.constant dense<0.000000e+00> : vector<2x8xf32>
    %94 = vector.multi_reduction <add>, %93, %cst_44 [2] : vector<2x8x8xf32> to vector<2x8xf32>
    %95 = vector.shape_cast %94 : vector<2x8xf32> to vector<2x8x1xf32>
    %96 = tpu.reciprocal %95 {approx = true} : vector<2x8x1xf32> -> vector<2x8x1xf32>
    %97 = vector.broadcast %96 : vector<2x8x1xf32> to vector<2x8x8xf32>
    %98 = arith.mulf %93, %97 : vector<2x8x8xf32>
    %99 = arith.truncf %98 : vector<2x8x8xf32> to vector<2x8x8xbf16>
    %100 = vector.extract_strided_slice %63 {offsets = [0, 0, 8], sizes = [2, 8, 8], strides = [1, 1, 1]} : vector<2x8x32xbf16> to vector<2x8x8xbf16>
    "tpu.trace_start"() <{level = 10 : i32, message = "bts,bsd->btd"}> : () -> ()
    %cst_45 = arith.constant dense<0.000000e+00> : vector<2x8x8xf32>
    %101 = tpu.matmul %99, %100, %cst_45 {dimension_numbers = #tpu.dot_dimension_numbers<[2], [1], [1], [2], [0, 0, 0, 1, 1, 2], [0], [0]>} : vector<2x8x8xbf16>, vector<2x8x8xbf16>, vector<2x8x8xf32> -> vector<2x8x8xf32>
    "tpu.trace_stop"() : () -> ()
    %102 = vector.extract_strided_slice %61 {offsets = [0, 0, 16], sizes = [2, 8, 8], strides = [1, 1, 1]} : vector<2x8x32xbf16> to vector<2x8x8xbf16>
    %103 = vector.extract_strided_slice %62 {offsets = [0, 0, 16], sizes = [2, 8, 8], strides = [1, 1, 1]} : vector<2x8x32xbf16> to vector<2x8x8xbf16>
    "tpu.trace_start"() <{level = 10 : i32, message = "btd,bsd->bts"}> : () -> ()
    %cst_46 = arith.constant dense<0.000000e+00> : vector<2x8x8xf32>
    %104 = tpu.matmul %102, %103, %cst_46 {dimension_numbers = #tpu.dot_dimension_numbers<[2], [2], [1], [1], [0, 0, 0, 1, 1, 1], [0], [0]>} : vector<2x8x8xbf16>, vector<2x8x8xbf16>, vector<2x8x8xf32> -> vector<2x8x8xf32>
    "tpu.trace_stop"() : () -> ()
    %cst_47 = arith.constant 0.353553385 : f32
    %105 = vector.broadcast %cst_47 : f32 to vector<2x8x8xf32>
    %106 = arith.mulf %104, %105 : vector<2x8x8xf32>
    %107 = arith.addf %106, %5 : vector<2x8x8xf32>
    %cst_48 = arith.constant dense<0xFF800000> : vector<2x8xf32>
    %108 = vector.multi_reduction <maximumf>, %107, %cst_48 [2] : vector<2x8x8xf32> to vector<2x8xf32>
    %109 = vector.shape_cast %108 : vector<2x8xf32> to vector<2x8x1xf32>
    %110 = vector.broadcast %109 : vector<2x8x1xf32> to vector<2x8x8xf32>
    %111 = arith.subf %107, %110 : vector<2x8x8xf32>
    %112 = math.exp %111 : vector<2x8x8xf32>
    %cst_49 = arith.constant dense<0.000000e+00> : vector<2x8xf32>
    %113 = vector.multi_reduction <add>, %112, %cst_49 [2] : vector<2x8x8xf32> to vector<2x8xf32>
    %114 = vector.shape_cast %113 : vector<2x8xf32> to vector<2x8x1xf32>
    %115 = tpu.reciprocal %114 {approx = true} : vector<2x8x1xf32> -> vector<2x8x1xf32>
    %116 = vector.broadcast %115 : vector<2x8x1xf32> to vector<2x8x8xf32>
    %117 = arith.mulf %112, %116 : vector<2x8x8xf32>
    %118 = arith.truncf %117 : vector<2x8x8xf32> to vector<2x8x8xbf16>
    %119 = vector.extract_strided_slice %63 {offsets = [0, 0, 16], sizes = [2, 8, 8], strides = [1, 1, 1]} : vector<2x8x32xbf16> to vector<2x8x8xbf16>
    "tpu.trace_start"() <{level = 10 : i32, message = "bts,bsd->btd"}> : () -> ()
    %cst_50 = arith.constant dense<0.000000e+00> : vector<2x8x8xf32>
    %120 = tpu.matmul %118, %119, %cst_50 {dimension_numbers = #tpu.dot_dimension_numbers<[2], [1], [1], [2], [0, 0, 0, 1, 1, 2], [0], [0]>} : vector<2x8x8xbf16>, vector<2x8x8xbf16>, vector<2x8x8xf32> -> vector<2x8x8xf32>
    "tpu.trace_stop"() : () -> ()
    %121 = vector.extract_strided_slice %61 {offsets = [0, 0, 24], sizes = [2, 8, 8], strides = [1, 1, 1]} : vector<2x8x32xbf16> to vector<2x8x8xbf16>
    %122 = vector.extract_strided_slice %62 {offsets = [0, 0, 24], sizes = [2, 8, 8], strides = [1, 1, 1]} : vector<2x8x32xbf16> to vector<2x8x8xbf16>
    "tpu.trace_start"() <{level = 10 : i32, message = "btd,bsd->bts"}> : () -> ()
    %cst_51 = arith.constant dense<0.000000e+00> : vector<2x8x8xf32>
    %123 = tpu.matmul %121, %122, %cst_51 {dimension_numbers = #tpu.dot_dimension_numbers<[2], [2], [1], [1], [0, 0, 0, 1, 1, 1], [0], [0]>} : vector<2x8x8xbf16>, vector<2x8x8xbf16>, vector<2x8x8xf32> -> vector<2x8x8xf32>
    "tpu.trace_stop"() : () -> ()
    %cst_52 = arith.constant 0.353553385 : f32
    %124 = vector.broadcast %cst_52 : f32 to vector<2x8x8xf32>
    %125 = arith.mulf %123, %124 : vector<2x8x8xf32>
    %126 = arith.addf %125, %5 : vector<2x8x8xf32>
    %cst_53 = arith.constant dense<0xFF800000> : vector<2x8xf32>
    %127 = vector.multi_reduction <maximumf>, %126, %cst_53 [2] : vector<2x8x8xf32> to vector<2x8xf32>
    %128 = vector.shape_cast %127 : vector<2x8xf32> to vector<2x8x1xf32>
    %129 = vector.broadcast %128 : vector<2x8x1xf32> to vector<2x8x8xf32>
    %130 = arith.subf %126, %129 : vector<2x8x8xf32>
    %131 = math.exp %130 : vector<2x8x8xf32>
    %cst_54 = arith.constant dense<0.000000e+00> : vector<2x8xf32>
    %132 = vector.multi_reduction <add>, %131, %cst_54 [2] : vector<2x8x8xf32> to vector<2x8xf32>
    %133 = vector.shape_cast %132 : vector<2x8xf32> to vector<2x8x1xf32>
    %134 = tpu.reciprocal %133 {approx = true} : vector<2x8x1xf32> -> vector<2x8x1xf32>
    %135 = vector.broadcast %134 : vector<2x8x1xf32> to vector<2x8x8xf32>
    %136 = arith.mulf %131, %135 : vector<2x8x8xf32>
    %137 = arith.truncf %136 : vector<2x8x8xf32> to vector<2x8x8xbf16>
    %138 = vector.extract_strided_slice %63 {offsets = [0, 0, 24], sizes = [2, 8, 8], strides = [1, 1, 1]} : vector<2x8x32xbf16> to vector<2x8x8xbf16>
    "tpu.trace_start"() <{level = 10 : i32, message = "bts,bsd->btd"}> : () -> ()
    %cst_55 = arith.constant dense<0.000000e+00> : vector<2x8x8xf32>
    %139 = tpu.matmul %137, %138, %cst_55 {dimension_numbers = #tpu.dot_dimension_numbers<[2], [1], [1], [2], [0, 0, 0, 1, 1, 2], [0], [0]>} : vector<2x8x8xbf16>, vector<2x8x8xbf16>, vector<2x8x8xf32> -> vector<2x8x8xf32>
    "tpu.trace_stop"() : () -> ()
    %140 = tpu.concatenate %82, %101, %120, %139 in 2 : vector<2x8x8xf32>, vector<2x8x8xf32>, vector<2x8x8xf32>, vector<2x8x8xf32> -> vector<2x8x32xf32>
    %141 = vector.shape_cast %140 : vector<2x8x32xf32> to vector<16x32xf32>
    %142 = arith.truncf %141 : vector<16x32xf32> to vector<16x32xbf16>
    %cst_56 = arith.constant dense<0.000000e+00> : vector<16x32xf32>
    %143 = tpu.matmul %142, %44, %cst_56 {dimension_numbers = #tpu.dot_dimension_numbers<[1], [0], [0], [1], [0, 0, 1, 1], [], []>} : vector<16x32xbf16>, vector<32x32xbf16>, vector<16x32xf32> -> vector<16x32xf32>
    %144 = vector.broadcast %48 : vector<1x32xf32> to vector<16x32xf32>
    %145 = arith.addf %143, %144 : vector<16x32xf32>
    %146 = arith.addf %3, %145 : vector<16x32xf32>
    %147 = vector.extract_strided_slice %8 {offsets = [2, 0], sizes = [1, 32], strides = [1, 1]} : vector<6x32xf32> to vector<1x32xf32>
    %148 = vector.extract_strided_slice %8 {offsets = [3, 0], sizes = [1, 32], strides = [1, 1]} : vector<6x32xf32> to vector<1x32xf32>
    %cst_57 = arith.constant dense<0.000000e+00> : vector<16xf32>
    %149 = vector.multi_reduction <add>, %146, %cst_57 [1] : vector<16x32xf32> to vector<16xf32>
    %150 = vector.shape_cast %149 : vector<16xf32> to vector<16x1xf32>
    %cst_58 = arith.constant 3.200000e+01 : f32
    %151 = vector.broadcast %cst_58 : f32 to vector<16x1xf32>
    %152 = arith.divf %150, %151 : vector<16x1xf32>
    %153 = vector.broadcast %152 : vector<16x1xf32> to vector<16x32xf32>
    %154 = arith.subf %146, %153 : vector<16x32xf32>
    %155 = arith.mulf %154, %154 : vector<16x32xf32>
    %cst_59 = arith.constant dense<0.000000e+00> : vector<16xf32>
    %156 = vector.multi_reduction <add>, %155, %cst_59 [1] : vector<16x32xf32> to vector<16xf32>
    %157 = vector.shape_cast %156 : vector<16xf32> to vector<16x1xf32>
    %cst_60 = arith.constant 3.100000e+01 : f32
    %158 = vector.broadcast %cst_60 : f32 to vector<16x1xf32>
    %159 = arith.divf %157, %158 : vector<16x1xf32>
    %160 = math.sqrt %159 : vector<16x1xf32>
    %cst_61 = arith.constant 9.99999997E-7 : f32
    %161 = vector.broadcast %cst_61 : f32 to vector<16x1xf32>
    %162 = arith.addf %160, %161 : vector<16x1xf32>
    %163 = tpu.reciprocal %162 {approx = true} : vector<16x1xf32> -> vector<16x1xf32>
    %164 = vector.broadcast %152 : vector<16x1xf32> to vector<16x32xf32>
    %165 = arith.subf %146, %164 : vector<16x32xf32>
    %166 = vector.broadcast %147 : vector<1x32xf32> to vector<16x32xf32>
    %167 = arith.mulf %166, %165 : vector<16x32xf32>
    %168 = vector.broadcast %163 : vector<16x1xf32> to vector<16x32xf32>
    %169 = arith.mulf %167, %168 : vector<16x32xf32>
    %170 = vector.broadcast %148 : vector<1x32xf32> to vector<16x32xf32>
    %171 = arith.addf %169, %170 : vector<16x32xf32>
    %172 = arith.truncf %171 : vector<16x32xf32> to vector<16x32xbf16>
    %c0_62 = arith.constant 0 : index
    %c4 = arith.constant 4 : index
    %c0_63 = arith.constant 0 : index
    %c0_64 = arith.constant 0 : index
    %173 = vector.load %arg6[%c0_62, %c4, %c0_63, %c0_64] : memref<1x8x32x32xbf16, #tpu.memory_space<vmem>>, vector<1x1x32x32xbf16>
    %174 = vector.shape_cast %173 : vector<1x1x32x32xbf16> to vector<32x32xbf16>
    %c0_65 = arith.constant 0 : index
    %c5 = arith.constant 5 : index
    %c0_66 = arith.constant 0 : index
    %c0_67 = arith.constant 0 : index
    %175 = vector.load %arg6[%c0_65, %c5, %c0_66, %c0_67] : memref<1x8x32x32xbf16, #tpu.memory_space<vmem>>, vector<1x1x32x32xbf16>
    %176 = vector.shape_cast %175 : vector<1x1x32x32xbf16> to vector<32x32xbf16>
    %c0_68 = arith.constant 0 : index
    %c6 = arith.constant 6 : index
    %c0_69 = arith.constant 0 : index
    %c0_70 = arith.constant 0 : index
    %177 = vector.load %arg6[%c0_68, %c6, %c0_69, %c0_70] : memref<1x8x32x32xbf16, #tpu.memory_space<vmem>>, vector<1x1x32x32xbf16>
    %178 = vector.shape_cast %177 : vector<1x1x32x32xbf16> to vector<32x32xbf16>
    %c0_71 = arith.constant 0 : index
    %c7 = arith.constant 7 : index
    %c0_72 = arith.constant 0 : index
    %c0_73 = arith.constant 0 : index
    %179 = vector.load %arg6[%c0_71, %c7, %c0_72, %c0_73] : memref<1x8x32x32xbf16, #tpu.memory_space<vmem>>, vector<1x1x32x32xbf16>
    %180 = vector.shape_cast %179 : vector<1x1x32x32xbf16> to vector<32x32xbf16>
    %181 = vector.extract_strided_slice %10 {offsets = [4, 0], sizes = [1, 32], strides = [1, 1]} : vector<8x32xf32> to vector<1x32xf32>
    %182 = vector.extract_strided_slice %10 {offsets = [5, 0], sizes = [1, 32], strides = [1, 1]} : vector<8x32xf32> to vector<1x32xf32>
    %183 = vector.extract_strided_slice %10 {offsets = [6, 0], sizes = [1, 32], strides = [1, 1]} : vector<8x32xf32> to vector<1x32xf32>
    %184 = vector.extract_strided_slice %10 {offsets = [7, 0], sizes = [1, 32], strides = [1, 1]} : vector<8x32xf32> to vector<1x32xf32>
    %cst_74 = arith.constant dense<0.000000e+00> : vector<16x32xf32>
    %185 = tpu.matmul %172, %174, %cst_74 {dimension_numbers = #tpu.dot_dimension_numbers<[1], [0], [0], [1], [0, 0, 1, 1], [], []>} : vector<16x32xbf16>, vector<32x32xbf16>, vector<16x32xf32> -> vector<16x32xf32>
    %186 = vector.broadcast %181 : vector<1x32xf32> to vector<16x32xf32>
    %187 = arith.addf %185, %186 : vector<16x32xf32>
    %188 = arith.truncf %187 : vector<16x32xf32> to vector<16x32xbf16>
    %cst_75 = arith.constant dense<0.000000e+00> : vector<32x32xf32>
    %189 = tpu.matmul %4, %176, %cst_75 {dimension_numbers = #tpu.dot_dimension_numbers<[1], [0], [0], [1], [0, 0, 1, 1], [], []>} : vector<32x32xbf16>, vector<32x32xbf16>, vector<32x32xf32> -> vector<32x32xf32>
    %190 = vector.broadcast %182 : vector<1x32xf32> to vector<32x32xf32>
    %191 = arith.addf %189, %190 : vector<32x32xf32>
    %192 = arith.truncf %191 : vector<32x32xf32> to vector<32x32xbf16>
    %cst_76 = arith.constant dense<0.000000e+00> : vector<32x32xf32>
    %193 = tpu.matmul %4, %178, %cst_76 {dimension_numbers = #tpu.dot_dimension_numbers<[1], [0], [0], [1], [0, 0, 1, 1], [], []>} : vector<32x32xbf16>, vector<32x32xbf16>, vector<32x32xf32> -> vector<32x32xf32>
    %194 = vector.broadcast %183 : vector<1x32xf32> to vector<32x32xf32>
    %195 = arith.addf %193, %194 : vector<32x32xf32>
    %196 = arith.truncf %195 : vector<32x32xf32> to vector<32x32xbf16>
    %197 = vector.shape_cast %188 : vector<16x32xbf16> to vector<2x8x32xbf16>
    %198 = vector.shape_cast %192 : vector<32x32xbf16> to vector<2x16x32xbf16>
    %199 = vector.shape_cast %196 : vector<32x32xbf16> to vector<2x16x32xbf16>
    %200 = vector.extract_strided_slice %197 {offsets = [0, 0, 0], sizes = [2, 8, 8], strides = [1, 1, 1]} : vector<2x8x32xbf16> to vector<2x8x8xbf16>
    %201 = vector.extract_strided_slice %198 {offsets = [0, 0, 0], sizes = [2, 16, 8], strides = [1, 1, 1]} : vector<2x16x32xbf16> to vector<2x16x8xbf16>
    "tpu.trace_start"() <{level = 10 : i32, message = "btd,bsd->bts"}> : () -> ()
    %cst_77 = arith.constant dense<0.000000e+00> : vector<2x8x16xf32>
    %202 = tpu.matmul %200, %201, %cst_77 {dimension_numbers = #tpu.dot_dimension_numbers<[2], [2], [1], [1], [0, 0, 0, 1, 1, 1], [0], [0]>} : vector<2x8x8xbf16>, vector<2x16x8xbf16>, vector<2x8x16xf32> -> vector<2x8x16xf32>
    "tpu.trace_stop"() : () -> ()
    %cst_78 = arith.constant 0.353553385 : f32
    %203 = vector.broadcast %cst_78 : f32 to vector<2x8x16xf32>
    %204 = arith.mulf %202, %203 : vector<2x8x16xf32>
    %205 = vector.broadcast %6 : vector<2x1x16xf32> to vector<2x8x16xf32>
    %206 = arith.addf %204, %205 : vector<2x8x16xf32>
    %cst_79 = arith.constant dense<0xFF800000> : vector<2x8xf32>
    %207 = vector.multi_reduction <maximumf>, %206, %cst_79 [2] : vector<2x8x16xf32> to vector<2x8xf32>
    %208 = vector.shape_cast %207 : vector<2x8xf32> to vector<2x8x1xf32>
    %209 = vector.broadcast %208 : vector<2x8x1xf32> to vector<2x8x16xf32>
    %210 = arith.subf %206, %209 : vector<2x8x16xf32>
    %211 = math.exp %210 : vector<2x8x16xf32>
    %cst_80 = arith.constant dense<0.000000e+00> : vector<2x8xf32>
    %212 = vector.multi_reduction <add>, %211, %cst_80 [2] : vector<2x8x16xf32> to vector<2x8xf32>
    %213 = vector.shape_cast %212 : vector<2x8xf32> to vector<2x8x1xf32>
    %214 = tpu.reciprocal %213 {approx = true} : vector<2x8x1xf32> -> vector<2x8x1xf32>
    %215 = vector.broadcast %214 : vector<2x8x1xf32> to vector<2x8x16xf32>
    %216 = arith.mulf %211, %215 : vector<2x8x16xf32>
    %217 = arith.truncf %216 : vector<2x8x16xf32> to vector<2x8x16xbf16>
    %218 = vector.extract_strided_slice %199 {offsets = [0, 0, 0], sizes = [2, 16, 8], strides = [1, 1, 1]} : vector<2x16x32xbf16> to vector<2x16x8xbf16>
    "tpu.trace_start"() <{level = 10 : i32, message = "bts,bsd->btd"}> : () -> ()
    %cst_81 = arith.constant dense<0.000000e+00> : vector<2x8x8xf32>
    %219 = tpu.matmul %217, %218, %cst_81 {dimension_numbers = #tpu.dot_dimension_numbers<[2], [1], [1], [2], [0, 0, 0, 1, 1, 2], [0], [0]>} : vector<2x8x16xbf16>, vector<2x16x8xbf16>, vector<2x8x8xf32> -> vector<2x8x8xf32>
    "tpu.trace_stop"() : () -> ()
    %220 = vector.extract_strided_slice %197 {offsets = [0, 0, 8], sizes = [2, 8, 8], strides = [1, 1, 1]} : vector<2x8x32xbf16> to vector<2x8x8xbf16>
    %221 = vector.extract_strided_slice %198 {offsets = [0, 0, 8], sizes = [2, 16, 8], strides = [1, 1, 1]} : vector<2x16x32xbf16> to vector<2x16x8xbf16>
    "tpu.trace_start"() <{level = 10 : i32, message = "btd,bsd->bts"}> : () -> ()
    %cst_82 = arith.constant dense<0.000000e+00> : vector<2x8x16xf32>
    %222 = tpu.matmul %220, %221, %cst_82 {dimension_numbers = #tpu.dot_dimension_numbers<[2], [2], [1], [1], [0, 0, 0, 1, 1, 1], [0], [0]>} : vector<2x8x8xbf16>, vector<2x16x8xbf16>, vector<2x8x16xf32> -> vector<2x8x16xf32>
    "tpu.trace_stop"() : () -> ()
    %cst_83 = arith.constant 0.353553385 : f32
    %223 = vector.broadcast %cst_83 : f32 to vector<2x8x16xf32>
    %224 = arith.mulf %222, %223 : vector<2x8x16xf32>
    %225 = vector.broadcast %6 : vector<2x1x16xf32> to vector<2x8x16xf32>
    %226 = arith.addf %224, %225 : vector<2x8x16xf32>
    %cst_84 = arith.constant dense<0xFF800000> : vector<2x8xf32>
    %227 = vector.multi_reduction <maximumf>, %226, %cst_84 [2] : vector<2x8x16xf32> to vector<2x8xf32>
    %228 = vector.shape_cast %227 : vector<2x8xf32> to vector<2x8x1xf32>
    %229 = vector.broadcast %228 : vector<2x8x1xf32> to vector<2x8x16xf32>
    %230 = arith.subf %226, %229 : vector<2x8x16xf32>
    %231 = math.exp %230 : vector<2x8x16xf32>
    %cst_85 = arith.constant dense<0.000000e+00> : vector<2x8xf32>
    %232 = vector.multi_reduction <add>, %231, %cst_85 [2] : vector<2x8x16xf32> to vector<2x8xf32>
    %233 = vector.shape_cast %232 : vector<2x8xf32> to vector<2x8x1xf32>
    %234 = tpu.reciprocal %233 {approx = true} : vector<2x8x1xf32> -> vector<2x8x1xf32>
    %235 = vector.broadcast %234 : vector<2x8x1xf32> to vector<2x8x16xf32>
    %236 = arith.mulf %231, %235 : vector<2x8x16xf32>
    %237 = arith.truncf %236 : vector<2x8x16xf32> to vector<2x8x16xbf16>
    %238 = vector.extract_strided_slice %199 {offsets = [0, 0, 8], sizes = [2, 16, 8], strides = [1, 1, 1]} : vector<2x16x32xbf16> to vector<2x16x8xbf16>
    "tpu.trace_start"() <{level = 10 : i32, message = "bts,bsd->btd"}> : () -> ()
    %cst_86 = arith.constant dense<0.000000e+00> : vector<2x8x8xf32>
    %239 = tpu.matmul %237, %238, %cst_86 {dimension_numbers = #tpu.dot_dimension_numbers<[2], [1], [1], [2], [0, 0, 0, 1, 1, 2], [0], [0]>} : vector<2x8x16xbf16>, vector<2x16x8xbf16>, vector<2x8x8xf32> -> vector<2x8x8xf32>
    "tpu.trace_stop"() : () -> ()
    %240 = vector.extract_strided_slice %197 {offsets = [0, 0, 16], sizes = [2, 8, 8], strides = [1, 1, 1]} : vector<2x8x32xbf16> to vector<2x8x8xbf16>
    %241 = vector.extract_strided_slice %198 {offsets = [0, 0, 16], sizes = [2, 16, 8], strides = [1, 1, 1]} : vector<2x16x32xbf16> to vector<2x16x8xbf16>
    "tpu.trace_start"() <{level = 10 : i32, message = "btd,bsd->bts"}> : () -> ()
    %cst_87 = arith.constant dense<0.000000e+00> : vector<2x8x16xf32>
    %242 = tpu.matmul %240, %241, %cst_87 {dimension_numbers = #tpu.dot_dimension_numbers<[2], [2], [1], [1], [0, 0, 0, 1, 1, 1], [0], [0]>} : vector<2x8x8xbf16>, vector<2x16x8xbf16>, vector<2x8x16xf32> -> vector<2x8x16xf32>
    "tpu.trace_stop"() : () -> ()
    %cst_88 = arith.constant 0.353553385 : f32
    %243 = vector.broadcast %cst_88 : f32 to vector<2x8x16xf32>
    %244 = arith.mulf %242, %243 : vector<2x8x16xf32>
    %245 = vector.broadcast %6 : vector<2x1x16xf32> to vector<2x8x16xf32>
    %246 = arith.addf %244, %245 : vector<2x8x16xf32>
    %cst_89 = arith.constant dense<0xFF800000> : vector<2x8xf32>
    %247 = vector.multi_reduction <maximumf>, %246, %cst_89 [2] : vector<2x8x16xf32> to vector<2x8xf32>
    %248 = vector.shape_cast %247 : vector<2x8xf32> to vector<2x8x1xf32>
    %249 = vector.broadcast %248 : vector<2x8x1xf32> to vector<2x8x16xf32>
    %250 = arith.subf %246, %249 : vector<2x8x16xf32>
    %251 = math.exp %250 : vector<2x8x16xf32>
    %cst_90 = arith.constant dense<0.000000e+00> : vector<2x8xf32>
    %252 = vector.multi_reduction <add>, %251, %cst_90 [2] : vector<2x8x16xf32> to vector<2x8xf32>
    %253 = vector.shape_cast %252 : vector<2x8xf32> to vector<2x8x1xf32>
    %254 = tpu.reciprocal %253 {approx = true} : vector<2x8x1xf32> -> vector<2x8x1xf32>
    %255 = vector.broadcast %254 : vector<2x8x1xf32> to vector<2x8x16xf32>
    %256 = arith.mulf %251, %255 : vector<2x8x16xf32>
    %257 = arith.truncf %256 : vector<2x8x16xf32> to vector<2x8x16xbf16>
    %258 = vector.extract_strided_slice %199 {offsets = [0, 0, 16], sizes = [2, 16, 8], strides = [1, 1, 1]} : vector<2x16x32xbf16> to vector<2x16x8xbf16>
    "tpu.trace_start"() <{level = 10 : i32, message = "bts,bsd->btd"}> : () -> ()
    %cst_91 = arith.constant dense<0.000000e+00> : vector<2x8x8xf32>
    %259 = tpu.matmul %257, %258, %cst_91 {dimension_numbers = #tpu.dot_dimension_numbers<[2], [1], [1], [2], [0, 0, 0, 1, 1, 2], [0], [0]>} : vector<2x8x16xbf16>, vector<2x16x8xbf16>, vector<2x8x8xf32> -> vector<2x8x8xf32>
    "tpu.trace_stop"() : () -> ()
    %260 = vector.extract_strided_slice %197 {offsets = [0, 0, 24], sizes = [2, 8, 8], strides = [1, 1, 1]} : vector<2x8x32xbf16> to vector<2x8x8xbf16>
    %261 = vector.extract_strided_slice %198 {offsets = [0, 0, 24], sizes = [2, 16, 8], strides = [1, 1, 1]} : vector<2x16x32xbf16> to vector<2x16x8xbf16>
    "tpu.trace_start"() <{level = 10 : i32, message = "btd,bsd->bts"}> : () -> ()
    %cst_92 = arith.constant dense<0.000000e+00> : vector<2x8x16xf32>
    %262 = tpu.matmul %260, %261, %cst_92 {dimension_numbers = #tpu.dot_dimension_numbers<[2], [2], [1], [1], [0, 0, 0, 1, 1, 1], [0], [0]>} : vector<2x8x8xbf16>, vector<2x16x8xbf16>, vector<2x8x16xf32> -> vector<2x8x16xf32>
    "tpu.trace_stop"() : () -> ()
    %cst_93 = arith.constant 0.353553385 : f32
    %263 = vector.broadcast %cst_93 : f32 to vector<2x8x16xf32>
    %264 = arith.mulf %262, %263 : vector<2x8x16xf32>
    %265 = vector.broadcast %6 : vector<2x1x16xf32> to vector<2x8x16xf32>
    %266 = arith.addf %264, %265 : vector<2x8x16xf32>
    %cst_94 = arith.constant dense<0xFF800000> : vector<2x8xf32>
    %267 = vector.multi_reduction <maximumf>, %266, %cst_94 [2] : vector<2x8x16xf32> to vector<2x8xf32>
    %268 = vector.shape_cast %267 : vector<2x8xf32> to vector<2x8x1xf32>
    %269 = vector.broadcast %268 : vector<2x8x1xf32> to vector<2x8x16xf32>
    %270 = arith.subf %266, %269 : vector<2x8x16xf32>
    %271 = math.exp %270 : vector<2x8x16xf32>
    %cst_95 = arith.constant dense<0.000000e+00> : vector<2x8xf32>
    %272 = vector.multi_reduction <add>, %271, %cst_95 [2] : vector<2x8x16xf32> to vector<2x8xf32>
    %273 = vector.shape_cast %272 : vector<2x8xf32> to vector<2x8x1xf32>
    %274 = tpu.reciprocal %273 {approx = true} : vector<2x8x1xf32> -> vector<2x8x1xf32>
    %275 = vector.broadcast %274 : vector<2x8x1xf32> to vector<2x8x16xf32>
    %276 = arith.mulf %271, %275 : vector<2x8x16xf32>
    %277 = arith.truncf %276 : vector<2x8x16xf32> to vector<2x8x16xbf16>
    %278 = vector.extract_strided_slice %199 {offsets = [0, 0, 24], sizes = [2, 16, 8], strides = [1, 1, 1]} : vector<2x16x32xbf16> to vector<2x16x8xbf16>
    "tpu.trace_start"() <{level = 10 : i32, message = "bts,bsd->btd"}> : () -> ()
    %cst_96 = arith.constant dense<0.000000e+00> : vector<2x8x8xf32>
    %279 = tpu.matmul %277, %278, %cst_96 {dimension_numbers = #tpu.dot_dimension_numbers<[2], [1], [1], [2], [0, 0, 0, 1, 1, 2], [0], [0]>} : vector<2x8x16xbf16>, vector<2x16x8xbf16>, vector<2x8x8xf32> -> vector<2x8x8xf32>
    "tpu.trace_stop"() : () -> ()
    %280 = tpu.concatenate %219, %239, %259, %279 in 2 : vector<2x8x8xf32>, vector<2x8x8xf32>, vector<2x8x8xf32>, vector<2x8x8xf32> -> vector<2x8x32xf32>
    %281 = vector.shape_cast %280 : vector<2x8x32xf32> to vector<16x32xf32>
    %282 = arith.truncf %281 : vector<16x32xf32> to vector<16x32xbf16>
    %cst_97 = arith.constant dense<0.000000e+00> : vector<16x32xf32>
    %283 = tpu.matmul %282, %180, %cst_97 {dimension_numbers = #tpu.dot_dimension_numbers<[1], [0], [0], [1], [0, 0, 1, 1], [], []>} : vector<16x32xbf16>, vector<32x32xbf16>, vector<16x32xf32> -> vector<16x32xf32>
    %284 = vector.broadcast %184 : vector<1x32xf32> to vector<16x32xf32>
    %285 = arith.addf %283, %284 : vector<16x32xf32>
    %286 = arith.addf %146, %285 : vector<16x32xf32>
    %287 = vector.extract_strided_slice %8 {offsets = [4, 0], sizes = [1, 32], strides = [1, 1]} : vector<6x32xf32> to vector<1x32xf32>
    %288 = vector.extract_strided_slice %8 {offsets = [5, 0], sizes = [1, 32], strides = [1, 1]} : vector<6x32xf32> to vector<1x32xf32>
    %cst_98 = arith.constant dense<0.000000e+00> : vector<16xf32>
    %289 = vector.multi_reduction <add>, %286, %cst_98 [1] : vector<16x32xf32> to vector<16xf32>
    %290 = vector.shape_cast %289 : vector<16xf32> to vector<16x1xf32>
    %cst_99 = arith.constant 3.200000e+01 : f32
    %291 = vector.broadcast %cst_99 : f32 to vector<16x1xf32>
    %292 = arith.divf %290, %291 : vector<16x1xf32>
    %293 = vector.broadcast %292 : vector<16x1xf32> to vector<16x32xf32>
    %294 = arith.subf %286, %293 : vector<16x32xf32>
    %295 = arith.mulf %294, %294 : vector<16x32xf32>
    %cst_100 = arith.constant dense<0.000000e+00> : vector<16xf32>
    %296 = vector.multi_reduction <add>, %295, %cst_100 [1] : vector<16x32xf32> to vector<16xf32>
    %297 = vector.shape_cast %296 : vector<16xf32> to vector<16x1xf32>
    %cst_101 = arith.constant 3.100000e+01 : f32
    %298 = vector.broadcast %cst_101 : f32 to vector<16x1xf32>
    %299 = arith.divf %297, %298 : vector<16x1xf32>
    %300 = math.sqrt %299 : vector<16x1xf32>
    %cst_102 = arith.constant 9.99999997E-7 : f32
    %301 = vector.broadcast %cst_102 : f32 to vector<16x1xf32>
    %302 = arith.addf %300, %301 : vector<16x1xf32>
    %303 = tpu.reciprocal %302 {approx = true} : vector<16x1xf32> -> vector<16x1xf32>
    %304 = vector.broadcast %292 : vector<16x1xf32> to vector<16x32xf32>
    %305 = arith.subf %286, %304 : vector<16x32xf32>
    %306 = vector.broadcast %287 : vector<1x32xf32> to vector<16x32xf32>
    %307 = arith.mulf %306, %305 : vector<16x32xf32>
    %308 = vector.broadcast %303 : vector<16x1xf32> to vector<16x32xf32>
    %309 = arith.mulf %307, %308 : vector<16x32xf32>
    %310 = vector.broadcast %288 : vector<1x32xf32> to vector<16x32xf32>
    %311 = arith.addf %309, %310 : vector<16x32xf32>
    %312 = arith.truncf %311 : vector<16x32xf32> to vector<16x32xbf16>
    %c0_103 = arith.constant 0 : index
    %c0_104 = arith.constant 0 : index
    %c0_105 = arith.constant 0 : index
    %313 = vector.load %arg8[%c0_103, %c0_104, %c0_105] : memref<1x32x2048xbf16, #tpu.memory_space<vmem>>, vector<1x32x2048xbf16>
    %314 = vector.shape_cast %313 : vector<1x32x2048xbf16> to vector<32x2048xbf16>
    %cst_106 = arith.constant dense<0.000000e+00> : vector<16x2048xf32>
    %315 = tpu.matmul %312, %314, %cst_106 {dimension_numbers = #tpu.dot_dimension_numbers<[1], [0], [0], [1], [0, 0, 1, 1], [], []>} : vector<16x32xbf16>, vector<32x2048xbf16>, vector<16x2048xf32> -> vector<16x2048xf32>
    %c0_107 = arith.constant 0 : index
    %c0_108 = arith.constant 0 : index
    %c0_109 = arith.constant 0 : index
    %316 = vector.load %arg9[%c0_107, %c0_108, %c0_109] : memref<1x1x2048xf32, #tpu.memory_space<vmem>>, vector<1x1x2048xf32>
    %317 = vector.shape_cast %316 : vector<1x1x2048xf32> to vector<1x2048xf32>
    %318 = vector.broadcast %317 : vector<1x2048xf32> to vector<16x2048xf32>
    %319 = arith.addf %315, %318 : vector<16x2048xf32>
    %cst_110 = arith.constant 0.000000e+00 : f32
    %320 = vector.broadcast %cst_110 : f32 to vector<16x2048xf32>
    %321 = arith.maximumf %319, %320 : vector<16x2048xf32>
    %322 = arith.truncf %321 : vector<16x2048xf32> to vector<16x2048xbf16>
    %c0_111 = arith.constant 0 : index
    %c0_112 = arith.constant 0 : index
    %c0_113 = arith.constant 0 : index
    %323 = vector.load %arg10[%c0_111, %c0_112, %c0_113] : memref<1x2048x32xbf16, #tpu.memory_space<vmem>>, vector<1x2048x32xbf16>
    %324 = vector.shape_cast %323 : vector<1x2048x32xbf16> to vector<2048x32xbf16>
    %cst_114 = arith.constant dense<0.000000e+00> : vector<16x32xf32>
    %325 = tpu.matmul %322, %324, %cst_114 {dimension_numbers = #tpu.dot_dimension_numbers<[1], [0], [0], [1], [0, 0, 1, 1], [], []>} : vector<16x2048xbf16>, vector<2048x32xbf16>, vector<16x32xf32> -> vector<16x32xf32>
    %326 = arith.addf %286, %325 : vector<16x32xf32>
    %c0_115 = arith.constant 0 : index
    %c0_116 = arith.constant 0 : index
    %c0_117 = arith.constant 0 : index
    %327 = vector.load %arg11[%c0_115, %c0_116, %c0_117] : memref<1x1x32xf32, #tpu.memory_space<vmem>>, vector<1x1x32xf32>
    %328 = vector.shape_cast %327 : vector<1x1x32xf32> to vector<1x32xf32>
    %329 = vector.broadcast %328 : vector<1x32xf32> to vector<16x32xf32>
    %330 = arith.addf %326, %329 : vector<16x32xf32>
    %c0_118 = arith.constant 0 : index
    %c0_119 = arith.constant 0 : index
    %331 = vector.load %arg15[%c0_118, %c0_119] : memref<16x32xf32, #tpu.memory_space<vmem>>, vector<16x32xf32>
    tpu.vector_store %arg15[%c0_118, %c0_119], %330 {strides = array<i32>} : memref<16x32xf32, #tpu.memory_space<vmem>>, vector<16x32xf32>,
    %c1_i32 = arith.constant 1 : i32
    %332 = arith.cmpi eq, %arg0, %c1_i32 : i32
    %333 = arith.extui %332 : i1 to i32
    %c0_i32_120 = arith.constant 0 : i32
    %334 = arith.cmpi ne, %333, %c0_i32_120 : i32
    scf.if %334 {
      %cst_121 = arith.constant dense<0.000000e+00> : vector<16xf32>
      %335 = vector.multi_reduction <add>, %330, %cst_121 [1] : vector<16x32xf32> to vector<16xf32>
      %336 = vector.shape_cast %335 : vector<16xf32> to vector<16x1xf32>
      %cst_122 = arith.constant 3.200000e+01 : f32
      %337 = vector.broadcast %cst_122 : f32 to vector<16x1xf32>
      %338 = arith.divf %336, %337 : vector<16x1xf32>
      %339 = vector.broadcast %338 : vector<16x1xf32> to vector<16x32xf32>
      %340 = arith.subf %330, %339 : vector<16x32xf32>
      %341 = arith.mulf %340, %340 : vector<16x32xf32>
      %cst_123 = arith.constant dense<0.000000e+00> : vector<16xf32>
      %342 = vector.multi_reduction <add>, %341, %cst_123 [1] : vector<16x32xf32> to vector<16xf32>
      %343 = vector.shape_cast %342 : vector<16xf32> to vector<16x1xf32>
      %cst_124 = arith.constant 3.100000e+01 : f32
      %344 = vector.broadcast %cst_124 : f32 to vector<16x1xf32>
      %345 = arith.divf %343, %344 : vector<16x1xf32>
      %346 = math.sqrt %345 : vector<16x1xf32>
      %cst_125 = arith.constant 9.99999997E-7 : f32
      %347 = vector.broadcast %cst_125 : f32 to vector<16x1xf32>
      %348 = arith.addf %346, %347 : vector<16x1xf32>
      %349 = tpu.reciprocal %348 {approx = true} : vector<16x1xf32> -> vector<16x1xf32>
      %c0_126 = arith.constant 0 : index
      %c0_127 = arith.constant 0 : index
      %350 = vector.load %arg12[%c0_126, %c0_127] : memref<1x32xf32, #tpu.memory_space<vmem>>, vector<1x32xf32>
      %351 = vector.broadcast %338 : vector<16x1xf32> to vector<16x32xf32>
      %352 = arith.subf %330, %351 : vector<16x32xf32>
      %353 = vector.broadcast %350 : vector<1x32xf32> to vector<16x32xf32>
      %354 = arith.mulf %353, %352 : vector<16x32xf32>
      %355 = vector.broadcast %349 : vector<16x1xf32> to vector<16x32xf32>
      %356 = arith.mulf %354, %355 : vector<16x32xf32>
      %c0_128 = arith.constant 0 : index
      %c0_129 = arith.constant 0 : index
      %357 = vector.load %arg13[%c0_128, %c0_129] : memref<1x32xf32, #tpu.memory_space<vmem>>, vector<1x32xf32>
      %358 = vector.broadcast %357 : vector<1x32xf32> to vector<16x32xf32>
      %359 = arith.addf %356, %358 : vector<16x32xf32>
      %360 = vector.shape_cast %359 : vector<16x32xf32> to vector<2x8x32xf32>
      %361 = vector.extract_strided_slice %360 {offsets = [0, 0, 0], sizes = [2, 1, 32], strides = [1, 1, 1]} : vector<2x8x32xf32> to vector<2x1x32xf32>
      %362 = vector.shape_cast %361 : vector<2x1x32xf32> to vector<2x32xf32>
      %363 = vector.extract_strided_slice %360 {offsets = [0, 1, 0], sizes = [2, 1, 32], strides = [1, 1, 1]} : vector<2x8x32xf32> to vector<2x1x32xf32>
      %364 = vector.shape_cast %363 : vector<2x1x32xf32> to vector<2x32xf32>
      %365 = vector.extract_strided_slice %360 {offsets = [0, 2, 0], sizes = [2, 1, 32], strides = [1, 1, 1]} : vector<2x8x32xf32> to vector<2x1x32xf32>
      %366 = vector.shape_cast %365 : vector<2x1x32xf32> to vector<2x32xf32>
      %367 = vector.extract_strided_slice %360 {offsets = [0, 3, 0], sizes = [2, 1, 32], strides = [1, 1, 1]} : vector<2x8x32xf32> to vector<2x1x32xf32>
      %368 = vector.shape_cast %367 : vector<2x1x32xf32> to vector<2x32xf32>
      %369 = vector.extract_strided_slice %360 {offsets = [0, 4, 0], sizes = [2, 1, 32], strides = [1, 1, 1]} : vector<2x8x32xf32> to vector<2x1x32xf32>
      %370 = vector.shape_cast %369 : vector<2x1x32xf32> to vector<2x32xf32>
      %371 = vector.extract_strided_slice %360 {offsets = [0, 5, 0], sizes = [2, 1, 32], strides = [1, 1, 1]} : vector<2x8x32xf32> to vector<2x1x32xf32>
      %372 = vector.shape_cast %371 : vector<2x1x32xf32> to vector<2x32xf32>
      %373 = vector.extract_strided_slice %360 {offsets = [0, 6, 0], sizes = [2, 1, 32], strides = [1, 1, 1]} : vector<2x8x32xf32> to vector<2x1x32xf32>
      %374 = vector.shape_cast %373 : vector<2x1x32xf32> to vector<2x32xf32>
      %375 = vector.extract_strided_slice %360 {offsets = [0, 7, 0], sizes = [2, 1, 32], strides = [1, 1, 1]} : vector<2x8x32xf32> to vector<2x1x32xf32>
      %376 = vector.shape_cast %375 : vector<2x1x32xf32> to vector<2x32xf32>
      %377 = tpu.concatenate %362, %364, %366, %368, %370, %372, %374, %376 in 1 : vector<2x32xf32>, vector<2x32xf32>, vector<2x32xf32>, vector<2x32xf32>, vector<2x32xf32>, vector<2x32xf32>, vector<2x32xf32>, vector<2x32xf32> -> vector<2x256xf32>
      %c0_130 = arith.constant 0 : index
      %c0_131 = arith.constant 0 : index
      %378 = vector.load %arg14[%c0_130, %c0_131] : memref<2x256xf32, #tpu.memory_space<vmem>>, vector<2x256xf32>
      tpu.vector_store %arg14[%c0_130, %c0_131], %377 {strides = array<i32>} : memref<2x256xf32, #tpu.memory_space<vmem>>, vector<2x256xf32>,
    } else {
    }
    return
  }
  func.func @transform_0(%arg0: i32) -> (i32, i32) {
    %c0_i32 = arith.constant 0 : i32
    %c0_i32_0 = arith.constant 0 : i32
    %c0_i32_1 = arith.constant 0 : i32
    return %c0_i32, %c0_i32_0 : i32, i32
  }
  func.func @transform_1(%arg0: i32) -> (i32, i32) {
    %c0_i32 = arith.constant 0 : i32
    %c0_i32_0 = arith.constant 0 : i32
    %c0_i32_1 = arith.constant 0 : i32
    return %c0_i32, %c0_i32_0 : i32, i32
  }
  func.func @transform_2(%arg0: i32) -> (i32, i32, i32) {
    %c0_i32 = arith.constant 0 : i32
    %c0_i32_0 = arith.constant 0 : i32
    %c0_i32_1 = arith.constant 0 : i32
    %c0_i32_2 = arith.constant 0 : i32
    return %c0_i32, %c0_i32_0, %c0_i32_1 : i32, i32, i32
  }
  func.func @transform_3(%arg0: i32) -> (i32, i32, i32) {
    %c0_i32 = arith.constant 0 : i32
    %c0_i32_0 = arith.constant 0 : i32
    %c0_i32_1 = arith.constant 0 : i32
    %c0_i32_2 = arith.constant 0 : i32
    return %c0_i32, %c0_i32_0, %c0_i32_1 : i32, i32, i32
  }
  func.func @transform_4(%arg0: i32) -> (i32, i32, i32) {
    %c0_i32 = arith.constant 0 : i32
    %c0_i32_0 = arith.constant 0 : i32
    %c0_i32_1 = arith.constant 0 : i32
    return %arg0, %c0_i32, %c0_i32_0 : i32, i32, i32
  }
  func.func @transform_5(%arg0: i32) -> (i32, i32, i32, i32) {
    %c0_i32 = arith.constant 0 : i32
    %c0_i32_0 = arith.constant 0 : i32
    %c0_i32_1 = arith.constant 0 : i32
    %c0_i32_2 = arith.constant 0 : i32
    return %arg0, %c0_i32, %c0_i32_0, %c0_i32_1 : i32, i32, i32, i32
  }
  func.func @transform_6(%arg0: i32) -> (i32, i32, i32) {
    %c0_i32 = arith.constant 0 : i32
    %c0_i32_0 = arith.constant 0 : i32
    %c0_i32_1 = arith.constant 0 : i32
    return %arg0, %c0_i32, %c0_i32_0 : i32, i32, i32
  }
  func.func @transform_7(%arg0: i32) -> (i32, i32, i32) {
    %c0_i32 = arith.constant 0 : i32
    %c0_i32_0 = arith.constant 0 : i32
    %c0_i32_1 = arith.constant 0 : i32
    return %arg0, %c0_i32, %c0_i32_0 : i32, i32, i32
  }
  func.func @transform_8(%arg0: i32) -> (i32, i32, i32) {
    %c0_i32 = arith.constant 0 : i32
    %c0_i32_0 = arith.constant 0 : i32
    %c0_i32_1 = arith.constant 0 : i32
    return %arg0, %c0_i32, %c0_i32_0 : i32, i32, i32
  }
  func.func @transform_9(%arg0: i32) -> (i32, i32, i32) {
    %c0_i32 = arith.constant 0 : i32
    %c0_i32_0 = arith.constant 0 : i32
    %c0_i32_1 = arith.constant 0 : i32
    return %arg0, %c0_i32, %c0_i32_0 : i32, i32, i32
  }
  func.func @transform_10(%arg0: i32) -> (i32, i32, i32) {
    %c0_i32 = arith.constant 0 : i32
    %c0_i32_0 = arith.constant 0 : i32
    %c0_i32_1 = arith.constant 0 : i32
    return %arg0, %c0_i32, %c0_i32_0 : i32, i32, i32
  }
  func.func @transform_11(%arg0: i32) -> (i32, i32) {
    %c0_i32 = arith.constant 0 : i32
    %c0_i32_0 = arith.constant 0 : i32
    %c0_i32_1 = arith.constant 0 : i32
    return %c0_i32, %c0_i32_0 : i32, i32
  }
  func.func @transform_12(%arg0: i32) -> (i32, i32) {
    %c0_i32 = arith.constant 0 : i32
    %c0_i32_0 = arith.constant 0 : i32
    %c0_i32_1 = arith.constant 0 : i32
    return %c0_i32, %c0_i32_0 : i32, i32
  }
  func.func @transform_13(%arg0: i32) -> (i32, i32) {
    %c0_i32 = arith.constant 0 : i32
    %c0_i32_0 = arith.constant 0 : i32
    %c0_i32_1 = arith.constant 0 : i32
    return %c0_i32, %c0_i32_0 : i32, i32
  }
}

</mosaic_0001>

<bundles_post_ra>
// kernel: tpu_custom_call.1
= control target key start
LH: loop header
LB: loop body
LE: loop exit
PB: predicated region body
PF: predicated region fallthrough
CT: control target
= control target key end

     0   :  { %s7537_s0 = inlined_call_operand.vmem [shape: f32[16,32], index: 0, kind: input, shape index: {}]   ;;  %s7538_s1 = inlined_call_operand.vmem [shape: bf16[32,32], index: 1, kind: input, shape index: {}]   ;;  %s7539_s2 = inlined_call_operand.vmem [shape: f32[2,8,8], index: 2, kind: input, shape index: {}]   ;;  %s7540_s3 = inlined_call_operand.vmem [shape: f32[2,1,16], index: 3, kind: input, shape index: {}]   ;;  %s7541_s4 = inlined_call_operand.vmem [shape: f32[2,6,32], index: 4, kind: input, shape index: {}]   ;;  %s7542_s5 = inlined_call_operand.vmem [shape: bf16[2,8,32,32], index: 5, kind: input, shape index: {}]   ;;  %s7543_s6 = inlined_call_operand.vmem [shape: f32[2,8,32], index: 6, kind: input, shape index: {}]   ;;  %s7544_s7 = inlined_call_operand.vmem [shape: bf16[2,32,2048], index: 7, kind: input, shape index: {}]   ;;  %s7545_s8 = inlined_call_operand.vmem [shape: f32[2,1,2048], index: 8, kind: input, shape index: {}]   ;;  %s7546_s9 = inlined_call_operand.vmem [shape: bf16[2,2048,32], index: 9, kind: input, shape index: {}]   ;;  %s7547_s10 = inlined_call_operand.vmem [shape: f32[2,1,32], index: 10, kind: input, shape index: {}]   ;;  %s7548_s11 = inlined_call_operand.vmem [shape: f32[1,32], index: 11, kind: input, shape index: {}]   ;;  %s7549_s12 = inlined_call_operand.vmem [shape: f32[1,32], index: 12, kind: input, shape index: {}]   ;;  %s7550_s13 = inlined_call_operand.hbm [shape: f32[2,256], index: 13, kind: output, shape index: {}]  }
   0x1   :  { %7552 = sst [smem:[#allocation7_spill]] %s7541_s4 }
   0x2   :  { %7553 = sst [smem:[#allocation8_spill]] %s7542_s5 }
   0x3   :  { %7554 = sst [smem:[#allocation9_spill]] %s7550_s13 }
   0x4   :  { %18 = vsyncpa [#allocation4], 0  ;;  %s6641_s25 = smov 0  }
   0x5 LB: > { %7555 = sst [smem:[#allocation6_spill]] %s6556_s25  ;;  %s6647_s26 = sadd.s32 4294967295, %s6556_s25   ;;  %s6556_s25 = sphi %s6641_s25, %s24_s25  }
   0x6   : > { %p5400_p0 = scmp.ge.s32.totalorder %s6556_s25, 1  ;;  %p438_p1 = scmp.lt.s32.totalorder %s6556_s25, 3 }
   0x8   : > { %p439_p2 = pnand %p5400_p0, %p438_p1 }
   0x9   : > { %p502_p3 = scmp.lt.s32.totalorder (!%p439_p2), %s6647_s26, 1  ;;  %s7556_s4 = sld [smem:[#allocation7_spill]] (!%p439_p2) }
   0xa   : > { %442 = sbr.rel (%p439_p2) target bundleno = 7592 (0x1da8), region = 72  ;;  %s7557_s5 = sld [smem:[#allocation8_spill]] (!%p439_p2) }
   0xb   : > { %p5410_p4 = scmp.ne.s32.totalorder (!%p439_p2), %s6647_s26, 0 }
   0xf   : > { %s6653_s27 = scalar_select %p502_p3, %s6647_s26, 1 }
  0x11   : > { %s5401_s28 = sshll.u32 %s6653_s27, 3  ;;  %s5686_s29 = sshll.u32 %s6653_s27, 7 }
  0x12   : > { %s6660_s15 = scalar_lea.vmem %s7556_s4, %s5401_s28  ;;  %s6665_s18 = scalar_lea.vmem %s7557_s5, %s5686_s29 }
  0x13   : > { %s6670_s21 = scalar_lea.vmem %s7543_s6, %s5401_s28  ;;  %s5687_s22 = sshll.u32 %s6653_s27, 8 }
  0x14   : > { %s6676_s25 = scalar_lea.vmem %s7544_s7, %s5687_s22  ;;  %s5407_s13 = sshll.u32 %s6653_s27, 4 }
  0x15   : > { %s6682_s4 = scalar_lea.vmem %s7545_s8, %s5407_s13  ;;  %s5688_s16 = sshll.u32 %s6653_s27, 10 }
  0x16   : > { %s6688_s5 = scalar_lea.vmem %s7546_s9, %s5688_s16  ;;  %s531_s20 = scalar_lea.vmem %s7547_s10, %s6653_s27 }
  0x17   : > { %536 = sbr.rel (%p5410_p4) target bundleno = 30 (0x1e), region = 76 }
  0x1c   : > { %v537_v0 = vld [vmem:[%s7537_s0] sm:$0xff]  ;;  %vm539_vm0 = vcmask 261120   ;;  %v538_v1 = vld [vmem:[%s7537_s0 + $0x8] sm:$0xff] }
  0x1d   : > { %540 = vst.msk [vmem:[#allocation2] sm:$0xff] %vm539_vm0, %v537_v0  ;;  %541 = vst.msk [vmem:[#allocation2 + $0x8] sm:$0xff] %vm539_vm0, %v538_v1 }
  0x1e PF: > { %vm554_vm1 = vcmask 261120   ;;  %v6276_v16 = vld [vmem:[%s6665_s18 + $0x8] sm:$0xff]   ;;  %v6277_v17 = vld [vmem:[%s6665_s18 + $0x18] sm:$0xff]   ;;  %v6558_v18 = vmov 0.0   ;;  %v6278_v19 = vld [vmem:[%s6665_s18] sm:$0xff]   ;;  %vm6559_vm2 = vmmov 0   ;;  %v595_v31 = vlaneseq }
  0x1f   : > { %5963 = vmatprep.subr.bf16.mxu0 %v6558_v18  ;;  %5971 = vmatprep.subr.bf16.mxu1 %v6558_v18  ;;  %v6279_v20 = vld [vmem:[%s6665_s18 + $0x10] sm:$0xff]   ;;  %v6725_v40 = vld [vmem:[%s6660_s15] sm:$0x3f]  ;;  %v6280_v52 = vld [vmem:[%s6665_s18 + $0x28] sm:$0xff]   ;;  %vm821_vm7 = vcmask 64512   ;;  %vm945_vm8 = vcmask 1043456  }
  0x20   : > { %5964 = vmatpush3.bf16.msra.mxu0 %v6276_v16  ;;  %5972 = vmatpush3.bf16.msra.mxu1 %v6277_v17  ;;  %v6719_v37 = vshrl.u32 %v595_v31, 7  ;;  %v6281_v54 = vld [vmem:[%s6665_s18 + $0x20] sm:$0xff]   ;;  %s6560_s17 = smov 120   ;;  %s6561_s28 = smov 112   ;;  %vm1733_vm9 = vcmask 130048   ;;  %vm1736_vm10 = vcmask 195584  }
  0x21   : > { %5965 = vmatprep.subr.bf16.mxu0 %v6558_v18  ;;  %5973 = vmatprep.subr.bf16.mxu1 %v6558_v18  ;;  %v6748_v55 = vld [vmem:[%s6670_s21] sm:$0xff]  ;;  %s6562_s19 = smov 104   ;;  %s6563_s22 = smov 8  }
  0x22   : > { %5967 = vmatprep.mubr.msk.bf16.mxu0 %vm6559_vm2, %v6558_v18  ;;  %5975 = vmatprep.mubr.msk.bf16.mxu1 %vm6559_vm2, %v6558_v18  ;;  %v6722_v39 = vsub.s32 0, %v6719_v37  ;;  %v6730_v42 = vsub.s32 1, %v6719_v37  ;;  %v6753_v60 = vsub.s32 2, %v6719_v37  ;;  %s6564_s23 = smov 16   ;;  %s6565_s13 = smov 24  }
  0x23   : > { %p5678_p5 = scmp.ne.s32.totalorder %s6647_s26, 1 }
  0x24   : > { %v542_v2 = vld [vmem:[#allocation2] sm:$0xff]  ;;  %v543_v3 = vld [vmem:[#allocation2 + $0x8] sm:$0xff]  ;;  %5966 = vmatpush3.bf16.msra.mxu0 %v6278_v19  ;;  %5974 = vmatpush3.bf16.msra.mxu1 %v6279_v20  ;;  %v598_v41 = vrot.slane %v6725_v40, %v6722_v39  ;;  %v606_v47 = vrot.slane %v6725_v40, %v6730_v42  ;;  %v693_v56 = vrot.slane %v6748_v55, %v6730_v42 }
  0x25   : > { %v555_v4 = vsel %vm554_vm1, %v542_v2, 0.0  ;;  %v558_v5 = vsel %vm554_vm1, %v543_v3, 0.0  ;;  %5979 = vmatprep.subr.bf16.mxu0 %v6558_v18  ;;  %5987 = vmatprep.subr.bf16.mxu1 %v6558_v18  ;;  %v632_v63 = vrot.slane %v6748_v55, %v6722_v39 }
  0x26   : > { %556 = vadd.xlane.f32.xlu0 %v555_v4 }
  0x2a   : > { %559 = vadd.xlane.f32.xlu0 %v558_v5  ;;  %v751_v5 = vrot.slane %v6748_v55, %v6753_v60 }
  0xaf   : > { %v557_v6 = vpop.xlane.xlu0 %556 }
  0xb0   : > { %v562_v7 = vmul.f32 0.03125, %v557_v6 }
  0xb2   : > { %v564_v8 = vsub.f32 %v542_v2, %v562_v7 }
  0xb3   : > { %v560_v9 = vpop.xlane.xlu0 %559 }
  0xb4   : > { %v563_v10 = vmul.f32 0.03125, %v560_v9  ;;  %v566_v11 = vmul.f32 %v564_v8, %v564_v8  ;;  %v599_v44 = vmul.f32 %v598_v41, %v564_v8 }
  0xb6   : > { %v565_v12 = vsub.f32 %v543_v3, %v563_v10  ;;  %v568_v13 = vsel %vm554_vm1, %v566_v11, 0.0 }
  0xb7   : > { %569 = vadd.xlane.f32.xlu1 %v568_v13 }
  0xb8   : > { %v567_v14 = vmul.f32 %v565_v12, %v565_v12  ;;  %v600_v45 = vmul.f32 %v598_v41, %v565_v12 }
  0xba   : > { %v571_v15 = vsel %vm554_vm1, %v567_v14, 0.0 }
  0xbb   : > { %572 = vadd.xlane.f32.xlu1 %v571_v15 }
 0x140   : > { %v570_v21 = vpop.xlane.xlu1 %569 }
 0x141   : > { %v575_v22 = vmul.f32 0.032258064, %v570_v21 }
 0x143   : > { %6422 = vrsqrt.f32 %v575_v22  ;;  %vm579_vm3 = vcmp.eq.f32.partialorder %v575_v22, inf  ;;  %v582_v27 = vand.u32 2147483648, %v575_v22  ;;  %vm581_vm4 = vcmp.eq.f32.partialorder %v575_v22, 0.0 }
 0x144   : > { %v573_v23 = vpop.xlane.xlu1 %572 }
 0x145   : > { %v576_v24 = vmul.f32 0.032258064, %v573_v23 }
 0x147   : > { %6424 = vrsqrt.f32 %v576_v24  ;;  %vm586_vm5 = vcmp.eq.f32.partialorder %v576_v24, inf  ;;  %v589_v34 = vand.u32 2147483648, %v576_v24  ;;  %vm588_vm6 = vcmp.eq.f32.partialorder %v576_v24, 0.0 }
 0x150   : > { %v6423_v25 = vpop.eup %6422 }
 0x151   : > { %v578_v26 = vmul.f32 %v6423_v25, %v575_v22 }
 0x153   : > { %v580_v28 = vsel %vm579_vm3, %v575_v22, %v578_v26  ;;  %v6794_v26 = vld [vmem:[%s7539_s2] sm:$0xff] }
 0x154   : > { %v6425_v29 = vpop.eup %6424  ;;  %v583_v30 = vsel %vm581_vm4, %v582_v27, %v580_v28 }
 0x155   : > { %v591_v32 = vadd.f32 1e-06, %v583_v30  ;;  %v585_v33 = vmul.f32 %v6425_v29, %v576_v24 }
 0x157   : > { %6426 = vrcp.f32 %v591_v32  ;;  %v587_v35 = vsel %vm586_vm5, %v576_v24, %v585_v33  ;;  %v6800_v32 = vld [vmem:[%s7539_s2 + $0x8] sm:$0xff] }
 0x158   : > { %v590_v36 = vsel %vm588_vm6, %v589_v34, %v587_v35 }
 0x159   : > { %v592_v38 = vadd.f32 1e-06, %v590_v36 }
 0x15b   : > { %6428 = vrcp.f32 %v592_v38 }
 0x164   : > { %v6427_v43 = vpop.eup %6426 }
 0x165   : > { %v601_v46 = vmul.f32 %v6427_v43, %v599_v44 }
 0x167   : > { %v607_v50 = vadd.f32 %v606_v47, %v601_v46 }
 0x168   : > { %v6429_v48 = vpop.eup %6428 }
 0x169   : > { %v602_v49 = vmul.f32 %v6429_v48, %v600_v45 }
 0x16b   : > { %v608_v51 = vadd.f32 %v606_v47, %v602_v49 }
 0x16d   : > { %v609_v53 = vpack.c.bf16 %v608_v51, %v607_v50 }
 0x16f   : > { %5968 = vmatmul.mubr.msk.bf16.vlgmr.msra.gmra.mxu0 %vm554_vm1, %v609_v53  ;;  %5976 = vmatmul.mubr.msk.bf16.vlgmr.msra.gmra.mxu1 %vm554_vm1, %v609_v53 }
 0x170   : > { %5980 = vmatpush3.bf16.msra.mxu0 %v6280_v52  ;;  %5983 = vmatprep.mubr.msk.bf16.mxu0 %vm6559_vm2, %v6558_v18 }
 0x171   : > { %5981 = vmatprep.subr.bf16.mxu0 %v6558_v18  ;;  %5989 = vmatprep.mubr.msk.bf16.mxu1 %vm6559_vm2, %v6558_v18 }
 0x174   : > { %5982 = vmatpush3.bf16.msra.mxu0 %v6281_v54 }
 0x175   : > { %5993 = vmatprep.subr.bf16.mxu0 %v6558_v18 }
 0x177   : > { %5984 = vmatmul.mubr.msk.bf16.vlgmr.msra.gmra.mxu0 %vm554_vm1, %v609_v53 }
 0x178   : > { %5995 = vmatprep.mubr.msk.bf16.mxu0 %vm6559_vm2, %v6558_v18 }
 0x22f   : > { %v682_v57 = vpop.f32.mrf.mxu0  ;;  %v740_v58 = vpop.f32.mrf.mxu1 }
 0x230   : > { %v741_v59 = vadd.f32 %v740_v58, %v693_v56  ;;  %v683_v8 = vadd.f32 %v682_v57, %v632_v63 }
 0x231   : > { %v5969_v61 = vpop.f32.mrf.mxu0  ;;  %v5977_v62 = vpop.f32.mrf.mxu1 }
 0x232   : > { %v6757_v0 = vpack.c.bf16 %v741_v59, %v741_v59  ;;  %v6768_v14 = vpack.c.bf16 %v683_v8, %v683_v8 }
 0x233   : > { %v685_v1 = vpop.f32.mrf.mxu0  ;;  %v743_v2 = vpop.f32.mrf.mxu1 }
 0x234   : > { %v744_v3 = vadd.f32 %v743_v2, %v693_v56  ;;  %v826_v4 = vsel %vm821_vm7, %v6757_v0, 0  ;;  %v686_v15 = vadd.f32 %v685_v1, %v632_v63 }
 0x235   : > { %v5970_v6 = vpop.f32.mrf.mxu0  ;;  %v5978_v7 = vpop.f32.mrf.mxu1  ;;  %5988 = vmatpush3.bf16.xpose.msra.mxu1 %v826_v4 }
 0x236   : > { %v6763_v9 = vpack.c.bf16 %v744_v3, %v744_v3  ;;  %5999 = vmatprep.subr.bf16.mxu1 %v6558_v18  ;;  %v6779_v22 = vpack.c.bf16 %v686_v15, %v686_v15 }
 0x237   : > { %v798_v10 = vpop.f32.mrf.mxu0 }
 0x238   : > { %v799_v11 = vadd.f32 %v798_v10, %v751_v5  ;;  %v872_v12 = vsel %vm821_vm7, %v6763_v9, 0 }
 0x239   : > { %v5985_v13 = vpop.f32.mrf.mxu0  ;;  %5994 = vmatpush3.bf16.xpose.msra.mxu0 %v872_v12 }
 0x23a   : > { %v6770_v16 = vpack.c.bf16 %v799_v11, %v799_v11  ;;  %6005 = vmatprep.subr.bf16.mxu0 %v6558_v18 }
 0x23b   : > { %v801_v17 = vpop.f32.mrf.mxu0 }
 0x23c   : > { %v802_v19 = vadd.f32 %v801_v17, %v751_v5  ;;  %5990 = vmatmul.mubr.msk.bf16.vlgmr.msra.gmra.mxu1 %vm821_vm7, %v6768_v14  ;;  %v947_v20 = vsel %vm945_vm8, %v6770_v16, 0 }
 0x23d   : > { %v5986_v21 = vpop.f32.mrf.mxu0  ;;  %6000 = vmatpush3.bf16.msra.mxu1 %v947_v20  ;;  %6001 = vmatprep.mubr.msk.bf16.mxu1 %vm6559_vm2, %v6558_v18 }
 0x23e   : > { %v6781_v23 = vpack.c.bf16 %v802_v19, %v802_v19  ;;  %6011 = vmatprep.subr.bf16.mxu1 %v6558_v18 }
 0x240   : > { %5996 = vmatmul.mubr.msk.bf16.vlgmr.msra.gmra.mxu0 %vm821_vm7, %v6779_v22  ;;  %v993_v24 = vsel %vm945_vm8, %v6781_v23, 0 }
 0x241   : > { %6006 = vmatpush3.bf16.msra.mxu0 %v993_v24  ;;  %6007 = vmatprep.mubr.msk.bf16.mxu0 %vm6559_vm2, %v6558_v18 }
 0x242   : > { %6017 = vmatprep.subr.bf16.mxu0 %v6558_v18 }
 0x2fc   : > { %v862_v25 = vpop.f32.mrf.mxu1 }
 0x2fd   : > { %v914_v27 = vmul.f32 0.35355338, %v862_v25 }
 0x2fe   : > { %v5991_v28 = vpop.f32.mrf.mxu1 }
 0x2ff   : > { %v916_v29 = vadd.f32 %v914_v27, %v6794_v26 }
 0x300   : > { %v865_v30 = vpop.f32.mrf.mxu1  ;;  %v908_v31 = vpop.f32.mrf.mxu0 }
 0x301   : > { %v915_v33 = vmul.f32 0.35355338, %v908_v31  ;;  %v918_v34 = vsel %vm821_vm7, %v916_v29, -inf }
 0x302   : > { %919 = vmax.xlane.f32.xlu0 %v918_v34  ;;  %v5992_v35 = vpop.f32.mrf.mxu1  ;;  %v5997_v36 = vpop.f32.mrf.mxu0 }
 0x303   : > { %v917_v38 = vadd.f32 %v915_v33, %v6800_v32 }
 0x304   : > { %v911_v41 = vpop.f32.mrf.mxu0 }
 0x305   : > { %v921_v43 = vsel %vm821_vm7, %v917_v38, -inf }
 0x306   : > { %922 = vmax.xlane.f32.xlu1 %v921_v43  ;;  %v5998_v44 = vpop.f32.mrf.mxu0 }
 0x317   : > { %1087 = vrot.lane.b32.xlu1 %v6763_v9, %s6560_s17 }
 0x38b   : > { %v920_v45 = vpop.xlane.xlu0 %919 }
 0x38c   : > { %v924_v46 = vsub.f32 %v916_v29, %v920_v45 }
 0x38e   : > { %v926_v47 = vmul.f32 1.442695, %v924_v46 }
 0x38f   : > { %v923_v48 = vpop.xlane.xlu1 %922 }
 0x390   : > { %6430 = vpow2.f32 %v926_v47  ;;  %v925_v49 = vsub.f32 %v917_v38, %v923_v48 }
 0x392   : > { %v928_v50 = vmul.f32 1.442695, %v925_v49 }
 0x393   : > { %v1088_v56 = vpop.permute.xlu1 %1087 }
 0x394   : > { %6432 = vpow2.f32 %v928_v50  ;;  %v1093_v5 = vsel %vm821_vm7, %v1088_v56, 0 }
 0x39d   : > { %v6431_v51 = vpop.eup %6430 }
 0x39e   : > { %v930_v52 = vsel %vm821_vm7, %v6431_v51, 0.0 }
 0x39f   : > { %931 = vadd.xlane.f32.xlu0 %v930_v52 }
 0x3a1   : > { %v6433_v53 = vpop.eup %6432 }
 0x3a2   : > { %v933_v54 = vsel %vm821_vm7, %v6433_v53, 0.0 }
 0x3a3   : > { %934 = vadd.xlane.f32.xlu1 %v933_v54 }
 0x3b4   : > { %1035 = vrot.lane.b32.xlu1 %v6768_v14, %s6560_s17 }
 0x3b5   : > { %1037 = vrot.lane.b32.xlu0 %v6757_v0, %s6560_s17 }
 0x3b8   : > { %1085 = vrot.lane.b32.xlu1 %v6779_v22, %s6560_s17 }
 0x428   : > { %v932_v57 = vpop.xlane.xlu0 %931 }
 0x429   : > { %6434 = vrcp.f32 %v932_v57 }
 0x42c   : > { %v935_v58 = vpop.xlane.xlu1 %934  ;;  %v1038_v62 = vpop.permute.xlu0 %1037 }
 0x42d   : > { %6436 = vrcp.f32 %v935_v58  ;;  %v1043_v2 = vsel %vm821_vm7, %v1038_v62, 0 }
 0x430   : > { %v1036_v6 = vpop.permute.xlu1 %1035 }
 0x434   : > { %v1086_v7 = vpop.permute.xlu1 %1085 }
 0x436   : > { %v6435_v59 = vpop.eup %6434 }
 0x437   : > { %v938_v61 = vmul.f32 %v6435_v59, %v6431_v51 }
 0x439   : > { %v940_v63 = vpack.c.bf16 %v938_v61, %v938_v61 }
 0x43a   : > { %v6437_v1 = vpop.eup %6436 }
 0x43b   : > { %6002 = vmatmul.mubr.msk.bf16.vlgmr.msra.gmra.mxu1 %vm821_vm7, %v940_v63  ;;  %v939_v3 = vmul.f32 %v6437_v1, %v6433_v53 }
 0x43c   : > { %6012 = vmatpush3.bf16.xpose.msra.mxu1 %v1043_v2  ;;  %6013 = vmatprep.mubr.msk.bf16.mxu1 %vm6559_vm2, %v6558_v18 }
 0x43d   : > { %v941_v4 = vpack.c.bf16 %v939_v3, %v939_v3  ;;  %6023 = vmatprep.subr.bf16.mxu1 %v6558_v18 }
 0x43f   : > { %6008 = vmatmul.mubr.msk.bf16.vlgmr.msra.gmra.mxu0 %vm821_vm7, %v941_v4 }
 0x440   : > { %6018 = vmatpush3.bf16.xpose.msra.mxu0 %v1093_v5  ;;  %6019 = vmatprep.mubr.msk.bf16.mxu0 %vm6559_vm2, %v6558_v18 }
 0x441   : > { %6029 = vmatprep.subr.bf16.mxu0 %v6558_v18 }
 0x443   : > { %6014 = vmatmul.mubr.msk.bf16.vlgmr.msra.gmra.mxu1 %vm821_vm7, %v1036_v6 }
 0x444   : > { %6025 = vmatprep.mubr.msk.bf16.mxu1 %vm6559_vm2, %v6558_v18 }
 0x447   : > { %6020 = vmatmul.mubr.msk.bf16.vlgmr.msra.gmra.mxu0 %vm821_vm7, %v1086_v7 }
 0x448   : > { %6031 = vmatprep.mubr.msk.bf16.mxu0 %vm6559_vm2, %v6558_v18 }
 0x4fb   : > { %v6831_v8 = vpop.f32.mrf.mxu1 }
 0x4fd   : > { %v6003_v10 = vpop.f32.mrf.mxu1 }
 0x4ff   : > { %v986_v11 = vpop.f32.mrf.mxu1  ;;  %v6833_v12 = vpop.f32.mrf.mxu0 }
 0x501   : > { %v6004_v13 = vpop.f32.mrf.mxu1  ;;  %v6009_v15 = vpop.f32.mrf.mxu0 }
 0x503   : > { %v1032_v17 = vpop.f32.mrf.mxu0  ;;  %v1079_v19 = vpop.f32.mrf.mxu1 }
 0x504   : > { %v1135_v20 = vmul.f32 0.35355338, %v1079_v19 }
 0x505   : > { %v6010_v21 = vpop.f32.mrf.mxu0  ;;  %v6015_v24 = vpop.f32.mrf.mxu1 }
 0x506   : > { %v1137_v25 = vadd.f32 %v1135_v20, %v6794_v26 }
 0x507   : > { %v1082_v27 = vpop.f32.mrf.mxu1  ;;  %v1129_v28 = vpop.f32.mrf.mxu0 }
 0x508   : > { %v1136_v29 = vmul.f32 0.35355338, %v1129_v28  ;;  %v1139_v30 = vsel %vm821_vm7, %v1137_v25, -inf }
 0x509   : > { %1140 = vmax.xlane.f32.xlu0 %v1139_v30  ;;  %v6016_v31 = vpop.f32.mrf.mxu1  ;;  %v6021_v33 = vpop.f32.mrf.mxu0 }
 0x50a   : > { %v1138_v34 = vadd.f32 %v1136_v29, %v6800_v32 }
 0x50b   : > { %v1132_v35 = vpop.f32.mrf.mxu0 }
 0x50c   : > { %v1142_v36 = vsel %vm821_vm7, %v1138_v34, -inf }
 0x50d   : > { %1143 = vmax.xlane.f32.xlu1 %v1142_v36  ;;  %v6022_v38 = vpop.f32.mrf.mxu0 }
 0x51e   : > { %1211 = vrot.lane.b32.xlu1 %v6781_v23, %s6560_s17 }
 0x522   : > { %1261 = vrot.lane.b32.xlu1 %v6757_v0, %s6561_s28 }
 0x526   : > { %1311 = vrot.lane.b32.xlu1 %v6763_v9, %s6561_s28 }
 0x52a   : > { %1309 = vrot.lane.b32.xlu1 %v6779_v22, %s6561_s28 }
 0x592   : > { %v1141_v41 = vpop.xlane.xlu0 %1140 }
 0x593   : > { %v1145_v43 = vsub.f32 %v1137_v25, %v1141_v41 }
 0x595   : > { %v1147_v44 = vmul.f32 1.442695, %v1145_v43 }
 0x596   : > { %v1144_v45 = vpop.xlane.xlu1 %1143 }
 0x597   : > { %6438 = vpow2.f32 %v1147_v44  ;;  %v1146_v46 = vsub.f32 %v1138_v34, %v1144_v45 }
 0x599   : > { %v1149_v47 = vmul.f32 1.442695, %v1146_v46 }
 0x59a   : > { %v1212_v48 = vpop.permute.xlu1 %1211 }
 0x59b   : > { %6440 = vpow2.f32 %v1149_v47  ;;  %v1217_v49 = vsel %vm945_vm8, %v1212_v48, 0 }
 0x59c   : > { %6030 = vmatpush3.bf16.msra.mxu0 %v1217_v49 }
 0x59d   : > { %6041 = vmatprep.subr.bf16.mxu0 %v6558_v18 }
 0x59e   : > { %v1262_v61 = vpop.permute.xlu1 %1261 }
 0x59f   : > { %v1267_v2 = vsel %vm821_vm7, %v1262_v61, 0 }
 0x5a2   : > { %v1312_v4 = vpop.permute.xlu1 %1311 }
 0x5a3   : > { %v1317_v6 = vsel %vm821_vm7, %v1312_v4, 0 }
 0x5a4   : > { %v6439_v50 = vpop.eup %6438 }
 0x5a5   : > { %v1151_v51 = vsel %vm821_vm7, %v6439_v50, 0.0 }
 0x5a6   : > { %1152 = vadd.xlane.f32.xlu0 %v1151_v51  ;;  %v1310_v10 = vpop.permute.xlu1 %1309 }
 0x5a8   : > { %v6441_v52 = vpop.eup %6440 }
 0x5a9   : > { %v1154_v53 = vsel %vm821_vm7, %v6441_v52, 0.0 }
 0x5aa   : > { %1155 = vadd.xlane.f32.xlu0 %v1154_v53 }
 0x5c0   : > { %1163 = vrot.lane.b32.xlu0 %v6770_v16, %s6560_s17 }
 0x5c4   : > { %1259 = vrot.lane.b32.xlu0 %v6768_v14, %s6561_s28 }
 0x62f   : > { %v1153_v54 = vpop.xlane.xlu0 %1152 }
 0x630   : > { %6442 = vrcp.f32 %v1153_v54 }
 0x633   : > { %v1156_v56 = vpop.xlane.xlu0 %1155 }
 0x634   : > { %6444 = vrcp.f32 %v1156_v56 }
 0x637   : > { %v1164_v57 = vpop.permute.xlu0 %1163 }
 0x638   : > { %v1169_v58 = vsel %vm945_vm8, %v1164_v57, 0 }
 0x639   : > { %6024 = vmatpush3.bf16.msra.mxu1 %v1169_v58 }
 0x63a   : > { %6035 = vmatprep.subr.bf16.mxu1 %v6558_v18 }
 0x63b   : > { %v1260_v7 = vpop.permute.xlu0 %1259 }
 0x63d   : > { %v6443_v59 = vpop.eup %6442 }
 0x63e   : > { %v1159_v62 = vmul.f32 %v6443_v59, %v6439_v50 }
 0x640   : > { %v1161_v63 = vpack.c.bf16 %v1159_v62, %v1159_v62 }
 0x641   : > { %v6445_v1 = vpop.eup %6444 }
 0x642   : > { %6026 = vmatmul.mubr.msk.bf16.vlgmr.msra.gmra.mxu1 %vm821_vm7, %v1161_v63  ;;  %v1160_v3 = vmul.f32 %v6445_v1, %v6441_v52 }
 0x643   : > { %6036 = vmatpush3.bf16.xpose.msra.mxu1 %v1267_v2  ;;  %6037 = vmatprep.mubr.msk.bf16.mxu1 %vm6559_vm2, %v6558_v18 }
 0x644   : > { %v1162_v5 = vpack.c.bf16 %v1160_v3, %v1160_v3  ;;  %6047 = vmatprep.subr.bf16.mxu1 %v6558_v18 }
 0x646   : > { %6032 = vmatmul.mubr.msk.bf16.vlgmr.msra.gmra.mxu0 %vm821_vm7, %v1162_v5 }
 0x647   : > { %6042 = vmatpush3.bf16.xpose.msra.mxu0 %v1317_v6  ;;  %6043 = vmatprep.mubr.msk.bf16.mxu0 %vm6559_vm2, %v6558_v18 }
 0x648   : > { %6053 = vmatprep.subr.bf16.mxu0 %v6558_v18 }
 0x64a   : > { %6038 = vmatmul.mubr.msk.bf16.vlgmr.msra.gmra.mxu1 %vm821_vm7, %v1260_v7 }
 0x64b   : > { %6049 = vmatprep.mubr.msk.bf16.mxu1 %vm6559_vm2, %v6558_v18 }
 0x64e   : > { %6044 = vmatmul.mubr.msk.bf16.vlgmr.msra.gmra.mxu0 %vm821_vm7, %v1310_v10 }
 0x64f   : > { %6055 = vmatprep.mubr.msk.bf16.mxu0 %vm6559_vm2, %v6558_v18 }
 0x702   : > { %v6873_v11 = vpop.f32.mrf.mxu1 }
 0x704   : > { %v6027_v13 = vpop.f32.mrf.mxu1 }
 0x706   : > { %v1208_v15 = vpop.f32.mrf.mxu1  ;;  %v6875_v17 = vpop.f32.mrf.mxu0 }
 0x707   : > { %v6246_v19 = vpack.i.bf16 %v6875_v17, %v6873_v11 }
 0x708   : > { %v6028_v20 = vpop.f32.mrf.mxu1  ;;  %v6033_v21 = vpop.f32.mrf.mxu0 }
 0x70a   : > { %v1256_v24 = vpop.f32.mrf.mxu0  ;;  %v1303_v25 = vpop.f32.mrf.mxu1 }
 0x70b   : > { %v1359_v27 = vmul.f32 0.35355338, %v1303_v25 }
 0x70c   : > { %v6034_v28 = vpop.f32.mrf.mxu0  ;;  %v6039_v29 = vpop.f32.mrf.mxu1 }
 0x70d   : > { %v1361_v30 = vadd.f32 %v1359_v27, %v6794_v26 }
 0x70e   : > { %v1306_v31 = vpop.f32.mrf.mxu1  ;;  %v1353_v33 = vpop.f32.mrf.mxu0 }
 0x70f   : > { %v1360_v34 = vmul.f32 0.35355338, %v1353_v33  ;;  %v1363_v35 = vsel %vm821_vm7, %v1361_v30, -inf }
 0x710   : > { %1364 = vmax.xlane.f32.xlu0 %v1363_v35  ;;  %v6040_v36 = vpop.f32.mrf.mxu1  ;;  %v6045_v38 = vpop.f32.mrf.mxu0 }
 0x711   : > { %v1362_v41 = vadd.f32 %v1360_v34, %v6800_v32 }
 0x712   : > { %v1356_v43 = vpop.f32.mrf.mxu0 }
 0x713   : > { %v1366_v44 = vsel %vm821_vm7, %v1362_v41, -inf }
 0x714   : > { %1367 = vmax.xlane.f32.xlu1 %v1366_v44  ;;  %v6046_v45 = vpop.f32.mrf.mxu0 }
 0x725   : > { %1435 = vrot.lane.b32.xlu1 %v6781_v23, %s6561_s28 }
 0x729   : > { %1485 = vrot.lane.b32.xlu1 %v6757_v0, %s6562_s19 }
 0x72d   : > { %1535 = vrot.lane.b32.xlu1 %v6763_v9, %s6562_s19 }
 0x731   : > { %1533 = vrot.lane.b32.xlu1 %v6779_v22, %s6562_s19 }
 0x799   : > { %v1365_v46 = vpop.xlane.xlu0 %1364 }
 0x79a   : > { %v1369_v47 = vsub.f32 %v1361_v30, %v1365_v46 }
 0x79c   : > { %v1371_v48 = vmul.f32 1.442695, %v1369_v47 }
 0x79d   : > { %v1368_v49 = vpop.xlane.xlu1 %1367 }
 0x79e   : > { %6446 = vpow2.f32 %v1371_v48  ;;  %v1370_v50 = vsub.f32 %v1362_v41, %v1368_v49 }
 0x7a0   : > { %v1373_v51 = vmul.f32 1.442695, %v1370_v50 }
 0x7a1   : > { %v1436_v52 = vpop.permute.xlu1 %1435 }
 0x7a2   : > { %6448 = vpow2.f32 %v1373_v51  ;;  %v1441_v53 = vsel %vm945_vm8, %v1436_v52, 0 }
 0x7a3   : > { %6054 = vmatpush3.bf16.msra.mxu0 %v1441_v53 }
 0x7a4   : > { %6065 = vmatprep.subr.bf16.mxu0 %v6558_v18 }
 0x7a5   : > { %v1486_v62 = vpop.permute.xlu1 %1485 }
 0x7a6   : > { %v1491_v3 = vsel %vm821_vm7, %v1486_v62, 0 }
 0x7a9   : > { %v1536_v4 = vpop.permute.xlu1 %1535 }
 0x7aa   : > { %v1541_v6 = vsel %vm821_vm7, %v1536_v4, 0 }
 0x7ab   : > { %v6447_v0 = vpop.eup %6446 }
 0x7ac   : > { %v1375_v9 = vsel %vm821_vm7, %v6447_v0, 0.0 }
 0x7ad   : > { %1376 = vadd.xlane.f32.xlu0 %v1375_v9  ;;  %v1534_v10 = vpop.permute.xlu1 %1533 }
 0x7af   : > { %v6449_v54 = vpop.eup %6448 }
 0x7b0   : > { %v1378_v22 = vsel %vm821_vm7, %v6449_v54, 0.0 }
 0x7b1   : > { %1379 = vadd.xlane.f32.xlu0 %v1378_v22 }
 0x7c7   : > { %1387 = vrot.lane.b32.xlu0 %v6770_v16, %s6561_s28 }
 0x7cb   : > { %1483 = vrot.lane.b32.xlu0 %v6768_v14, %s6562_s19 }
 0x836   : > { %v1377_v56 = vpop.xlane.xlu0 %1376 }
 0x837   : > { %6450 = vrcp.f32 %v1377_v56 }
 0x83a   : > { %v1380_v57 = vpop.xlane.xlu0 %1379 }
 0x83b   : > { %6452 = vrcp.f32 %v1380_v57 }
 0x83e   : > { %v1388_v58 = vpop.permute.xlu0 %1387 }
 0x83f   : > { %v1393_v59 = vsel %vm945_vm8, %v1388_v58, 0 }
 0x840   : > { %6048 = vmatpush3.bf16.msra.mxu1 %v1393_v59 }
 0x841   : > { %6059 = vmatprep.subr.bf16.mxu1 %v6558_v18 }
 0x842   : > { %v1484_v7 = vpop.permute.xlu0 %1483 }
 0x844   : > { %v6451_v61 = vpop.eup %6450 }
 0x845   : > { %v1383_v63 = vmul.f32 %v6451_v61, %v6447_v0 }
 0x847   : > { %v1385_v1 = vpack.c.bf16 %v1383_v63, %v1383_v63  ;;  %v6282_v63 = vld [vmem:[%s6665_s18 + $0x38] sm:$0xff]  }
 0x848   : > { %v6453_v2 = vpop.eup %6452 }
 0x849   : > { %6050 = vmatmul.mubr.msk.bf16.vlgmr.msra.gmra.mxu1 %vm821_vm7, %v1385_v1  ;;  %v1384_v14 = vmul.f32 %v6453_v2, %v6449_v54  ;;  %v6283_v1 = vld [vmem:[%s6665_s18 + $0x30] sm:$0xff]  }
 0x84a   : > { %6060 = vmatpush3.bf16.xpose.msra.mxu1 %v1491_v3  ;;  %6061 = vmatprep.mubr.msk.bf16.mxu1 %vm6559_vm2, %v6558_v18 }
 0x84b   : > { %v1386_v5 = vpack.c.bf16 %v1384_v14, %v1384_v14  ;;  %6071 = vmatprep.subr.bf16.mxu1 %v6558_v18 }
 0x84d   : > { %6056 = vmatmul.mubr.msk.bf16.vlgmr.msra.gmra.mxu0 %vm821_vm7, %v1386_v5 }
 0x84e   : > { %6066 = vmatpush3.bf16.xpose.msra.mxu0 %v1541_v6  ;;  %6067 = vmatprep.mubr.msk.bf16.mxu0 %vm6559_vm2, %v6558_v18 }
 0x84f   : > { %6077 = vmatprep.subr.bf16.mxu0 %v6558_v18 }
 0x851   : > { %6062 = vmatmul.mubr.msk.bf16.vlgmr.msra.gmra.mxu1 %vm821_vm7, %v1484_v7 }
 0x852   : > { %6073 = vmatprep.mubr.msk.bf16.mxu1 %vm6559_vm2, %v6558_v18 }
 0x855   : > { %6068 = vmatmul.mubr.msk.bf16.vlgmr.msra.gmra.mxu0 %vm821_vm7, %v1534_v10 }
 0x856   : > { %6079 = vmatprep.mubr.msk.bf16.mxu0 %vm6559_vm2, %v6558_v18 }
 0x909   : > { %v1429_v13 = vpop.f32.mrf.mxu1 }
 0x90b   : > { %v6051_v15 = vpop.f32.mrf.mxu1 }
 0x90d   : > { %v1432_v20 = vpop.f32.mrf.mxu1  ;;  %v1477_v21 = vpop.f32.mrf.mxu0 }
 0x90f   : > { %v6052_v24 = vpop.f32.mrf.mxu1  ;;  %v6057_v25 = vpop.f32.mrf.mxu0 }
 0x911   : > { %v1480_v27 = vpop.f32.mrf.mxu0  ;;  %v1527_v28 = vpop.f32.mrf.mxu1 }
 0x912   : > { %v1583_v29 = vmul.f32 0.35355338, %v1527_v28 }
 0x913   : > { %v6058_v30 = vpop.f32.mrf.mxu0  ;;  %v6063_v31 = vpop.f32.mrf.mxu1 }
 0x914   : > { %v1585_v33 = vadd.f32 %v1583_v29, %v6794_v26  ;;  %v6251_v26 = vpack.i.bf16 %v1477_v21, %v1429_v13 }
 0x915   : > { %v1530_v34 = vpop.f32.mrf.mxu1  ;;  %v1577_v35 = vpop.f32.mrf.mxu0 }
 0x916   : > { %v1584_v36 = vmul.f32 0.35355338, %v1577_v35  ;;  %v1587_v38 = vsel %vm821_vm7, %v1585_v33, -inf }
 0x917   : > { %1588 = vmax.xlane.f32.xlu0 %v1587_v38  ;;  %v6064_v41 = vpop.f32.mrf.mxu1  ;;  %v6069_v43 = vpop.f32.mrf.mxu0 }
 0x918   : > { %v1586_v44 = vadd.f32 %v1584_v36, %v6800_v32  ;;  %v6956_v43 = vsub.s32 3, %v6719_v37 }
 0x919   : > { %v1580_v45 = vpop.f32.mrf.mxu0 }
 0x91a   : > { %v1590_v46 = vsel %vm821_vm7, %v1586_v44, -inf }
 0x91b   : > { %1591 = vmax.xlane.f32.xlu1 %v1590_v46  ;;  %v6070_v47 = vpop.f32.mrf.mxu0  ;;  %v6510_v46 = vld [vmem:[#allocation2] sm:$0xff] }
 0x92c   : > { %1659 = vrot.lane.b32.xlu1 %v6781_v23, %s6562_s19 }
 0x930   : > { %6247 = vrot.lane.b32.xlu1 %v6246_v19, %s6563_s22 }
 0x934   : > { %6252 = vrot.lane.b32.xlu1 %v6251_v26, %s6564_s23 }
 0x9a0   : > { %v1589_v48 = vpop.xlane.xlu0 %1588 }
 0x9a1   : > { %v1593_v32 = vsub.f32 %v1585_v33, %v1589_v48 }
 0x9a3   : > { %v1595_v49 = vmul.f32 1.442695, %v1593_v32 }
 0x9a4   : > { %v1592_v50 = vpop.xlane.xlu1 %1591 }
 0x9a5   : > { %6454 = vpow2.f32 %v1595_v49  ;;  %v1594_v51 = vsub.f32 %v1586_v44, %v1592_v50  ;;  %v6511_v50 = vld [vmem:[#allocation2 + $0x8] sm:$0xff] }
 0x9a7   : > { %v1597_v52 = vmul.f32 1.442695, %v1594_v51 }
 0x9a8   : > { %v1660_v53 = vpop.permute.xlu1 %1659 }
 0x9a9   : > { %6456 = vpow2.f32 %v1597_v52  ;;  %v1665_v23 = vsel %vm945_vm8, %v1660_v53, 0 }
 0x9aa   : > { %6078 = vmatpush3.bf16.msra.mxu0 %v1665_v23 }
 0x9ab   : > { %6091 = vmatprep.subr.bf16.mxu0 %v6558_v18 }
 0x9ac   : > { %v6248_v15 = vpop.permute.xlu1 %6247 }
 0x9ad   : > { %v6250_v21 = vunpack.i.h.bf16 %v6248_v15  ;;  %v6249_v24 = vunpack.i.l.bf16 %v6248_v15 }
 0x9af   : > { %v1732_v29 = vsel %vm821_vm7, %v6833_v12, %v6250_v21  ;;  %v1731_v30 = vsel %vm821_vm7, %v6831_v8, %v6249_v24  ;;  %v1743_v12 = vrot.slane %v6748_v55, %v6956_v43 }
 0x9b0   : > { %v6253_v20 = vpop.permute.xlu1 %6252 }
 0x9b1   : > { %v6255_v25 = vunpack.i.h.bf16 %v6253_v20  ;;  %v6254_v27 = vunpack.i.l.bf16 %v6253_v20 }
 0x9b2   : > { %v6455_v11 = vpop.eup %6454 }
 0x9b3   : > { %v1599_v17 = vsel %vm821_vm7, %v6455_v11, 0.0  ;;  %v1734_v34 = vsel %vm1733_vm9, %v1731_v30, %v6254_v27  ;;  %v1735_v35 = vsel %vm1733_vm9, %v1732_v29, %v6255_v25 }
 0x9b4   : > { %1600 = vadd.xlane.f32.xlu0 %v1599_v17 }
 0x9b6   : > { %v6457_v19 = vpop.eup %6456 }
 0x9b7   : > { %v1602_v0 = vsel %vm821_vm7, %v6457_v19, 0.0 }
 0x9b8   : > { %1603 = vadd.xlane.f32.xlu0 %v1602_v0 }
 0x9ce   : > { %1611 = vrot.lane.b32.xlu0 %v6770_v16, %s6562_s19 }
 0xa3d   : > { %v1601_v9 = vpop.xlane.xlu0 %1600 }
 0xa3e   : > { %6458 = vrcp.f32 %v1601_v9 }
 0xa41   : > { %v1604_v54 = vpop.xlane.xlu0 %1603 }
 0xa42   : > { %6460 = vrcp.f32 %v1604_v54 }
 0xa45   : > { %v1612_v22 = vpop.permute.xlu0 %1611 }
 0xa46   : > { %v1617_v56 = vsel %vm945_vm8, %v1612_v22, 0 }
 0xa47   : > { %6072 = vmatpush3.bf16.msra.mxu1 %v1617_v56 }
 0xa48   : > { %6083 = vmatprep.subr.bf16.mxu1 %v6558_v18 }
 0xa4b   : > { %v6459_v57 = vpop.eup %6458 }
 0xa4c   : > { %v1607_v58 = vmul.f32 %v6459_v57, %v6455_v11  ;;  %v6284_v57 = vld [vmem:[%s6665_s18 + $0x58] sm:$0xff]  }
 0xa4e   : > { %v1609_v59 = vpack.c.bf16 %v1607_v58, %v1607_v58  ;;  %v6285_v58 = vld [vmem:[%s6665_s18 + $0x50] sm:$0xff]  }
 0xa4f   : > { %v6461_v61 = vpop.eup %6460 }
 0xa50   : > { %6074 = vmatmul.mubr.msk.bf16.vlgmr.msra.gmra.mxu1 %vm821_vm7, %v1609_v59  ;;  %v1608_v62 = vmul.f32 %v6461_v61, %v6457_v19  ;;  %v6286_v59 = vld [vmem:[%s7538_s1] sm:$0xff]   ;;  %v6287_v61 = vld [vmem:[%s7538_s1 + $0x8] sm:$0xff]  }
 0xa51   : > { %6087 = vmatprep.mubr.msk.bf16.mxu1 %vm6559_vm2, %v6558_v18  ;;  %6084 = vmatpush3.bf16.msra.mxu1 %v6282_v63  ;;  %v6290_v63 = vld [vmem:[%s6665_s18 + $0x68] sm:$0xff]  }
 0xa52   : > { %v1610_v16 = vpack.c.bf16 %v1608_v62, %v1608_v62  ;;  %6085 = vmatprep.subr.bf16.mxu1 %v6558_v18  ;;  %v6288_v62 = vld [vmem:[%s6665_s18 + $0x48] sm:$0xff]  }
 0xa54   : > { %6080 = vmatmul.mubr.msk.bf16.vlgmr.msra.gmra.mxu0 %vm821_vm7, %v1610_v16  ;;  %v6289_v16 = vld [vmem:[%s6665_s18 + $0x40] sm:$0xff]  }
 0xa55   : > { %6095 = vmatprep.mubr.msk.bf16.mxu0 %vm6559_vm2, %v6558_v18  ;;  %6086 = vmatpush3.bf16.msra.mxu1 %v6283_v1 }
 0xa56   : > { %6099 = vmatprep.subr.bf16.mxu1 %v6284_v57  ;;  %6092 = vmatpush3.bf16.msra.mxu0 %v6288_v62 }
 0xa57   : > { %6093 = vmatprep.subr.bf16.mxu0 %v6558_v18 }
 0xa5a   : > { %6094 = vmatpush3.bf16.msra.mxu0 %v6289_v16 }
 0xa5b   : > { %6107 = vmatprep.subr.bf16.mxu0 %v6290_v63 }
 0xb10   : > { %v1653_v2 = vpop.f32.mrf.mxu1 }
 0xb12   : > { %v6075_v3 = vpop.f32.mrf.mxu1 }
 0xb14   : > { %v1656_v14 = vpop.f32.mrf.mxu1  ;;  %v1701_v4 = vpop.f32.mrf.mxu0 }
 0xb15   : > { %v6256_v5 = vpack.i.bf16 %v1701_v4, %v1653_v2 }
 0xb16   : > { %v6076_v6 = vpop.f32.mrf.mxu1  ;;  %v6081_v7 = vpop.f32.mrf.mxu0 }
 0xb17   : > { %6257 = vrot.lane.b32.xlu0 %v6256_v5, %s6565_s13 }
 0xb18   : > { %v1704_v10 = vpop.f32.mrf.mxu0 }
 0xb1a   : > { %v6082_v13 = vpop.f32.mrf.mxu0 }
 0xb89   : > { %v6258_v28 = vpop.permute.xlu0 %6257 }
 0xb8a   : > { %v6260_v31 = vunpack.i.h.bf16 %v6258_v28  ;;  %v6259_v33 = vunpack.i.l.bf16 %v6258_v28  ;;  %v1843_v28 = vrot.slane %v6725_v40, %v6753_v60 }
 0xb8c   : > { %v1738_v36 = vsel %vm1736_vm10, %v1735_v35, %v6260_v31  ;;  %v1737_v38 = vsel %vm1736_vm10, %v1734_v34, %v6259_v33  ;;  %v1851_v34 = vrot.slane %v6725_v40, %v6956_v43  ;;  %v7001_v40 = vsub.s32 5, %v6719_v37 }
 0xb8d   : > { %v1739_v41 = vpack.c.bf16 %v1738_v36, %v1737_v38 }
 0xb8f   : > { %6088 = vmatmul.mubr.msk.bf16.vlgmr.msra.gmra.mxu1 %vm554_vm1, %v1739_v41 }
 0xb90   : > { %6100 = vmatpush3.bf16.msra.mxu1 %v6284_v57  ;;  %6103 = vmatprep.mubr.msk.bf16.mxu1 %vm554_vm1, %v6286_v59  ;;  %v7023_v57 = vsub.s32 6, %v6719_v37 }
 0xb91   : > { %6101 = vmatprep.subr.bf16.mxu1 %v6285_v58 }
 0xb92   : > { %v2022_v16 = vrot.slane %v6748_v55, %v7023_v57 }
 0xb94   : > { %6102 = vmatpush3.bf16.msra.mxu1 %v6285_v58 }
 0xb95   : > { %6115 = vmatprep.subr.bf16.mxu1 %v6558_v18 }
 0xb97   : > { %6104 = vmatmul.mubr.msk.bf16.vlgmr.msra.gmra.mxu1 %vm554_vm1, %v6287_v61 }
 0xb98   : > { %6117 = vmatprep.mubr.msk.bf16.mxu1 %vm6559_vm2, %v6558_v18 }
 0xc4f   : > { %v1793_v8 = vpop.f32.mrf.mxu1 }
 0xc50   : > { %v1794_v44 = vadd.f32 %v1793_v8, %v1743_v12  ;;  %v6291_v8 = vld [vmem:[%s6665_s18 + $0x60] sm:$0xff]  }
 0xc51   : > { %v6089_v45 = vpop.f32.mrf.mxu1 }
 0xc52   : > { %v6960_v47 = vadd.f32 %v6510_v46, %v1794_v44  ;;  %v1939_v44 = vrot.slane %v6748_v55, %v7001_v40 }
 0xc53   : > { %v1796_v26 = vpop.f32.mrf.mxu1 }
 0xc54   : > { %v1797_v48 = vadd.f32 %v1796_v26, %v1743_v12  ;;  %v1802_v32 = vsel %vm554_vm1, %v6960_v47, 0.0 }
 0xc55   : > { %1803 = vadd.xlane.f32.xlu1 %v1802_v32  ;;  %v6090_v49 = vpop.f32.mrf.mxu1 }
 0xc56   : > { %v6964_v51 = vadd.f32 %v6511_v50, %v1797_v48 }
 0xc57   : > { %v6105_v45 = vpop.f32.mrf.mxu1 }
 0xc58   : > { %v1805_v52 = vsel %vm554_vm1, %v6964_v51, 0.0  ;;  %v2011_v26 = vadd.f32 %v6105_v45, %v1939_v44 }
 0xc59   : > { %1806 = vadd.xlane.f32.xlu0 %v1805_v52  ;;  %v2002_v46 = vpop.f32.mrf.mxu1 }
 0xc5a   : > { %v2003_v32 = vadd.f32 %v2002_v46, %v1939_v44 }
 0xc5b   : > { %v6106_v48 = vpop.f32.mrf.mxu1 }
 0xc5c   : > { %v2014_v49 = vadd.f32 %v6106_v48, %v1939_v44 }
 0xc5d   : > { %v2005_v50 = vpop.f32.mrf.mxu1 }
 0xc5e   : > { %v7005_v52 = vpack.c.bf16 %v2014_v49, %v2011_v26 }
 0xcde   : > { %v1804_v53 = vpop.xlane.xlu1 %1803 }
 0xcdf   : > { %v1808_v23 = vmul.f32 0.03125, %v1804_v53  ;;  %v2006_v53 = vadd.f32 %v2005_v50, %v1939_v44 }
 0xce1   : > { %v1810_v11 = vsub.f32 %v6960_v47, %v1808_v23  ;;  %v7007_v23 = vpack.c.bf16 %v2006_v53, %v2003_v32 }
 0xce2   : > { %v1807_v17 = vpop.xlane.xlu0 %1806 }
 0xce3   : > { %v1809_v19 = vmul.f32 0.03125, %v1807_v17  ;;  %v1812_v0 = vmul.f32 %v1810_v11, %v1810_v11  ;;  %v1844_v30 = vmul.f32 %v1843_v28, %v1810_v11  ;;  %v2141_v11 = vsel %vm821_vm7, %v7005_v52, 0 }
 0xce4   : > { %v2095_v17 = vsel %vm821_vm7, %v7007_v23, 0 }
 0xce5   : > { %v1811_v9 = vsub.f32 %v6964_v51, %v1809_v19  ;;  %v1814_v54 = vsel %vm554_vm1, %v1812_v0, 0.0  ;;  %6116 = vmatpush3.bf16.xpose.msra.mxu1 %v2095_v17  ;;  %v7016_v19 = vsub.s32 4, %v6719_v37 }
 0xce6   : > { %1815 = vadd.xlane.f32.xlu0 %v1814_v54  ;;  %6127 = vmatprep.subr.bf16.mxu1 %v6558_v18 }
 0xce7   : > { %v1813_v22 = vmul.f32 %v1811_v9, %v1811_v9  ;;  %v1845_v31 = vmul.f32 %v1843_v28, %v1811_v9  ;;  %v1878_v0 = vrot.slane %v6748_v55, %v7016_v19 }
 0xce9   : > { %v1817_v56 = vsel %vm554_vm1, %v1813_v22, 0.0 }
 0xcea   : > { %1818 = vadd.xlane.f32.xlu0 %v1817_v56 }
 0xd6f   : > { %v1816_v1 = vpop.xlane.xlu0 %1815 }
 0xd70   : > { %v1820_v2 = vmul.f32 0.032258064, %v1816_v1 }
 0xd72   : > { %6462 = vrsqrt.f32 %v1820_v2  ;;  %vm1824_vm11 = vcmp.eq.f32.partialorder %v1820_v2, inf  ;;  %v1827_v6 = vand.u32 2147483648, %v1820_v2  ;;  %vm1826_vm12 = vcmp.eq.f32.partialorder %v1820_v2, 0.0 }
 0xd73   : > { %v1819_v3 = vpop.xlane.xlu0 %1818 }
 0xd74   : > { %v1821_v14 = vmul.f32 0.032258064, %v1819_v3 }
 0xd76   : > { %6464 = vrsqrt.f32 %v1821_v14  ;;  %vm1831_vm13 = vcmp.eq.f32.partialorder %v1821_v14, inf  ;;  %v1834_v21 = vand.u32 2147483648, %v1821_v14  ;;  %vm1833_vm14 = vcmp.eq.f32.partialorder %v1821_v14, 0.0 }
 0xd7f   : > { %v6463_v4 = vpop.eup %6462 }
 0xd80   : > { %v1823_v5 = vmul.f32 %v6463_v4, %v1820_v2 }
 0xd82   : > { %v1825_v7 = vsel %vm1824_vm11, %v1820_v2, %v1823_v5 }
 0xd83   : > { %v6465_v10 = vpop.eup %6464  ;;  %v1828_v13 = vsel %vm1826_vm12, %v1827_v6, %v1825_v7 }
 0xd84   : > { %v1836_v15 = vadd.f32 1e-06, %v1828_v13  ;;  %v1830_v20 = vmul.f32 %v6465_v10, %v1821_v14  ;;  %v7048_v13 = vld [vmem:[%s7540_s3] ss:$0 sm:$0xff] }
 0xd86   : > { %6466 = vrcp.f32 %v1836_v15  ;;  %v1832_v24 = vsel %vm1831_vm13, %v1821_v14, %v1830_v20 }
 0xd87   : > { %v1835_v25 = vsel %vm1833_vm14, %v1834_v21, %v1832_v24 }
 0xd88   : > { %v1837_v27 = vadd.f32 1e-06, %v1835_v25 }
 0xd8a   : > { %6468 = vrcp.f32 %v1837_v27  ;;  %v7054_v27 = vld [vmem:[%s7540_s3 + $0x1] ss:$0 sm:$0xff] }
 0xd93   : > { %v6467_v29 = vpop.eup %6466 }
 0xd94   : > { %v1846_v33 = vmul.f32 %v6467_v29, %v1844_v30 }
 0xd96   : > { %v1852_v38 = vadd.f32 %v1851_v34, %v1846_v33 }
 0xd97   : > { %v6469_v35 = vpop.eup %6468 }
 0xd98   : > { %v1847_v36 = vmul.f32 %v6469_v35, %v1845_v31 }
 0xd9a   : > { %v1853_v41 = vadd.f32 %v1851_v34, %v1847_v36 }
 0xd9c   : > { %v1854_v12 = vpack.c.bf16 %v1853_v41, %v1852_v38 }
 0xd9e   : > { %6096 = vmatmul.mubr.msk.bf16.vlgmr.msra.gmra.mxu0 %vm554_vm1, %v1854_v12 }
 0xd9f   : > { %6108 = vmatpush3.bf16.msra.mxu0 %v6290_v63  ;;  %6111 = vmatprep.mubr.msk.bf16.mxu0 %vm554_vm1, %v6286_v59 }
 0xda0   : > { %6109 = vmatprep.subr.bf16.mxu0 %v6291_v8 }
 0xda3   : > { %6110 = vmatpush3.bf16.msra.mxu0 %v6291_v8 }
 0xda4   : > { %6121 = vmatprep.subr.bf16.mxu0 %v6558_v18 }
 0xda6   : > { %6112 = vmatmul.mubr.msk.bf16.vlgmr.msra.gmra.mxu0 %vm554_vm1, %v6287_v61 }
 0xda7   : > { %6123 = vmatprep.mubr.msk.bf16.mxu0 %vm6559_vm2, %v6558_v18  ;;  %6122 = vmatpush3.bf16.xpose.msra.mxu0 %v2141_v11 }
 0xda8   : > { %6133 = vmatprep.subr.bf16.mxu0 %v6558_v18 }
 0xe5e   : > { %v1928_v9 = vpop.f32.mrf.mxu0 }
 0xe5f   : > { %v1929_v54 = vadd.f32 %v1928_v9, %v1878_v0 }
 0xe60   : > { %v6097_v22 = vpop.f32.mrf.mxu0 }
 0xe61   : > { %v7020_v56 = vpack.c.bf16 %v1929_v54, %v1929_v54 }
 0xe62   : > { %v1931_v58 = vpop.f32.mrf.mxu0 }
 0xe63   : > { %v1932_v59 = vadd.f32 %v1931_v58, %v1878_v0  ;;  %6118 = vmatmul.mubr.msk.bf16.vlgmr.msra.gmra.mxu1 %vm821_vm7, %v7020_v56 }
 0xe64   : > { %v6098_v61 = vpop.f32.mrf.mxu0  ;;  %6129 = vmatprep.mubr.msk.bf16.mxu1 %vm6559_vm2, %v6558_v18 }
 0xe65   : > { %v7029_v62 = vpack.c.bf16 %v1932_v59, %v1932_v59 }
 0xe66   : > { %v6113_v63 = vpop.f32.mrf.mxu0 }
 0xe67   : > { %6124 = vmatmul.mubr.msk.bf16.vlgmr.msra.gmra.mxu0 %vm821_vm7, %v7029_v62  ;;  %v2078_v2 = vadd.f32 %v6113_v63, %v2022_v16 }
 0xe68   : > { %v2069_v1 = vpop.f32.mrf.mxu0  ;;  %6135 = vmatprep.mubr.msk.bf16.mxu0 %vm6559_vm2, %v6558_v18 }
 0xe69   : > { %v2070_v14 = vadd.f32 %v2069_v1, %v2022_v16 }
 0xe6a   : > { %v6114_v3 = vpop.f32.mrf.mxu0 }
 0xe6b   : > { %v2081_v4 = vadd.f32 %v6114_v3, %v2022_v16 }
 0xe6c   : > { %v2072_v5 = vpop.f32.mrf.mxu0 }
 0xe6d   : > { %v7037_v6 = vpack.c.bf16 %v2081_v4, %v2078_v2  ;;  %v2073_v7 = vadd.f32 %v2072_v5, %v2022_v16 }
 0xe6f   : > { %v7039_v10 = vpack.c.bf16 %v2073_v7, %v2070_v14  ;;  %6134 = vmatpush3.bf16.msra.mxu0 %v7037_v6 }
 0xe70   : > { %6145 = vmatprep.subr.bf16.mxu0 %v6558_v18 }
 0xe71   : > { %6128 = vmatpush3.bf16.msra.mxu1 %v7039_v10 }
 0xe72   : > { %6139 = vmatprep.subr.bf16.mxu1 %v6558_v18 }
 0xf23   : > { %v2131_v55 = vpop.f32.mrf.mxu1 }
 0xf24   : > { %v2183_v15 = vmul.f32 0.35355338, %v2131_v55 }
 0xf25   : > { %v6119_v20 = vpop.f32.mrf.mxu1 }
 0xf26   : > { %v2197_v21 = vadd.f32 %v7048_v13, %v2183_v15 }
 0xf27   : > { %v2134_v24 = vpop.f32.mrf.mxu1  ;;  %v2177_v25 = vpop.f32.mrf.mxu0 }
 0xf28   : > { %v2184_v28 = vmul.f32 0.35355338, %v2177_v25  ;;  %v2199_v29 = vsel %vm1733_vm9, %v2197_v21, -inf }
 0xf29   : > { %2200 = vmax.xlane.f32.xlu1 %v2199_v29  ;;  %v6120_v30 = vpop.f32.mrf.mxu1  ;;  %v6125_v31 = vpop.f32.mrf.mxu0 }
 0xf2a   : > { %v2198_v33 = vadd.f32 %v7054_v27, %v2184_v28 }
 0xf2b   : > { %v2180_v34 = vpop.f32.mrf.mxu0 }
 0xf2c   : > { %v2202_v35 = vsel %vm1733_vm9, %v2198_v33, -inf }
 0xf2d   : > { %2203 = vmax.xlane.f32.xlu0 %v2202_v35  ;;  %v6126_v36 = vpop.f32.mrf.mxu0 }
 0xf3a   : > { %2312 = vrot.lane.b32.xlu1 %v7007_v23, %s6560_s17 }
 0xfb2   : > { %v2201_v38 = vpop.xlane.xlu1 %2200 }
 0xfb3   : > { %v2205_v41 = vsub.f32 %v2197_v21, %v2201_v38 }
 0xfb5   : > { %v2207_v12 = vmul.f32 1.442695, %v2205_v41 }
 0xfb6   : > { %v2204_v8 = vpop.xlane.xlu0 %2203  ;;  %v2313_v49 = vpop.permute.xlu1 %2312 }
 0xfb7   : > { %6470 = vpow2.f32 %v2207_v12  ;;  %v2206_v44 = vsub.f32 %v2198_v33, %v2204_v8  ;;  %v2318_v54 = vsel %vm821_vm7, %v2313_v49, 0 }
 0xfb9   : > { %v2209_v45 = vmul.f32 1.442695, %v2206_v44 }
 0xfbb   : > { %6472 = vpow2.f32 %v2209_v45 }
 0xfc4   : > { %v6471_v46 = vpop.eup %6470 }
 0xfc5   : > { %v2211_v26 = vsel %vm1733_vm9, %v6471_v46, 0.0 }
 0xfc6   : > { %2212 = vadd.xlane.f32.xlu1 %v2211_v26 }
 0xfc8   : > { %v6473_v48 = vpop.eup %6472 }
 0xfc9   : > { %v2214_v32 = vsel %vm1733_vm9, %v6473_v48, 0.0 }
 0xfca   : > { %2215 = vadd.xlane.f32.xlu0 %v2214_v32 }
 0xfd7   : > { %2309 = vrot.lane.b32.xlu1 %v7020_v56, %s6560_s17 }
 0xfdb   : > { %2360 = vrot.lane.b32.xlu1 %v7029_v62, %s6560_s17 }
 0xfe0   : > { %2363 = vrot.lane.b32.xlu0 %v7005_v52, %s6560_s17 }
0x104f   : > { %v2213_v50 = vpop.xlane.xlu1 %2212 }
0x1050   : > { %6474 = vrcp.f32 %v2213_v50 }
0x1053   : > { %v2216_v53 = vpop.xlane.xlu0 %2215  ;;  %v2310_v16 = vpop.permute.xlu1 %2309 }
0x1054   : > { %6476 = vrcp.f32 %v2216_v53 }
0x1057   : > { %v2364_v58 = vpop.permute.xlu0 %2363  ;;  %v2361_v63 = vpop.permute.xlu1 %2360 }
0x1058   : > { %v2369_v61 = vsel %vm821_vm7, %v2364_v58, 0 }
0x105d   : > { %v6475_v11 = vpop.eup %6474 }
0x105e   : > { %v2219_v17 = vmul.f32 %v6475_v11, %v6471_v46 }
0x1060   : > { %v2221_v0 = vpack.c.bf16 %v2219_v17, %v2219_v17 }
0x1061   : > { %v6477_v9 = vpop.eup %6476 }
0x1062   : > { %6130 = vmatmul.mubr.msk.bf16.vlgmr.msra.gmra.mxu1 %vm1733_vm9, %v2221_v0  ;;  %v2220_v22 = vmul.f32 %v6477_v9, %v6473_v48 }
0x1063   : > { %6140 = vmatpush3.bf16.xpose.msra.mxu1 %v2318_v54  ;;  %6141 = vmatprep.mubr.msk.bf16.mxu1 %vm6559_vm2, %v6558_v18 }
0x1064   : > { %v2222_v59 = vpack.c.bf16 %v2220_v22, %v2220_v22  ;;  %6151 = vmatprep.subr.bf16.mxu1 %v6558_v18 }
0x1066   : > { %6136 = vmatmul.mubr.msk.bf16.vlgmr.msra.gmra.mxu0 %vm1733_vm9, %v2222_v59 }
0x1067   : > { %6146 = vmatpush3.bf16.xpose.msra.mxu0 %v2369_v61  ;;  %6147 = vmatprep.mubr.msk.bf16.mxu0 %vm6559_vm2, %v6558_v18 }
0x1068   : > { %6157 = vmatprep.subr.bf16.mxu0 %v6558_v18 }
0x106a   : > { %6142 = vmatmul.mubr.msk.bf16.vlgmr.msra.gmra.mxu1 %vm821_vm7, %v2310_v16 }
0x106b   : > { %6153 = vmatprep.mubr.msk.bf16.mxu1 %vm6559_vm2, %v6558_v18 }
0x106e   : > { %6148 = vmatmul.mubr.msk.bf16.vlgmr.msra.gmra.mxu0 %vm821_vm7, %v2361_v63 }
0x106f   : > { %6159 = vmatprep.mubr.msk.bf16.mxu0 %vm6559_vm2, %v6558_v18 }
0x1122   : > { %v7085_v1 = vpop.f32.mrf.mxu1 }
0x1124   : > { %v6131_v2 = vpop.f32.mrf.mxu1 }
0x1126   : > { %v2263_v3 = vpop.f32.mrf.mxu1  ;;  %v7087_v14 = vpop.f32.mrf.mxu0 }
0x1128   : > { %v6132_v4 = vpop.f32.mrf.mxu1  ;;  %v6137_v5 = vpop.f32.mrf.mxu0 }
0x112a   : > { %v2306_v7 = vpop.f32.mrf.mxu0  ;;  %v2354_v55 = vpop.f32.mrf.mxu1 }
0x112b   : > { %v2411_v15 = vmul.f32 0.35355338, %v2354_v55 }
0x112c   : > { %v6138_v20 = vpop.f32.mrf.mxu0  ;;  %v6143_v21 = vpop.f32.mrf.mxu1 }
0x112d   : > { %v2413_v24 = vadd.f32 %v7048_v13, %v2411_v15 }
0x112e   : > { %v2357_v25 = vpop.f32.mrf.mxu1  ;;  %v2405_v28 = vpop.f32.mrf.mxu0 }
0x112f   : > { %v2412_v29 = vmul.f32 0.35355338, %v2405_v28  ;;  %v2415_v30 = vsel %vm1733_vm9, %v2413_v24, -inf }
0x1130   : > { %v6149_v31 = vpop.f32.mrf.mxu0  ;;  %2416 = vmax.xlane.f32.xlu1 %v2415_v30  ;;  %v6144_v33 = vpop.f32.mrf.mxu1 }
0x1131   : > { %v2414_v34 = vadd.f32 %v7054_v27, %v2412_v29 }
0x1132   : > { %v2408_v35 = vpop.f32.mrf.mxu0 }
0x1133   : > { %v2418_v36 = vsel %vm1733_vm9, %v2414_v34, -inf }
0x1134   : > { %2419 = vmax.xlane.f32.xlu0 %v2418_v36  ;;  %v6150_v38 = vpop.f32.mrf.mxu0 }
0x1141   : > { %2440 = vrot.lane.b32.xlu1 %v7039_v10, %s6560_s17 }
0x1145   : > { %2535 = vrot.lane.b32.xlu1 %v7007_v23, %s6561_s28 }
0x1149   : > { %2585 = vrot.lane.b32.xlu1 %v7005_v52, %s6561_s28 }
0x114d   : > { %2533 = vrot.lane.b32.xlu1 %v7020_v56, %s6561_s28 }
0x11b9   : > { %v2417_v41 = vpop.xlane.xlu1 %2416 }
0x11ba   : > { %v2421_v12 = vsub.f32 %v2413_v24, %v2417_v41 }
0x11bc   : > { %v2423_v8 = vmul.f32 1.442695, %v2421_v12 }
0x11bd   : > { %v2420_v44 = vpop.xlane.xlu0 %2419  ;;  %v2441_v45 = vpop.permute.xlu1 %2440 }
0x11be   : > { %6478 = vpow2.f32 %v2423_v8  ;;  %v2422_v46 = vsub.f32 %v2414_v34, %v2420_v44  ;;  %6152 = vmatpush3.bf16.msra.mxu1 %v2441_v45 }
0x11bf   : > { %6163 = vmatprep.subr.bf16.mxu1 %v6558_v18 }
0x11c0   : > { %v2425_v26 = vmul.f32 1.442695, %v2422_v46 }
0x11c1   : > { %v2536_v9 = vpop.permute.xlu1 %2535 }
0x11c2   : > { %6480 = vpow2.f32 %v2425_v26  ;;  %v2541_v59 = vsel %vm821_vm7, %v2536_v9, 0 }
0x11c5   : > { %v2586_v16 = vpop.permute.xlu1 %2585 }
0x11c6   : > { %v2591_v2 = vsel %vm821_vm7, %v2586_v16, 0 }
0x11c9   : > { %v2534_v3 = vpop.permute.xlu1 %2533 }
0x11cb   : > { %v6479_v48 = vpop.eup %6478 }
0x11cc   : > { %v2427_v32 = vsel %vm1733_vm9, %v6479_v48, 0.0 }
0x11cd   : > { %2428 = vadd.xlane.f32.xlu0 %v2427_v32 }
0x11cf   : > { %v6481_v49 = vpop.eup %6480 }
0x11d0   : > { %v2430_v50 = vsel %vm1733_vm9, %v6481_v49, 0.0 }
0x11d1   : > { %2431 = vadd.xlane.f32.xlu0 %v2430_v50 }
0x11e7   : > { %2487 = vrot.lane.b32.xlu0 %v7037_v6, %s6560_s17  ;;  %s6569_s17 = smov (!%p5678_p5), 64  }
0x11eb   : > { %2583 = vrot.lane.b32.xlu0 %v7029_v62, %s6561_s28 }
0x1256   : > { %v2429_v53 = vpop.xlane.xlu0 %2428 }
0x1257   : > { %6482 = vrcp.f32 %v2429_v53 }
0x125a   : > { %v2432_v11 = vpop.xlane.xlu0 %2431 }
0x125b   : > { %6484 = vrcp.f32 %v2432_v11 }
0x125e   : > { %v2488_v17 = vpop.permute.xlu0 %2487 }
0x125f   : > { %6158 = vmatpush3.bf16.msra.mxu0 %v2488_v17 }
0x1260   : > { %6169 = vmatprep.subr.bf16.mxu0 %v6558_v18 }
0x1262   : > { %v2584_v4 = vpop.permute.xlu0 %2583 }
0x1264   : > { %v6483_v0 = vpop.eup %6482 }
0x1265   : > { %v2435_v54 = vmul.f32 %v6483_v0, %v6479_v48 }
0x1267   : > { %v2437_v22 = vpack.c.bf16 %v2435_v54, %v2435_v54 }
0x1268   : > { %v6485_v58 = vpop.eup %6484 }
0x1269   : > { %6154 = vmatmul.mubr.msk.bf16.vlgmr.msra.gmra.mxu1 %vm1733_vm9, %v2437_v22  ;;  %v2436_v61 = vmul.f32 %v6485_v58, %v6481_v49 }
0x126a   : > { %6164 = vmatpush3.bf16.xpose.msra.mxu1 %v2541_v59  ;;  %6165 = vmatprep.mubr.msk.bf16.mxu1 %vm6559_vm2, %v6558_v18 }
0x126b   : > { %v2438_v63 = vpack.c.bf16 %v2436_v61, %v2436_v61  ;;  %6175 = vmatprep.subr.bf16.mxu1 %v6558_v18 }
0x126d   : > { %6160 = vmatmul.mubr.msk.bf16.vlgmr.msra.gmra.mxu0 %vm1733_vm9, %v2438_v63 }
0x126e   : > { %6170 = vmatpush3.bf16.xpose.msra.mxu0 %v2591_v2  ;;  %6171 = vmatprep.mubr.msk.bf16.mxu0 %vm6559_vm2, %v6558_v18 }
0x126f   : > { %6181 = vmatprep.subr.bf16.mxu0 %v6558_v18 }
0x1271   : > { %6166 = vmatmul.mubr.msk.bf16.vlgmr.msra.gmra.mxu1 %vm821_vm7, %v2534_v3 }
0x1272   : > { %6177 = vmatprep.mubr.msk.bf16.mxu1 %vm6559_vm2, %v6558_v18 }
0x1275   : > { %6172 = vmatmul.mubr.msk.bf16.vlgmr.msra.gmra.mxu0 %vm821_vm7, %v2584_v4 }
0x1276   : > { %6183 = vmatprep.mubr.msk.bf16.mxu0 %vm6559_vm2, %v6558_v18 }
0x1329   : > { %v7125_v5 = vpop.f32.mrf.mxu1 }
0x132b   : > { %v6155_v7 = vpop.f32.mrf.mxu1 }
0x132d   : > { %v2483_v55 = vpop.f32.mrf.mxu1  ;;  %v7127_v15 = vpop.f32.mrf.mxu0 }
0x132e   : > { %v6261_v20 = vpack.i.bf16 %v7127_v15, %v7125_v5 }
0x132f   : > { %v6156_v21 = vpop.f32.mrf.mxu1  ;;  %v6161_v24 = vpop.f32.mrf.mxu0 }
0x1331   : > { %v2530_v25 = vpop.f32.mrf.mxu0  ;;  %v2577_v28 = vpop.f32.mrf.mxu1 }
0x1332   : > { %v2633_v29 = vmul.f32 0.35355338, %v2577_v28 }
0x1333   : > { %v6162_v30 = vpop.f32.mrf.mxu0  ;;  %v6167_v31 = vpop.f32.mrf.mxu1 }
0x1334   : > { %v2635_v33 = vadd.f32 %v7048_v13, %v2633_v29 }
0x1335   : > { %v2580_v34 = vpop.f32.mrf.mxu1  ;;  %v2627_v35 = vpop.f32.mrf.mxu0 }
0x1336   : > { %v2634_v36 = vmul.f32 0.35355338, %v2627_v35  ;;  %v2637_v38 = vsel %vm1733_vm9, %v2635_v33, -inf }
0x1337   : > { %v6173_v41 = vpop.f32.mrf.mxu0  ;;  %2638 = vmax.xlane.f32.xlu1 %v2637_v38  ;;  %v6168_v12 = vpop.f32.mrf.mxu1 }
0x1338   : > { %v2636_v8 = vadd.f32 %v7054_v27, %v2634_v36 }
0x1339   : > { %v2630_v44 = vpop.f32.mrf.mxu0 }
0x133a   : > { %v2640_v45 = vsel %vm1733_vm9, %v2636_v8, -inf }
0x133b   : > { %2641 = vmax.xlane.f32.xlu0 %v2640_v45  ;;  %v6174_v46 = vpop.f32.mrf.mxu0 }
0x1348   : > { %2661 = vrot.lane.b32.xlu1 %v7039_v10, %s6561_s28 }
0x134c   : > { %2755 = vrot.lane.b32.xlu1 %v7007_v23, %s6562_s19 }
0x1350   : > { %2805 = vrot.lane.b32.xlu1 %v7005_v52, %s6562_s19 }
0x1354   : > { %2753 = vrot.lane.b32.xlu1 %v7020_v56, %s6562_s19 }
0x13c0   : > { %v2639_v26 = vpop.xlane.xlu1 %2638 }
0x13c1   : > { %v2643_v48 = vsub.f32 %v2635_v33, %v2639_v26 }
0x13c3   : > { %v2645_v32 = vmul.f32 1.442695, %v2643_v48 }
0x13c4   : > { %v2642_v49 = vpop.xlane.xlu0 %2641  ;;  %v2662_v50 = vpop.permute.xlu1 %2661 }
0x13c5   : > { %6486 = vpow2.f32 %v2645_v32  ;;  %v2644_v53 = vsub.f32 %v2636_v8, %v2642_v49  ;;  %6176 = vmatpush3.bf16.msra.mxu1 %v2662_v50 }
0x13c6   : > { %6187 = vmatprep.subr.bf16.mxu1 %v6558_v18 }
0x13c7   : > { %v2647_v11 = vmul.f32 1.442695, %v2644_v53 }
0x13c8   : > { %v2756_v58 = vpop.permute.xlu1 %2755 }
0x13c9   : > { %6488 = vpow2.f32 %v2647_v11  ;;  %v2761_v63 = vsel %vm821_vm7, %v2756_v58, 0 }
0x13cc   : > { %v2806_v3 = vpop.permute.xlu1 %2805 }
0x13cd   : > { %v2811_v4 = vsel %vm821_vm7, %v2806_v3, 0 }
0x13d0   : > { %v2754_v7 = vpop.permute.xlu1 %2753 }
0x13d2   : > { %v6487_v17 = vpop.eup %6486 }
0x13d3   : > { %v2649_v23 = vsel %vm1733_vm9, %v6487_v17, 0.0 }
0x13d4   : > { %2650 = vadd.xlane.f32.xlu0 %v2649_v23 }
0x13d6   : > { %v6489_v52 = vpop.eup %6488 }
0x13d7   : > { %v2652_v0 = vsel %vm1733_vm9, %v6489_v52, 0.0 }
0x13d8   : > { %2653 = vadd.xlane.f32.xlu0 %v2652_v0 }
0x13ee   : > { %2707 = vrot.lane.b32.xlu0 %v7037_v6, %s6561_s28 }
0x13f2   : > { %2803 = vrot.lane.b32.xlu0 %v7029_v62, %s6562_s19 }
0x145d   : > { %v2651_v56 = vpop.xlane.xlu0 %2650 }
0x145e   : > { %6490 = vrcp.f32 %v2651_v56 }
0x1461   : > { %v2654_v9 = vpop.xlane.xlu0 %2653 }
0x1462   : > { %6492 = vrcp.f32 %v2654_v9 }
0x1465   : > { %v2708_v54 = vpop.permute.xlu0 %2707 }
0x1466   : > { %6182 = vmatpush3.bf16.msra.mxu0 %v2708_v54 }
0x1467   : > { %6193 = vmatprep.subr.bf16.mxu0 %v6558_v18 }
0x1469   : > { %v2804_v55 = vpop.permute.xlu0 %2803 }
0x146b   : > { %v6491_v22 = vpop.eup %6490 }
0x146c   : > { %v2657_v59 = vmul.f32 %v6491_v22, %v6487_v17 }
0x146e   : > { %v2659_v61 = vpack.c.bf16 %v2657_v59, %v2657_v59 }
0x146f   : > { %v6493_v16 = vpop.eup %6492 }
0x1470   : > { %6178 = vmatmul.mubr.msk.bf16.vlgmr.msra.gmra.mxu1 %vm1733_vm9, %v2659_v61  ;;  %v2658_v2 = vmul.f32 %v6493_v16, %v6489_v52 }
0x1471   : > { %6188 = vmatpush3.bf16.xpose.msra.mxu1 %v2761_v63  ;;  %6189 = vmatprep.mubr.msk.bf16.mxu1 %vm6559_vm2, %v6558_v18  ;;  %v6293_v63 = vld [vmem:[%s6665_s18 + $0x70] sm:$0xff]  }
0x1472   : > { %v2660_v62 = vpack.c.bf16 %v2658_v2, %v2658_v2  ;;  %6199 = vmatprep.subr.bf16.mxu1 %v6558_v18 }
0x1474   : > { %6184 = vmatmul.mubr.msk.bf16.vlgmr.msra.gmra.mxu0 %vm1733_vm9, %v2660_v62 }
0x1475   : > { %6194 = vmatpush3.bf16.xpose.msra.mxu0 %v2811_v4  ;;  %6195 = vmatprep.mubr.msk.bf16.mxu0 %vm6559_vm2, %v6558_v18 }
0x1476   : > { %6205 = vmatprep.subr.bf16.mxu0 %v6558_v18 }
0x1478   : > { %6190 = vmatmul.mubr.msk.bf16.vlgmr.msra.gmra.mxu1 %vm821_vm7, %v2754_v7 }
0x1479   : > { %6201 = vmatprep.mubr.msk.bf16.mxu1 %vm6559_vm2, %v6558_v18 }
0x147c   : > { %6196 = vmatmul.mubr.msk.bf16.vlgmr.msra.gmra.mxu0 %vm821_vm7, %v2804_v55 }
0x147d   : > { %6207 = vmatprep.mubr.msk.bf16.mxu0 %vm6559_vm2, %v6558_v18 }
0x1530   : > { %v2701_v21 = vpop.f32.mrf.mxu1 }
0x1532   : > { %v6179_v24 = vpop.f32.mrf.mxu1 }
0x1534   : > { %v2704_v25 = vpop.f32.mrf.mxu1  ;;  %v2747_v28 = vpop.f32.mrf.mxu0 }
0x1536   : > { %v6180_v29 = vpop.f32.mrf.mxu1  ;;  %v6185_v30 = vpop.f32.mrf.mxu0 }
0x1538   : > { %v2750_v31 = vpop.f32.mrf.mxu0  ;;  %v2797_v33 = vpop.f32.mrf.mxu1 }
0x1539   : > { %v2853_v34 = vmul.f32 0.35355338, %v2797_v33 }
0x153a   : > { %v6186_v35 = vpop.f32.mrf.mxu0  ;;  %v6191_v36 = vpop.f32.mrf.mxu1 }
0x153b   : > { %v2855_v38 = vadd.f32 %v7048_v13, %v2853_v34  ;;  %v6266_v13 = vpack.i.bf16 %v2747_v28, %v2701_v21 }
0x153c   : > { %v2800_v41 = vpop.f32.mrf.mxu1  ;;  %v2847_v12 = vpop.f32.mrf.mxu0 }
0x153d   : > { %v2854_v8 = vmul.f32 0.35355338, %v2847_v12  ;;  %v2857_v44 = vsel %vm1733_vm9, %v2855_v38, -inf }
0x153e   : > { %v6197_v45 = vpop.f32.mrf.mxu0  ;;  %2858 = vmax.xlane.f32.xlu1 %v2857_v44  ;;  %v6192_v46 = vpop.f32.mrf.mxu1 }
0x153f   : > { %v2856_v26 = vadd.f32 %v7054_v27, %v2854_v8 }
0x1540   : > { %v2850_v48 = vpop.f32.mrf.mxu0 }
0x1541   : > { %v2860_v32 = vsel %vm1733_vm9, %v2856_v26, -inf }
0x1542   : > { %2861 = vmax.xlane.f32.xlu0 %v2860_v32  ;;  %v6198_v49 = vpop.f32.mrf.mxu0 }
0x154f   : > { %2881 = vrot.lane.b32.xlu1 %v7039_v10, %s6562_s19 }
0x1553   : > { %6262 = vrot.lane.b32.xlu1 %v6261_v20, %s6563_s22 }
0x1557   : > { %6267 = vrot.lane.b32.xlu1 %v6266_v13, %s6564_s23 }
0x15c7   : > { %v2859_v50 = vpop.xlane.xlu1 %2858 }
0x15c8   : > { %v2863_v53 = vsub.f32 %v2855_v38, %v2859_v50 }
0x15ca   : > { %v2865_v11 = vmul.f32 1.442695, %v2863_v53 }
0x15cb   : > { %v2862_v27 = vpop.xlane.xlu0 %2861  ;;  %v2882_v17 = vpop.permute.xlu1 %2881 }
0x15cc   : > { %6494 = vpow2.f32 %v2865_v11  ;;  %v2864_v23 = vsub.f32 %v2856_v26, %v2862_v27  ;;  %6200 = vmatpush3.bf16.msra.mxu1 %v2882_v17  ;;  %v7201_v26 = vsub.s32 7, %v6719_v37 }
0x15cd   : > { %6211 = vmatprep.subr.bf16.mxu1 %v6558_v18 }
0x15ce   : > { %v2867_v52 = vmul.f32 1.442695, %v2864_v23 }
0x15cf   : > { %v6263_v28 = vpop.permute.xlu1 %6262 }
0x15d0   : > { %6496 = vpow2.f32 %v2867_v52  ;;  %v6265_v30 = vunpack.i.h.bf16 %v6263_v28  ;;  %v6264_v31 = vunpack.i.l.bf16 %v6263_v28  ;;  %v3145_v28 = vld [vmem:[%s6676_s25 + $0xd0] sm:$0xff] }
0x15d2   : > { %v2998_v35 = vsel %vm821_vm7, %v7087_v14, %v6265_v30  ;;  %v2997_v36 = vsel %vm821_vm7, %v7085_v1, %v6264_v31  ;;  %v6512_v14 = vld [vmem:[%s6670_s21] sm:$0xff]  ;;  %v3146_v31 = vld [vmem:[%s6676_s25 + $0xd8] sm:$0xff]  ;;  %s6567_s21 = smov (!%p5678_p5), 32  }
0x15d3   : > { %v6268_v29 = vpop.permute.xlu1 %6267  ;;  %v3007_v48 = vrot.slane %v6512_v14, %v7201_v26 }
0x15d4   : > { %v6270_v33 = vunpack.i.h.bf16 %v6268_v29 }
0x15d6   : > { %v3000_v8 = vsel %vm1733_vm9, %v2998_v35, %v6270_v33 }
0x15d9   : > { %v6495_v10 = vpop.eup %6494 }
0x15da   : > { %v2869_v0 = vsel %vm1733_vm9, %v6495_v10, 0.0 }
0x15db   : > { %2870 = vadd.xlane.f32.xlu0 %v2869_v0 }
0x15dd   : > { %v6497_v5 = vpop.eup %6496 }
0x15de   : > { %v2872_v15 = vsel %vm1733_vm9, %v6497_v5, 0.0 }
0x15df   : > { %2873 = vadd.xlane.f32.xlu0 %v2872_v15 }
0x15f5   : > { %2927 = vrot.lane.b32.xlu0 %v7037_v6, %s6562_s19  ;;  %v6292_v6 = vld [vmem:[%s6665_s18 + $0x78] sm:$0xff]  }
0x1664   : > { %v2871_v20 = vpop.xlane.xlu0 %2870 }
0x1665   : > { %6498 = vrcp.f32 %v2871_v20 }
0x1668   : > { %v2874_v56 = vpop.xlane.xlu0 %2873 }
0x1669   : > { %6500 = vrcp.f32 %v2874_v56 }
0x166c   : > { %v2928_v9 = vpop.permute.xlu0 %2927 }
0x166d   : > { %6206 = vmatpush3.bf16.msra.mxu0 %v2928_v9  ;;  %v3135_v9 = vld [vmem:[%s6676_s25 + $0x80] sm:$0xff] }
0x1672   : > { %v6499_v54 = vpop.eup %6498 }
0x1673   : > { %v2877_v22 = vmul.f32 %v6499_v54, %v6495_v10  ;;  %v3143_v54 = vld [vmem:[%s6676_s25 + $0xc0] sm:$0xff] }
0x1675   : > { %v2879_v58 = vpack.c.bf16 %v2877_v22, %v2877_v22  ;;  %v3136_v22 = vld [vmem:[%s6676_s25 + $0x88] sm:$0xff] }
0x1676   : > { %v6501_v59 = vpop.eup %6500 }
0x1677   : > { %6202 = vmatmul.mubr.msk.bf16.vlgmr.msra.gmra.mxu1 %vm1733_vm9, %v2879_v58  ;;  %v2878_v61 = vmul.f32 %v6501_v59, %v6497_v5  ;;  %v5526_v58 = vcombine.high %v3135_v9, %v3143_v54  ;;  %v3144_v59 = vld [vmem:[%s6676_s25 + $0xc8] sm:$0xff] }
0x1678   : > { %6215 = vmatprep.mubr.msk.bf16.mxu1 %vm6559_vm2, %v6558_v18  ;;  %6212 = vmatpush3.bf16.msra.mxu1 %v6292_v6  ;;  %v5528_v6 = vcombine.high %v3136_v22, %v3144_v59 }
0x1679   : > { %v2880_v16 = vpack.c.bf16 %v2878_v61, %v2878_v61  ;;  %6213 = vmatprep.subr.bf16.mxu1 %v6558_v18  ;;  %v6269_v18 = vunpack.i.l.bf16 %v6268_v29  ;;  %v5525_v61 = vcombine.low %v3135_v9, %v3143_v54  ;;  %3410 = vmatprep.subr.bf16.mxu0 %v5526_v58  ;;  %v3138_v29 = vld [vmem:[%s6676_s25 + $0x98] sm:$0xff] }
0x167a   : > { %v3122_v9 = vld [vmem:[%s6676_s25 + $0x18] sm:$0xff] }
0x167b   : > { %6208 = vmatmul.mubr.msk.bf16.vlgmr.msra.gmra.mxu0 %vm1733_vm9, %v2880_v16  ;;  %v2999_v12 = vsel %vm1733_vm9, %v2997_v36, %v6269_v18  ;;  %v5527_v16 = vcombine.low %v3136_v22, %v3144_v59  ;;  %v5531_v18 = vcombine.low %v3138_v29, %v3146_v31  ;;  %v3130_v54 = vld [vmem:[%s6676_s25 + $0x58] sm:$0xff] }
0x167c   : > { %6214 = vmatpush3.bf16.msra.mxu1 %v6293_v63  ;;  %3411 = vmatpush1.bf16.msra.mxu0 %v5525_v61  ;;  %v3119_v63 = vld [vmem:[%s6676_s25] sm:$0xff] }
0x167d   : > { %3453 = vmatprep.subr.bf16.mxu1 %v5528_v6  ;;  %v3147_v6 = vld [vmem:[%s6676_s25 + $0xe0] sm:$0xff] }
0x1737   : > { %v2921_v2 = vpop.f32.mrf.mxu1 }
0x1739   : > { %v6203_v3 = vpop.f32.mrf.mxu1 }
0x173a   : > { %v3120_v3 = vld [vmem:[%s6676_s25 + $0x8] sm:$0xff] }
0x173b   : > { %v2924_v62 = vpop.f32.mrf.mxu1  ;;  %v2967_v4 = vpop.f32.mrf.mxu0 }
0x173c   : > { %v6271_v7 = vpack.i.bf16 %v2967_v4, %v2921_v2  ;;  %v3127_v2 = vld [vmem:[%s6676_s25 + $0x40] sm:$0xff] }
0x173d   : > { %v6204_v55 = vpop.f32.mrf.mxu1  ;;  %v6209_v21 = vpop.f32.mrf.mxu0  ;;  %v5509_v62 = vcombine.low %v3119_v63, %v3127_v2  ;;  %v5510_v4 = vcombine.high %v3119_v63, %v3127_v2  ;;  %v3140_v63 = vld [vmem:[%s6676_s25 + $0xa8] sm:$0xff] }
0x173e   : > { %6272 = vrot.lane.b32.xlu1 %v6271_v7, %s6565_s13  ;;  %v3128_v7 = vld [vmem:[%s6676_s25 + $0x48] sm:$0xff]  ;;  %v6566_v55 = vmov 0  }
0x173f   : > { %v2970_v24 = vpop.f32.mrf.mxu0  ;;  %3430 = vmatprep.mubr.bf16.mxu0 %v6566_v55  ;;  %v5511_v21 = vcombine.low %v3120_v3, %v3128_v7  ;;  %3412 = vmatprep.subr.bf16.mxu0 %v5510_v4 }
0x1740   : > { %v5512_v24 = vcombine.high %v3120_v3, %v3128_v7  ;;  %3413 = vmatpush1.bf16.msra.mxu0 %v5509_v62  ;;  %v5515_v3 = vcombine.low %v3122_v9, %v3130_v54  ;;  %v3123_v7 = vld [vmem:[%s6676_s25 + $0x20] sm:$0xff] }
0x1741   : > { %v6210_v25 = vpop.f32.mrf.mxu0 }
0x1742   : > { %v3137_v25 = vld [vmem:[%s6676_s25 + $0x90] sm:$0xff] }
0x1743   : > { %v5530_v30 = vcombine.high %v3137_v25, %v3145_v28  ;;  %v5529_v33 = vcombine.low %v3137_v25, %v3145_v28  ;;  %v3132_v25 = vld [vmem:[%s6676_s25 + $0x68] sm:$0xff] }
0x1745   : > { %3496 = vmatprep.subr.bf16.mxu0 %v5530_v30 }
0x17b0   : > { %v6273_v34 = vpop.permute.xlu1 %6272 }
0x17b1   : > { %v6275_v38 = vunpack.i.h.bf16 %v6273_v34  ;;  %v6274_v41 = vunpack.i.l.bf16 %v6273_v34  ;;  %v5532_v34 = vcombine.high %v3138_v29, %v3146_v31 }
0x17b3   : > { %v3002_v44 = vsel %vm1736_vm10, %v3000_v8, %v6275_v38  ;;  %v3001_v45 = vsel %vm1736_vm10, %v2999_v12, %v6274_v41 }
0x17b4   : > { %v3003_v46 = vpack.c.bf16 %v3002_v44, %v3001_v45 }
0x17b6   : > { %6216 = vmatmul.mubr.msk.bf16.vlgmr.msra.gmra.mxu1 %vm554_vm1, %v3003_v46 }
0x17b7   : > { %3454 = vmatpush1.bf16.msra.mxu1 %v5527_v16  ;;  %3473 = vmatprep.mubr.bf16.mxu1 %v6566_v55  ;;  %v3139_v16 = vld [vmem:[%s6676_s25 + $0xa0] sm:$0xff] }
0x17b8   : > { %3455 = vmatprep.subr.bf16.mxu1 %v5512_v24  ;;  %v5534_v62 = vcombine.high %v3139_v16, %v3147_v6  ;;  %v3124_v24 = vld [vmem:[%s6676_s25 + $0x28] sm:$0xff]  ;;  %v5533_v28 = vcombine.low %v3139_v16, %v3147_v6  ;;  %v6314_v16 = vld [vmem:[%s6688_s5 + $0x50] sm:$0xff]  }
0x17b9   : > { %v5520_v31 = vcombine.high %v3124_v24, %v3132_v25  ;;  %v6315_v6 = vld [vmem:[%s6688_s5 + $0xd0] sm:$0xff]  }
0x17bb   : > { %3456 = vmatpush1.bf16.msra.mxu1 %v5511_v21  ;;  %v3131_v21 = vld [vmem:[%s6676_s25 + $0x60] sm:$0xff] }
0x17bc   : > { %3539 = vmatprep.subr.bf16.mxu1 %v5532_v34  ;;  %v5518_v30 = vcombine.high %v3123_v7, %v3131_v21  ;;  %v3142_v34 = vld [vmem:[%s6676_s25 + $0xb8] sm:$0xff] }
0x1876   : > { %v3057_v1 = vpop.f32.mrf.mxu1 }
0x1877   : > { %v3058_v32 = vadd.f32 %v3057_v1, %v3007_v48 }
0x1878   : > { %v6217_v49 = vpop.f32.mrf.mxu1 }
0x1879   : > { %v7206_v13 = vadd.f32 %v3058_v32, %v6960_v47 }
0x187a   : > { %v3060_v50 = vpop.f32.mrf.mxu1 }
0x187b   : > { %v3061_v53 = vadd.f32 %v3060_v50, %v3007_v48  ;;  %v3066_v11 = vsel %vm554_vm1, %v7206_v13, 0.0 }
0x187c   : > { %3067 = vadd.xlane.f32.xlu0 %v3066_v11  ;;  %v6218_v27 = vpop.f32.mrf.mxu1  ;;  %v6513_v11 = vld [vmem:[%s6660_s15] sm:$0x3f] }
0x187d   : > { %v7211_v37 = vadd.f32 %v3061_v53, %v6964_v51  ;;  %v3107_v27 = vrot.slane %v6513_v11, %v7016_v19 }
0x187f   : > { %v3069_v17 = vsel %vm554_vm1, %v7211_v37, 0.0 }
0x1880   : > { %3070 = vadd.xlane.f32.xlu1 %v3069_v17 }
0x1905   : > { %v3068_v23 = vpop.xlane.xlu0 %3067 }
0x1906   : > { %v3072_v47 = vmul.f32 0.03125, %v3068_v23 }
0x1908   : > { %v7216_v52 = vsub.f32 %v7206_v13, %v3072_v47  ;;  %v3115_v47 = vrot.slane %v6513_v11, %v7001_v40  ;;  %v6295_v11 = vld [vmem:[%s6688_s5 + $0xf8] sm:$0xff]  }
0x1909   : > { %v3071_v10 = vpop.xlane.xlu1 %3070 }
0x190a   : > { %v3073_v0 = vmul.f32 0.03125, %v3071_v10  ;;  %v3076_v5 = vmul.f32 %v7216_v52, %v7216_v52  ;;  %v3108_v23 = vmul.f32 %v3107_v27, %v7216_v52  ;;  %v5516_v52 = vcombine.high %v3122_v9, %v3130_v54  ;;  %v6307_v9 = vld [vmem:[%s6688_s5 + $0xe0] sm:$0xff]  }
0x190b   : > { %v6308_v54 = vld [vmem:[%s6688_s5 + $0x20] sm:$0xff]  }
0x190c   : > { %v7221_v51 = vsub.f32 %v7211_v37, %v3073_v0  ;;  %v3078_v15 = vsel %vm554_vm1, %v3076_v5, 0.0 }
0x190d   : > { %3079 = vadd.xlane.f32.xlu0 %v3078_v15 }
0x190e   : > { %v3077_v20 = vmul.f32 %v7221_v51, %v7221_v51  ;;  %v3109_v10 = vmul.f32 %v3107_v27, %v7221_v51  ;;  %v3148_v51 = vld [vmem:[%s6676_s25 + $0xe8] sm:$0xff]  ;;  %v6296_v27 = vld [vmem:[%s6688_s5 + $0x38] sm:$0xff]  }
0x190f   : > { %v5536_v4 = vcombine.high %v3140_v63, %v3148_v51  ;;  %v5535_v29 = vcombine.low %v3140_v63, %v3148_v51  ;;  %v6316_v63 = vld [vmem:[%s6688_s5 + $0x10] sm:$0xff]  }
0x1910   : > { %v3081_v56 = vsel %vm554_vm1, %v3077_v20, 0.0  ;;  %v3121_v20 = vld [vmem:[%s6676_s25 + $0x10] sm:$0xff] }
0x1911   : > { %3082 = vadd.xlane.f32.xlu0 %v3081_v56  ;;  %v3129_v56 = vld [vmem:[%s6676_s25 + $0x50] sm:$0xff] }
0x1912   : > { %v5514_v61 = vcombine.high %v3121_v20, %v3129_v56  ;;  %v5513_v2 = vcombine.low %v3121_v20, %v3129_v56  ;;  %v6305_v20 = vld [vmem:[%s6688_s5 + $0xa8] sm:$0xff]   ;;  %v6306_v56 = vld [vmem:[%s6688_s5 + $0x60] sm:$0xff]   ;;  %v6317_v51 = vld [vmem:[%s6688_s5 + $0x90] sm:$0xff]  }
0x1996   : > { %v3080_v35 = vpop.xlane.xlu0 %3079 }
0x1997   : > { %v3084_v36 = vmul.f32 0.032258064, %v3080_v35  ;;  %v3150_v35 = vld [vmem:[%s6676_s25 + $0xf8] sm:$0xff] }
0x1999   : > { %6502 = vrsqrt.f32 %v3084_v36  ;;  %vm3088_vm15 = vcmp.eq.f32.partialorder %v3084_v36, inf  ;;  %v3091_v44 = vand.u32 2147483648, %v3084_v36  ;;  %vm3090_vm0 = vcmp.eq.f32.partialorder %v3084_v36, 0.0 }
0x199a   : > { %v3083_v38 = vpop.xlane.xlu0 %3082 }
0x199b   : > { %v3085_v41 = vmul.f32 0.032258064, %v3083_v38  ;;  %v5519_v38 = vcombine.low %v3124_v24, %v3132_v25  ;;  %v6324_v24 = vld [vmem:[%s6688_s5] sm:$0xff]  }
0x199c   : > { %v6325_v25 = vld [vmem:[%s6688_s5 + $0x80] sm:$0xff]  }
0x199d   : > { %6504 = vrsqrt.f32 %v3085_v41  ;;  %vm3095_vm2 = vcmp.eq.f32.partialorder %v3085_v41, inf  ;;  %v3098_v32 = vand.u32 2147483648, %v3085_v41  ;;  %vm3097_vm3 = vcmp.eq.f32.partialorder %v3085_v41, 0.0 }
0x19a6   : > { %v6503_v12 = vpop.eup %6502 }
0x19a7   : > { %v3087_v8 = vmul.f32 %v6503_v12, %v3084_v36  ;;  %v5540_v12 = vcombine.high %v3142_v34, %v3150_v35 }
0x19a9   : > { %v3089_v45 = vsel %vm3088_vm15, %v3084_v36, %v3087_v8  ;;  %v5517_v36 = vcombine.low %v3123_v7, %v3131_v21  ;;  %v3125_v8 = vld [vmem:[%s6676_s25 + $0x30] sm:$0xff]  ;;  %v6322_v7 = vld [vmem:[%s6688_s5 + $0x40] sm:$0xff]  }
0x19aa   : > { %v6505_v46 = vpop.eup %6504  ;;  %v3092_v14 = vsel %vm3090_vm0, %v3091_v44, %v3089_v45  ;;  %v3133_v44 = vld [vmem:[%s6676_s25 + $0x70] sm:$0xff]  ;;  %v3126_v45 = vld [vmem:[%s6676_s25 + $0x38] sm:$0xff]  ;;  %v6323_v21 = vld [vmem:[%s6688_s5 + $0xc0] sm:$0xff]  }
0x19ab   : > { %v3100_v48 = vadd.f32 1e-06, %v3092_v14  ;;  %v3094_v1 = vmul.f32 %v6505_v46, %v3085_v41  ;;  %v3134_v46 = vld [vmem:[%s6676_s25 + $0x78] sm:$0xff] }
0x19ad   : > { %6506 = vrcp.f32 %v3100_v48  ;;  %v3096_v49 = vsel %vm3095_vm2, %v3085_v41, %v3094_v1  ;;  %v5539_v48 = vcombine.low %v3142_v34, %v3150_v35  ;;  %v5522_v1 = vcombine.high %v3125_v8, %v3133_v44 }
0x19ae   : > { %v3099_v50 = vsel %vm3097_vm3, %v3098_v32, %v3096_v49  ;;  %v5524_v32 = vcombine.high %v3126_v45, %v3134_v46  ;;  %v5521_v49 = vcombine.low %v3125_v8, %v3133_v44 }
0x19af   : > { %v3101_v53 = vadd.f32 1e-06, %v3099_v50  ;;  %v5523_v50 = vcombine.low %v3126_v45, %v3134_v46 }
0x19b1   : > { %6508 = vrcp.f32 %v3101_v53  ;;  %v6294_v53 = vld [vmem:[%s6688_s5 + $0x78] sm:$0xff]  }
0x19ba   : > { %v6507_v17 = vpop.eup %6506 }
0x19bb   : > { %v3110_v0 = vmul.f32 %v6507_v17, %v3108_v23  ;;  %v6297_v17 = vld [vmem:[%s6688_s5 + $0xb8] sm:$0xff]   ;;  %v6298_v23 = vld [vmem:[%s6688_s5 + $0x70] sm:$0xff]  }
0x19bd   : > { %v3116_v22 = vadd.f32 %v3115_v47, %v3110_v0  ;;  %v6302_v0 = vld [vmem:[%s6688_s5 + $0x68] sm:$0xff]  }
0x19be   : > { %v6509_v5 = vpop.eup %6508 }
0x19bf   : > { %v3111_v15 = vmul.f32 %v6509_v5, %v3109_v10  ;;  %v6301_v10 = vld [vmem:[%s6688_s5 + $0xb0] sm:$0xff]   ;;  %v6303_v5 = vld [vmem:[%s6688_s5 + $0xe8] sm:$0xff]  }
0x19c1   : > { %v3117_v58 = vadd.f32 %v3115_v47, %v3111_v15  ;;  %v6299_v47 = vld [vmem:[%s6688_s5 + $0xf0] sm:$0xff]   ;;  %v6304_v15 = vld [vmem:[%s6688_s5 + $0x28] sm:$0xff]  }
0x19c3   : > { %v7250_v59 = vpack.c.bf16 %v3117_v58, %v3116_v22  ;;  %v6309_v22 = vld [vmem:[%s6688_s5 + $0xa0] sm:$0xff]   ;;  %v6310_v58 = vld [vmem:[%s6688_s5 + $0x58] sm:$0xff]  }
0x19c5   : > { %5541 = vmatmul.mubr.msk.bf16.vlgmr.msra.gmra.mxu0 %vm554_vm1, %v7250_v59  ;;  %5542 = vmatmul.mubr.msk.bf16.vlgmr.msra.gmra.mxu1 %vm554_vm1, %v7250_v59 }
0x19c6   : > { %3497 = vmatpush1.bf16.msra.mxu0 %v5529_v33  ;;  %3540 = vmatpush1.bf16.msra.mxu1 %v5531_v18  ;;  %v3141_v33 = vld [vmem:[%s6676_s25 + $0xb0] sm:$0xff] }
0x19c7   : > { %3498 = vmatprep.subr.bf16.mxu0 %v5514_v61  ;;  %3541 = vmatprep.subr.bf16.mxu1 %v5516_v52  ;;  %v3149_v18 = vld [vmem:[%s6676_s25 + $0xf0] sm:$0xff]  ;;  %v6312_v61 = vld [vmem:[%s6688_s5 + $0x18] sm:$0xff]  }
0x19c8   : > { %3516 = vmatprep.mubr.bf16.mxu0 %v6566_v55  ;;  %3559 = vmatprep.mubr.bf16.mxu1 %v6566_v55  ;;  %v5538_v41 = vcombine.high %v3141_v33, %v3149_v18  ;;  %v5537_v14 = vcombine.low %v3141_v33, %v3149_v18  ;;  %v6313_v52 = vld [vmem:[%s6688_s5 + $0x98] sm:$0xff]  }
0x19ca   : > { %3499 = vmatpush1.bf16.msra.mxu0 %v5513_v2  ;;  %3542 = vmatpush1.bf16.msra.mxu1 %v5515_v3  ;;  %v6318_v2 = vld [vmem:[%s6688_s5 + $0x48] sm:$0xff]  }
0x19cb   : > { %3582 = vmatprep.subr.bf16.mxu0 %v5534_v62  ;;  %3625 = vmatprep.subr.bf16.mxu1 %v5536_v4  ;;  %v6319_v3 = vld [vmem:[%s6688_s5 + $0xc8] sm:$0xff]  }
0x19cc   : > { %v6320_v62 = vld [vmem:[%s6688_s5 + $0x8] sm:$0xff]  }
0x19cd   : > { %5543 = vmatmul.mubr.msk.bf16.vlgmr.msra.gmra.mxu0 %vm554_vm1, %v7250_v59  ;;  %5544 = vmatmul.mubr.msk.bf16.vlgmr.msra.gmra.mxu1 %vm554_vm1, %v7250_v59  ;;  %v6321_v4 = vld [vmem:[%s6688_s5 + $0x88] sm:$0xff]  }
0x19ce   : > { %3583 = vmatpush1.bf16.msra.mxu0 %v5533_v28  ;;  %3626 = vmatpush1.bf16.msra.mxu1 %v5535_v29  ;;  %v6326_v28 = vld [vmem:[%s6688_s5 + $0x178] sm:$0xff]  }
0x19cf   : > { %3584 = vmatprep.subr.bf16.mxu0 %v5518_v30  ;;  %3627 = vmatprep.subr.bf16.mxu1 %v5520_v31  ;;  %v6327_v29 = vld [vmem:[%s6688_s5 + $0x1f8] sm:$0xff]   ;;  %v7325_v30 = vld [vmem:[%s6682_s4] sm:$0xff] }
0x19d0   : > { %3602 = vmatprep.mubr.bf16.mxu0 %v6566_v55  ;;  %3645 = vmatprep.mubr.bf16.mxu1 %v6566_v55  ;;  %v3162_v18 = vrot.slane %v7325_v30, %v6730_v42  ;;  %v3170_v34 = vrot.slane %v7325_v30, %v6956_v43  ;;  %v3158_v35 = vrot.slane %v7325_v30, %v6722_v39 }
0x19d2   : > { %3585 = vmatpush1.bf16.msra.mxu0 %v5517_v36  ;;  %3628 = vmatpush1.bf16.msra.mxu1 %v5519_v38  ;;  %v3166_v36 = vrot.slane %v7325_v30, %v6753_v60 }
0x19d3   : > { %3668 = vmatprep.subr.bf16.mxu0 %v5538_v41  ;;  %3711 = vmatprep.subr.bf16.mxu1 %v5540_v12 }
0x19d5   : > { %5545 = vmatmul.mubr.msk.bf16.vlgmr.msra.gmra.mxu0 %vm554_vm1, %v7250_v59  ;;  %5546 = vmatmul.mubr.msk.bf16.vlgmr.msra.gmra.mxu1 %vm554_vm1, %v7250_v59 }
0x19d6   : > { %3669 = vmatpush1.bf16.msra.mxu0 %v5537_v14  ;;  %3712 = vmatpush1.bf16.msra.mxu1 %v5539_v48 }
0x19d7   : > { %3670 = vmatprep.subr.bf16.mxu0 %v5522_v1  ;;  %3713 = vmatprep.subr.bf16.mxu1 %v5524_v32 }
0x19d8   : > { %3688 = vmatprep.mubr.bf16.mxu0 %v6566_v55  ;;  %3731 = vmatprep.mubr.bf16.mxu1 %v6566_v55  ;;  %v6300_v55 = vld [vmem:[%s6688_s5 + $0x30] sm:$0xff]  }
0x19da   : > { %3671 = vmatpush1.bf16.msra.mxu0 %v5521_v49  ;;  %3714 = vmatpush1.bf16.msra.mxu1 %v5523_v50 }
0x19db   : > { %5787 = vmatprep.subr.bf16.mxu0 %v6294_v53  ;;  %5809 = vmatprep.subr.bf16.mxu1 %v6295_v11 }
0x19dd   : > { %5547 = vmatmul.mubr.msk.bf16.vlgmr.msra.gmra.mxu0 %vm554_vm1, %v7250_v59  ;;  %5548 = vmatmul.mubr.msk.bf16.vlgmr.msra.gmra.mxu1 %vm554_vm1, %v7250_v59  ;;  %v6311_v59 = vld [vmem:[%s6688_s5 + $0xd8] sm:$0xff]  }
0x19de   : > { %5788 = vmatpush3.bf16.msra.mxu0 %v6296_v27  ;;  %5810 = vmatpush3.bf16.msra.mxu1 %v6297_v17 }
0x19df   : > { %5789 = vmatprep.subr.bf16.mxu0 %v6298_v23  ;;  %5811 = vmatprep.subr.bf16.mxu1 %v6299_v47  ;;  %v3178_v47 = vrot.slane %v7325_v30, %v7001_v40 }
0x19e2   : > { %5790 = vmatpush3.bf16.msra.mxu0 %v6300_v55  ;;  %5812 = vmatpush3.bf16.msra.mxu1 %v6301_v10  ;;  %v3186_v55 = vrot.slane %v7325_v30, %v7201_v26 }
0x19e3   : > { %5791 = vmatprep.subr.bf16.mxu0 %v6302_v0  ;;  %5813 = vmatprep.subr.bf16.mxu1 %v6303_v5 }
0x19e6   : > { %5792 = vmatpush3.bf16.msra.mxu0 %v6304_v15  ;;  %5814 = vmatpush3.bf16.msra.mxu1 %v6305_v20 }
0x19e7   : > { %5793 = vmatprep.subr.bf16.mxu0 %v6306_v56  ;;  %5815 = vmatprep.subr.bf16.mxu1 %v6307_v9 }
0x19ea   : > { %5794 = vmatpush3.bf16.msra.mxu0 %v6308_v54  ;;  %5816 = vmatpush3.bf16.msra.mxu1 %v6309_v22 }
0x19eb   : > { %5795 = vmatprep.subr.bf16.mxu0 %v6310_v58  ;;  %5817 = vmatprep.subr.bf16.mxu1 %v6311_v59  ;;  %v6328_v59 = vld [vmem:[%s6688_s5 + $0x138] sm:$0xff]  }
0x19ee   : > { %5796 = vmatpush3.bf16.msra.mxu0 %v6312_v61  ;;  %5818 = vmatpush3.bf16.msra.mxu1 %v6313_v52  ;;  %v6329_v61 = vld [vmem:[%s6688_s5 + $0x1b8] sm:$0xff]  }
0x19ef   : > { %5797 = vmatprep.subr.bf16.mxu0 %v6314_v16  ;;  %5819 = vmatprep.subr.bf16.mxu1 %v6315_v6 }
0x19f2   : > { %5798 = vmatpush3.bf16.msra.mxu0 %v6316_v63  ;;  %5820 = vmatpush3.bf16.msra.mxu1 %v6317_v51  ;;  %v6330_v51 = vld [vmem:[%s6688_s5 + $0x170] sm:$0xff]  }
0x19f3   : > { %5799 = vmatprep.subr.bf16.mxu0 %v6318_v2  ;;  %5821 = vmatprep.subr.bf16.mxu1 %v6319_v3  ;;  %v6331_v2 = vld [vmem:[%s6688_s5 + $0x1f0] sm:$0xff]  }
0x19f6   : > { %5800 = vmatpush3.bf16.msra.mxu0 %v6320_v62  ;;  %5822 = vmatpush3.bf16.msra.mxu1 %v6321_v4 }
0x19f7   : > { %5801 = vmatprep.subr.bf16.mxu0 %v6322_v7  ;;  %5823 = vmatprep.subr.bf16.mxu1 %v6323_v21 }
0x19fa   : > { %5802 = vmatpush3.bf16.msra.mxu0 %v6324_v24  ;;  %5824 = vmatpush3.bf16.msra.mxu1 %v6325_v25  ;;  %v6332_v25 = vld [vmem:[%s6688_s5 + $0x130] sm:$0xff]  }
0x19fb   : > { %5831 = vmatprep.subr.bf16.mxu0 %v6326_v28  ;;  %5853 = vmatprep.subr.bf16.mxu1 %v6327_v29  ;;  %v6333_v28 = vld [vmem:[%s6688_s5 + $0x1b0] sm:$0xff]   ;;  %v6334_v29 = vld [vmem:[%s6688_s5 + $0x168] sm:$0xff]  }
0x1a85   : > { %v3432_v31 = vpop.f32.mrf.mxu0  ;;  %v3475_v33 = vpop.f32.mrf.mxu1 }
0x1a86   : > { %v3433_v48 = vadd.f32 %v3432_v31, %v3158_v35  ;;  %v3476_v1 = vadd.f32 %v3475_v33, %v3166_v36 }
0x1a87   : > { %v3434_v38 = vpop.f32.mrf.mxu0  ;;  %v3477_v41 = vpop.f32.mrf.mxu1 }
0x1a88   : > { %v3435_v44 = vadd.f32 %v3434_v38, %v3162_v18  ;;  %v3478_v45 = vadd.f32 %v3477_v41, %v3170_v34  ;;  %v3742_v20 = vmax.f32 %v3433_v48, 0.0  ;;  %v3744_v56 = vmax.f32 %v3476_v1, 0.0  ;;  %v6336_v41 = vld [vmem:[%s6688_s5 + $0x128] sm:$0xff]   ;;  %v6341_v48 = vld [vmem:[%s6688_s5 + $0x1a0] sm:$0xff]   ;;  %v6342_v1 = vld [vmem:[%s6688_s5 + $0x158] sm:$0xff]  }
0x1a89   : > { %v3436_v12 = vpop.f32.mrf.mxu0  ;;  %v3479_v8 = vpop.f32.mrf.mxu1 }
0x1a8a   : > { %v3437_v46 = vadd.f32 %v3436_v12, %v3158_v35  ;;  %v3480_v14 = vadd.f32 %v3479_v8, %v3166_v36  ;;  %v3743_v10 = vmax.f32 %v3435_v44, 0.0  ;;  %v3745_v0 = vmax.f32 %v3478_v45, 0.0  ;;  %v6335_v35 = vld [vmem:[%s6688_s5 + $0x1e8] sm:$0xff]   ;;  %v6338_v8 = vld [vmem:[%s6688_s5 + $0x160] sm:$0xff]  }
0x1a8b   : > { %v3438_v32 = vpop.f32.mrf.mxu0  ;;  %v3481_v49 = vpop.f32.mrf.mxu1  ;;  %v6337_v12 = vld [vmem:[%s6688_s5 + $0x1a8] sm:$0xff]   ;;  %v6339_v44 = vld [vmem:[%s6688_s5 + $0x1e0] sm:$0xff]  }
0x1a8c   : > { %v3439_v50 = vadd.f32 %v3438_v32, %v3162_v18  ;;  %v3482_v53 = vadd.f32 %v3481_v49, %v3170_v34  ;;  %v3758_v11 = vmax.f32 %v3437_v46, 0.0  ;;  %v3760_v27 = vmax.f32 %v3480_v14, 0.0  ;;  %v6340_v46 = vld [vmem:[%s6688_s5 + $0x120] sm:$0xff]   ;;  %v6343_v32 = vld [vmem:[%s6688_s5 + $0x1d8] sm:$0xff]  }
0x1a8d   : > { %v7335_v17 = vpop.f32.mrf.mxu0  ;;  %v7337_v23 = vpop.f32.mrf.mxu1 }
0x1a8e   : > { %v3759_v5 = vmax.f32 %v3439_v50, 0.0  ;;  %v3761_v15 = vmax.f32 %v3482_v53, 0.0  ;;  %v3774_v52 = vpack.c.bf16 %v3758_v11, %v3742_v20  ;;  %v3776_v16 = vpack.c.bf16 %v3760_v27, %v3744_v56  ;;  %v6344_v50 = vld [vmem:[%s6688_s5 + $0x118] sm:$0xff]   ;;  %v6346_v27 = vld [vmem:[%s6688_s5 + $0x150] sm:$0xff]   ;;  %v6351_v20 = vld [vmem:[%s6688_s5 + $0x1c8] sm:$0xff]  }
0x1a8f   : > { %v3520_v9 = vpop.f32.mrf.mxu0  ;;  %v3563_v54 = vpop.f32.mrf.mxu1  ;;  %v6345_v11 = vld [vmem:[%s6688_s5 + $0x198] sm:$0xff]   ;;  %v3174_v56 = vrot.slane %v7325_v30, %v7016_v19 }
0x1a90   : > { %v3775_v22 = vpack.c.bf16 %v3759_v5, %v3743_v10  ;;  %v3777_v58 = vpack.c.bf16 %v3761_v15, %v3745_v0  ;;  %v3521_v3 = vadd.f32 %v3520_v9, %v3178_v47  ;;  %v3564_v62 = vadd.f32 %v3563_v54, %v3186_v55  ;;  %v6348_v10 = vld [vmem:[%s6688_s5 + $0x110] sm:$0xff]   ;;  %v6350_v15 = vld [vmem:[%s6688_s5 + $0x148] sm:$0xff]  }
0x1a91   : > { %v7345_v6 = vpop.f32.mrf.mxu0  ;;  %v7347_v63 = vpop.f32.mrf.mxu1  ;;  %v6349_v5 = vld [vmem:[%s6688_s5 + $0x190] sm:$0xff]   ;;  %v3182_v9 = vrot.slane %v7325_v30, %v7023_v57  ;;  %v7384_v54 = vld [vmem:[%s6682_s4 + $0x8] sm:$0xff] }
0x1a92   : > { %4846 = vmatprep.mubr.bf16.mxu0 %v3775_v22  ;;  %4887 = vmatprep.mubr.bf16.mxu1 %v3777_v58  ;;  %v3747_v31 = vmax.f32 %v3521_v3, 0.0  ;;  %v3749_v33 = vmax.f32 %v3564_v62, 0.0  ;;  %v6352_v58 = vld [vmem:[%s6688_s5 + $0x108] sm:$0xff]   ;;  %v6355_v3 = vld [vmem:[%s6688_s5 + $0x1c0] sm:$0xff]  }
0x1a93   : > { %v3524_v4 = vpop.f32.mrf.mxu0  ;;  %v3567_v7 = vpop.f32.mrf.mxu1  ;;  %4847 = vmatmul.mubr.bf16.vlgmr.msra.gmra.mxu0 %v3774_v52  ;;  %4888 = vmatmul.mubr.bf16.vlgmr.msra.gmra.mxu1 %v3776_v16  ;;  %v6353_v16 = vld [vmem:[%s6688_s5 + $0x188] sm:$0xff]   ;;  %v3566_v30 = vadd.f32 %v7347_v63, %v3182_v9  ;;  %v6357_v63 = vld [vmem:[%s6688_s5 + $0x180] sm:$0xff]  }
0x1a94   : > { %v3525_v21 = vadd.f32 %v3524_v4, %v3178_v47  ;;  %v3568_v24 = vadd.f32 %v3567_v7, %v3186_v55  ;;  %5832 = vmatpush3.bf16.msra.mxu0 %v6328_v59  ;;  %5854 = vmatpush3.bf16.msra.mxu1 %v6329_v61  ;;  %v6347_v47 = vld [vmem:[%s6688_s5 + $0x1d0] sm:$0xff]   ;;  %v3523_v59 = vadd.f32 %v7345_v6, %v3174_v56  ;;  %v6356_v7 = vld [vmem:[%s6688_s5 + $0x100] sm:$0xff]  }
0x1a95   : > { %5833 = vmatprep.subr.bf16.mxu0 %v6330_v51  ;;  %5855 = vmatprep.subr.bf16.mxu1 %v6331_v2  ;;  %v7359_v45 = vpop.f32.mrf.mxu0  ;;  %v7362_v14 = vpop.f32.mrf.mxu1  ;;  %v3194_v61 = vrot.slane %v7384_v54, %v6730_v42  ;;  %v6354_v51 = vld [vmem:[%s6688_s5 + $0x140] sm:$0xff]   ;;  %v3202_v2 = vrot.slane %v7384_v54, %v6956_v43  ;;  %v3519_v6 = vadd.f32 %v7335_v17, %v3174_v56  ;;  %v3764_v43 = vmax.f32 %v3566_v30, 0.0  ;;  %v6375_v56 = vld [vmem:[%s6688_s5 + $0x2d8] sm:$0xff]  }
0x1a96   : > { %v3763_v18 = vmax.f32 %v3525_v21, 0.0  ;;  %v3765_v34 = vmax.f32 %v3568_v24, 0.0  ;;  %v3562_v42 = vadd.f32 %v7337_v23, %v3182_v9  ;;  %v3762_v21 = vmax.f32 %v3523_v59, 0.0  ;;  %v6377_v59 = vld [vmem:[%s6688_s5 + $0x298] sm:$0xff]  }
0x1a97   : > { %v3606_v49 = vpop.f32.mrf.mxu0  ;;  %v3649_v53 = vpop.f32.mrf.mxu1  ;;  %v3746_v17 = vmax.f32 %v3519_v6, 0.0  ;;  %v6383_v6 = vld [vmem:[%s6688_s5 + $0x2c8] sm:$0xff]  }
0x1a98   : > { %v3779_v36 = vpack.c.bf16 %v3763_v18, %v3747_v31  ;;  %v3781_v38 = vpack.c.bf16 %v3765_v34, %v3749_v33  ;;  %5834 = vmatpush3.bf16.msra.mxu0 %v6332_v25  ;;  %5856 = vmatpush3.bf16.msra.mxu1 %v6333_v28  ;;  %v3607_v24 = vadd.f32 %v3606_v49, %v3194_v61  ;;  %v6358_v25 = vld [vmem:[%s6688_s5 + $0x278] sm:$0xff]   ;;  %v3748_v23 = vmax.f32 %v3562_v42, 0.0  ;;  %v6367_v49 = vld [vmem:[%s6688_s5 + $0x2e8] sm:$0xff]  }
0x1a99   : > { %5835 = vmatprep.subr.bf16.mxu0 %v6334_v29  ;;  %5857 = vmatprep.subr.bf16.mxu1 %v6335_v35  ;;  %v7371_v55 = vpop.f32.mrf.mxu0  ;;  %v7374_v0 = vpop.f32.mrf.mxu1  ;;  %v3650_v28 = vadd.f32 %v3649_v53, %v3202_v2  ;;  %v6359_v29 = vld [vmem:[%s6688_s5 + $0x2f8] sm:$0xff]   ;;  %v3778_v34 = vpack.c.bf16 %v3762_v21, %v3746_v17  ;;  %v6369_v53 = vld [vmem:[%s6688_s5 + $0x2a8] sm:$0xff]   ;;  %v3198_v42 = vrot.slane %v7384_v54, %v6753_v60 }
0x1a9a   : > { %4928 = vmatprep.mubr.bf16.mxu0 %v3779_v36  ;;  %4969 = vmatprep.mubr.bf16.mxu1 %v3781_v38  ;;  %v6360_v18 = vld [vmem:[%s6688_s5 + $0x238] sm:$0xff]   ;;  %v3751_v35 = vmax.f32 %v3607_v24, 0.0  ;;  %v3780_v38 = vpack.c.bf16 %v3764_v43, %v3748_v23  ;;  %v3210_v24 = vrot.slane %v7384_v54, %v7001_v40  ;;  %v6386_v43 = vld [vmem:[%s6688_s5 + $0x240] sm:$0xff]   ;;  %v3218_v60 = vrot.slane %v7384_v54, %v7201_v26 }
0x1a9b   : > { %v3610_v22 = vpop.f32.mrf.mxu0  ;;  %v3653_v52 = vpop.f32.mrf.mxu1  ;;  %v6361_v36 = vld [vmem:[%s6688_s5 + $0x2b8] sm:$0xff]   ;;  %v3648_v40 = vadd.f32 %v7362_v14, %v3198_v42 }
0x1a9c   : > { %5836 = vmatpush3.bf16.msra.mxu0 %v6336_v41  ;;  %5858 = vmatpush3.bf16.msra.mxu1 %v6337_v12  ;;  %v3611_v62 = vadd.f32 %v3610_v22, %v3194_v61  ;;  %v3654_v4 = vadd.f32 %v3653_v52, %v3202_v2  ;;  %v3753_v41 = vmax.f32 %v3650_v28, 0.0  ;;  %v6362_v12 = vld [vmem:[%s6688_s5 + $0x270] sm:$0xff]   ;;  %v6376_v22 = vld [vmem:[%s6688_s5 + $0x218] sm:$0xff]   ;;  %v6387_v28 = vld [vmem:[%s6688_s5 + $0x2c0] sm:$0xff]  }
0x1a9d   : > { %5837 = vmatprep.subr.bf16.mxu0 %v6338_v8  ;;  %5859 = vmatprep.subr.bf16.mxu1 %v6339_v44  ;;  %v6363_v44 = vld [vmem:[%s6688_s5 + $0x2f0] sm:$0xff]   ;;  %v3752_v14 = vmax.f32 %v3648_v40, 0.0 }
0x1a9e   : > { %v3767_v31 = vmax.f32 %v3611_v62, 0.0  ;;  %v3769_v33 = vmax.f32 %v3654_v4, 0.0  ;;  %v6378_v61 = vld [vmem:[%s6688_s5 + $0x250] sm:$0xff]   ;;  %v3190_v62 = vrot.slane %v7384_v54, %v6722_v39  ;;  %v3652_v39 = vadd.f32 %v7374_v0, %v3198_v42  ;;  %v6389_v0 = vld [vmem:[%s6688_s5 + $0x280] sm:$0xff]   ;;  %v6414_v42 = vld [vmem:[%s6688_s5 + $0x348] sm:$0xff]  }
0x1a9f   : > { %v6379_v52 = vld [vmem:[%s6688_s5 + $0x2d0] sm:$0xff]  }
0x1aa0   : > { %5838 = vmatpush3.bf16.msra.mxu0 %v6340_v46  ;;  %5860 = vmatpush3.bf16.msra.mxu1 %v6341_v48  ;;  %v3783_v8 = vpack.c.bf16 %v3767_v31, %v3751_v35  ;;  %v3785_v46 = vpack.c.bf16 %v3769_v33, %v3753_v41  ;;  %v6364_v48 = vld [vmem:[%s6688_s5 + $0x230] sm:$0xff]   ;;  %v3609_v21 = vadd.f32 %v7371_v55, %v3190_v62  ;;  %v6388_v31 = vld [vmem:[%s6688_s5 + $0x200] sm:$0xff]   ;;  %v3768_v26 = vmax.f32 %v3652_v39, 0.0  ;;  %v6391_v35 = vld [vmem:[%s6688_s5 + $0x3f8] sm:$0xff]  }
0x1aa1   : > { %5839 = vmatprep.subr.bf16.mxu0 %v6342_v1  ;;  %5861 = vmatprep.subr.bf16.mxu1 %v6343_v32  ;;  %v6365_v1 = vld [vmem:[%s6688_s5 + $0x2b0] sm:$0xff]   ;;  %v6366_v32 = vld [vmem:[%s6688_s5 + $0x268] sm:$0xff]   ;;  %v3605_v55 = vadd.f32 %v7359_v45, %v3190_v62  ;;  %v6392_v41 = vld [vmem:[%s6688_s5 + $0x338] sm:$0xff]  }
0x1aa2   : > { %v6381_v2 = vld [vmem:[%s6688_s5 + $0x290] sm:$0xff]   ;;  %v3766_v23 = vmax.f32 %v3609_v21, 0.0  ;;  %v3214_v21 = vrot.slane %v7384_v54, %v7023_v57 }
0x1aa3   : > { %v3750_v45 = vmax.f32 %v3605_v55, 0.0  ;;  %v6413_v62 = vld [vmem:[%s6688_s5 + $0x390] sm:$0xff]   ;;  %v6420_v55 = vld [vmem:[%s6688_s5 + $0x300] sm:$0xff]  }
0x1aa4   : > { %5840 = vmatpush3.bf16.msra.mxu0 %v6344_v50  ;;  %5862 = vmatpush3.bf16.msra.mxu1 %v6345_v11  ;;  %v6368_v50 = vld [vmem:[%s6688_s5 + $0x228] sm:$0xff]   ;;  %v6370_v11 = vld [vmem:[%s6688_s5 + $0x260] sm:$0xff]  }
0x1aa5   : > { %5841 = vmatprep.subr.bf16.mxu0 %v6346_v27  ;;  %5863 = vmatprep.subr.bf16.mxu1 %v6347_v47  ;;  %v6371_v27 = vld [vmem:[%s6688_s5 + $0x2e0] sm:$0xff]   ;;  %v7414_v47 = vpop.f32.mrf.mxu0 }
0x1aa7   : > { %v3692_v9 = vpop.f32.mrf.mxu0 }
0x1aa8   : > { %5842 = vmatpush3.bf16.msra.mxu0 %v6348_v10  ;;  %5864 = vmatpush3.bf16.msra.mxu1 %v6349_v5  ;;  %v6372_v10 = vld [vmem:[%s6688_s5 + $0x220] sm:$0xff]   ;;  %v7417_v5 = vpop.f32.mrf.mxu1  ;;  %v3693_v33 = vadd.f32 %v3692_v9, %v3210_v24 }
0x1aa9   : > { %5843 = vmatprep.subr.bf16.mxu0 %v6350_v15  ;;  %5865 = vmatprep.subr.bf16.mxu1 %v6351_v20  ;;  %v6373_v15 = vld [vmem:[%s6688_s5 + $0x2a0] sm:$0xff]   ;;  %v6374_v20 = vld [vmem:[%s6688_s5 + $0x258] sm:$0xff]  }
0x1aaa   : > { %v6403_v9 = vld [vmem:[%s6688_s5 + $0x3e0] sm:$0xff]  }
0x1aac   : > { %5844 = vmatpush3.bf16.msra.mxu0 %v6352_v58  ;;  %5866 = vmatpush3.bf16.msra.mxu1 %v6353_v16  ;;  %v3735_v58 = vpop.f32.mrf.mxu1  ;;  %v7426_v16 = vpop.f32.mrf.mxu0 }
0x1aad   : > { %5845 = vmatprep.subr.bf16.mxu0 %v6354_v51  ;;  %5867 = vmatprep.subr.bf16.mxu1 %v6355_v3  ;;  %v6380_v51 = vld [vmem:[%s6688_s5 + $0x210] sm:$0xff]   ;;  %v6382_v3 = vld [vmem:[%s6688_s5 + $0x248] sm:$0xff]  }
0x1aae   : > { %v7429_v30 = vpop.f32.mrf.mxu1  ;;  %v3696_v4 = vpop.f32.mrf.mxu0 }
0x1aaf   : > { %v3738_v39 = vadd.f32 %v7429_v30, %v3214_v21 }
0x1ab0   : > { %5846 = vmatpush3.bf16.msra.mxu0 %v6356_v7  ;;  %5868 = vmatpush3.bf16.msra.mxu1 %v6357_v63  ;;  %v6384_v7 = vld [vmem:[%s6688_s5 + $0x208] sm:$0xff]   ;;  %v3739_v63 = vpop.f32.mrf.mxu1 }
0x1ab1   : > { %5875 = vmatprep.subr.bf16.mxu0 %v6358_v25  ;;  %5897 = vmatprep.subr.bf16.mxu1 %v6359_v29  ;;  %v6385_v25 = vld [vmem:[%s6688_s5 + $0x288] sm:$0xff]   ;;  %v3697_v29 = vadd.f32 %v3696_v4, %v3210_v24  ;;  %v3740_v17 = vadd.f32 %v3739_v63, %v3218_v60 }
0x1ab2   : > { %v6415_v4 = vld [vmem:[%s6688_s5 + $0x3c8] sm:$0xff]  }
0x1ab3   : > { %4929 = vmatmul.mubr.bf16.vlgmr.msra.gmra.mxu0 %v3778_v34  ;;  %4970 = vmatmul.mubr.bf16.vlgmr.msra.gmra.mxu1 %v3780_v38  ;;  %v3736_v34 = vadd.f32 %v3735_v58, %v3218_v60  ;;  %v3773_v38 = vmax.f32 %v3740_v17, 0.0  ;;  %v6405_v58 = vld [vmem:[%s6688_s5 + $0x3a0] sm:$0xff]   ;;  %v6416_v24 = vld [vmem:[%s6688_s5 + $0x308] sm:$0xff]  }
0x1ab4   : > { %5876 = vmatpush3.bf16.msra.mxu0 %v6360_v18  ;;  %5010 = vmatprep.mubr.bf16.mxu0 %v3783_v8  ;;  %v6390_v18 = vld [vmem:[%s6688_s5 + $0x378] sm:$0xff]   ;;  %v3755_v8 = vmax.f32 %v3693_v33, 0.0  ;;  %v6419_v60 = vld [vmem:[%s6688_s5 + $0x3c0] sm:$0xff]  }
0x1ab5   : > { %5898 = vmatpush3.bf16.msra.mxu1 %v6361_v36  ;;  %5051 = vmatprep.mubr.bf16.mxu1 %v3785_v46  ;;  %v3771_v36 = vmax.f32 %v3697_v29, 0.0  ;;  %v3784_v46 = vpack.c.bf16 %v3768_v26, %v3752_v14  ;;  %v3772_v29 = vmax.f32 %v3738_v39, 0.0 }
0x1ab6   : > { %5877 = vmatprep.subr.bf16.mxu0 %v6362_v12  ;;  %5899 = vmatprep.subr.bf16.mxu1 %v6363_v44  ;;  %v3782_v12 = vpack.c.bf16 %v3766_v23, %v3750_v45  ;;  %v6393_v44 = vld [vmem:[%s6688_s5 + $0x3b8] sm:$0xff]  }
0x1ab8   : > { %5878 = vmatpush3.bf16.msra.mxu0 %v6364_v48  ;;  %v3757_v48 = vmax.f32 %v3736_v34, 0.0 }
0x1ab9   : > { %5900 = vmatpush3.bf16.msra.mxu1 %v6365_v1  ;;  %5879 = vmatprep.subr.bf16.mxu0 %v6366_v32  ;;  %v6394_v1 = vld [vmem:[%s6688_s5 + $0x370] sm:$0xff]   ;;  %v3787_v32 = vpack.c.bf16 %v3771_v36, %v3755_v8 }
0x1aba   : > { %5901 = vmatprep.subr.bf16.mxu1 %v6367_v49  ;;  %v6395_v49 = vld [vmem:[%s6688_s5 + $0x3f0] sm:$0xff]  }
0x1abc   : > { %5880 = vmatpush3.bf16.msra.mxu0 %v6368_v50  ;;  %v3789_v50 = vpack.c.bf16 %v3773_v38, %v3757_v48 }
0x1abd   : > { %5902 = vmatpush3.bf16.msra.mxu1 %v6369_v53  ;;  %5881 = vmatprep.subr.bf16.mxu0 %v6370_v11  ;;  %v6396_v53 = vld [vmem:[%s6688_s5 + $0x330] sm:$0xff]  }
0x1abe   : > { %5903 = vmatprep.subr.bf16.mxu1 %v6371_v27  ;;  %v6397_v11 = vld [vmem:[%s6688_s5 + $0x3b0] sm:$0xff]   ;;  %v6398_v27 = vld [vmem:[%s6688_s5 + $0x368] sm:$0xff]  }
0x1ac0   : > { %5882 = vmatpush3.bf16.msra.mxu0 %v6372_v10  ;;  %v6399_v10 = vld [vmem:[%s6688_s5 + $0x3e8] sm:$0xff]  }
0x1ac1   : > { %5904 = vmatpush3.bf16.msra.mxu1 %v6373_v15  ;;  %5883 = vmatprep.subr.bf16.mxu0 %v6374_v20  ;;  %v6400_v15 = vld [vmem:[%s6688_s5 + $0x328] sm:$0xff]  }
0x1ac2   : > { %5905 = vmatprep.subr.bf16.mxu1 %v6375_v56  ;;  %v6401_v20 = vld [vmem:[%s6688_s5 + $0x3a8] sm:$0xff]   ;;  %v6402_v56 = vld [vmem:[%s6688_s5 + $0x360] sm:$0xff]  }
0x1ac4   : > { %5884 = vmatpush3.bf16.msra.mxu0 %v6376_v22  ;;  %v6404_v22 = vld [vmem:[%s6688_s5 + $0x320] sm:$0xff]  }
0x1ac5   : > { %5906 = vmatpush3.bf16.msra.mxu1 %v6377_v59  ;;  %5885 = vmatprep.subr.bf16.mxu0 %v6378_v61  ;;  %v6406_v59 = vld [vmem:[%s6688_s5 + $0x358] sm:$0xff]  }
0x1ac6   : > { %5907 = vmatprep.subr.bf16.mxu1 %v6379_v52  ;;  %v6407_v61 = vld [vmem:[%s6688_s5 + $0x3d8] sm:$0xff]  }
0x1ac7   : > { %v6408_v52 = vld [vmem:[%s6688_s5 + $0x318] sm:$0xff]  }
0x1ac8   : > { %5886 = vmatpush3.bf16.msra.mxu0 %v6380_v51  ;;  %v6409_v51 = vld [vmem:[%s6688_s5 + $0x398] sm:$0xff]  }
0x1ac9   : > { %5908 = vmatpush3.bf16.msra.mxu1 %v6381_v2  ;;  %5887 = vmatprep.subr.bf16.mxu0 %v6382_v3  ;;  %v6410_v2 = vld [vmem:[%s6688_s5 + $0x350] sm:$0xff]  }
0x1aca   : > { %5909 = vmatprep.subr.bf16.mxu1 %v6383_v6  ;;  %v6411_v3 = vld [vmem:[%s6688_s5 + $0x3d0] sm:$0xff]  }
0x1acb   : > { %v6412_v6 = vld [vmem:[%s6688_s5 + $0x310] sm:$0xff]  }
0x1acc   : > { %5888 = vmatpush3.bf16.msra.mxu0 %v6384_v7  ;;  %v3206_v7 = vrot.slane %v7384_v54, %v7016_v19  ;;  %v3734_v19 = vadd.f32 %v7417_v5, %v3214_v21  ;;  %v6421_v54 = vld [vmem:[%s6688_s5 + $0x380] sm:$0xff]  }
0x1acd   : > { %5910 = vmatpush3.bf16.msra.mxu1 %v6385_v25  ;;  %5889 = vmatprep.subr.bf16.mxu0 %v6386_v43  ;;  %v6417_v25 = vld [vmem:[%s6688_s5 + $0x388] sm:$0xff]   ;;  %v6418_v43 = vld [vmem:[%s6688_s5 + $0x340] sm:$0xff]  }
0x1ace   : > { %5911 = vmatprep.subr.bf16.mxu1 %v6387_v28  ;;  %v3695_v63 = vadd.f32 %v7426_v16, %v3206_v7  ;;  %v3691_v28 = vadd.f32 %v7414_v47, %v3206_v7  ;;  %v3756_v40 = vmax.f32 %v3734_v19, 0.0 }
0x1ad0   : > { %5890 = vmatpush3.bf16.msra.mxu0 %v6388_v31  ;;  %v3770_v57 = vmax.f32 %v3695_v63, 0.0  ;;  %v3754_v16 = vmax.f32 %v3691_v28, 0.0  ;;  %v3788_v30 = vpack.c.bf16 %v3772_v29, %v3756_v40  ;;  %v5677_v40 = vld [vmem:[%s531_s20] ss:$0 sm:$0xff]  ;;  %s6568_s20 = smov (!%p5678_p5), 96  }
0x1ad1   : > { %5912 = vmatpush3.bf16.msra.mxu1 %v6389_v0  ;;  %5919 = vmatprep.subr.bf16.mxu0 %v6390_v18 }
0x1ad2   : > { %5941 = vmatprep.subr.bf16.mxu1 %v6391_v35  ;;  %v3786_v17 = vpack.c.bf16 %v3770_v57, %v3754_v16 }
0x1ad3   : > { %5011 = vmatmul.mubr.bf16.vlgmr.msra.gmra.mxu0 %v3782_v12 }
0x1ad4   : > { %5052 = vmatmul.mubr.bf16.vlgmr.msra.gmra.mxu1 %v3784_v46  ;;  %5920 = vmatpush3.bf16.msra.mxu0 %v6392_v41 }
0x1ad5   : > { %5092 = vmatprep.mubr.bf16.mxu0 %v3787_v32  ;;  %5942 = vmatpush3.bf16.msra.mxu1 %v6393_v44 }
0x1ad6   : > { %5133 = vmatprep.mubr.bf16.mxu1 %v3789_v50  ;;  %5921 = vmatprep.subr.bf16.mxu0 %v6394_v1 }
0x1ad7   : > { %5943 = vmatprep.subr.bf16.mxu1 %v6395_v49 }
0x1ad8   : > { %5922 = vmatpush3.bf16.msra.mxu0 %v6396_v53 }
0x1ad9   : > { %5944 = vmatpush3.bf16.msra.mxu1 %v6397_v11  ;;  %5923 = vmatprep.subr.bf16.mxu0 %v6398_v27 }
0x1ada   : > { %5945 = vmatprep.subr.bf16.mxu1 %v6399_v10 }
0x1adc   : > { %5924 = vmatpush3.bf16.msra.mxu0 %v6400_v15 }
0x1add   : > { %5946 = vmatpush3.bf16.msra.mxu1 %v6401_v20  ;;  %5925 = vmatprep.subr.bf16.mxu0 %v6402_v56 }
0x1ade   : > { %5947 = vmatprep.subr.bf16.mxu1 %v6403_v9 }
0x1ae0   : > { %5926 = vmatpush3.bf16.msra.mxu0 %v6404_v22 }
0x1ae1   : > { %5948 = vmatpush3.bf16.msra.mxu1 %v6405_v58  ;;  %5927 = vmatprep.subr.bf16.mxu0 %v6406_v59 }
0x1ae2   : > { %5949 = vmatprep.subr.bf16.mxu1 %v6407_v61 }
0x1ae4   : > { %5928 = vmatpush3.bf16.msra.mxu0 %v6408_v52 }
0x1ae5   : > { %5950 = vmatpush3.bf16.msra.mxu1 %v6409_v51  ;;  %5929 = vmatprep.subr.bf16.mxu0 %v6410_v2 }
0x1ae6   : > { %5951 = vmatprep.subr.bf16.mxu1 %v6411_v3 }
0x1ae8   : > { %5930 = vmatpush3.bf16.msra.mxu0 %v6412_v6 }
0x1ae9   : > { %5952 = vmatpush3.bf16.msra.mxu1 %v6413_v62  ;;  %5931 = vmatprep.subr.bf16.mxu0 %v6414_v42 }
0x1aea   : > { %5953 = vmatprep.subr.bf16.mxu1 %v6415_v4 }
0x1aec   : > { %5932 = vmatpush3.bf16.msra.mxu0 %v6416_v24 }
0x1aed   : > { %5954 = vmatpush3.bf16.msra.mxu1 %v6417_v25  ;;  %5933 = vmatprep.subr.bf16.mxu0 %v6418_v43 }
0x1aee   : > { %5955 = vmatprep.subr.bf16.mxu1 %v6419_v60 }
0x1af0   : > { %5934 = vmatpush3.bf16.msra.mxu0 %v6420_v55 }
0x1af1   : > { %5956 = vmatpush3.bf16.msra.mxu1 %v6421_v54 }
0x1af3   : > { %5093 = vmatmul.mubr.bf16.vlgmr.msra.gmra.mxu0 %v3786_v17 }
0x1af4   : > { %5134 = vmatmul.mubr.bf16.vlgmr.msra.gmra.mxu1 %v3788_v30 }
0x1b53   : > { %v5803_v31 = vpop.f32.mrf.mxu0  ;;  %v5825_v47 = vpop.f32.mrf.mxu1 }
0x1b55   : > { %v5804_v23 = vpop.f32.mrf.mxu0  ;;  %v5826_v5 = vpop.f32.mrf.mxu1 }
0x1b56   : > { %v5805_v44 = vadd.f32 %v5804_v23, %v5803_v31  ;;  %v5827_v46 = vadd.f32 %v5826_v5, %v5825_v47 }
0x1b57   : > { %v5806_v33 = vpop.f32.mrf.mxu0  ;;  %v5828_v0 = vpop.f32.mrf.mxu1 }
0x1b58   : > { %v4890_v49 = vadd.f32 %v5827_v46, %v5805_v44 }
0x1b59   : > { %v5807_v18 = vpop.f32.mrf.mxu0  ;;  %v5829_v34 = vpop.f32.mrf.mxu1 }
0x1b5a   : > { %v5808_v50 = vadd.f32 %v5807_v18, %v5806_v33  ;;  %v5830_v53 = vadd.f32 %v5829_v34, %v5828_v0 }
0x1b5c   : > { %v4893_v20 = vadd.f32 %v5830_v53, %v5808_v50 }
0x1b73   : > { %v5847_v26 = vpop.f32.mrf.mxu0  ;;  %v5869_v35 = vpop.f32.mrf.mxu1 }
0x1b75   : > { %v5848_v45 = vpop.f32.mrf.mxu0  ;;  %v5870_v36 = vpop.f32.mrf.mxu1 }
0x1b76   : > { %v5849_v32 = vadd.f32 %v5848_v45, %v5847_v26  ;;  %v5871_v56 = vadd.f32 %v5870_v36, %v5869_v35 }
0x1b77   : > { %v5850_v14 = vpop.f32.mrf.mxu0  ;;  %v5872_v38 = vpop.f32.mrf.mxu1 }
0x1b78   : > { %v4931_v10 = vadd.f32 %v5849_v32, %v4890_v49 }
0x1b79   : > { %v5851_v41 = vpop.f32.mrf.mxu0  ;;  %v5873_v8 = vpop.f32.mrf.mxu1 }
0x1b7a   : > { %v5852_v15 = vadd.f32 %v5851_v41, %v5850_v14  ;;  %v4972_v59 = vadd.f32 %v5871_v56, %v4931_v10  ;;  %v5874_v52 = vadd.f32 %v5873_v8, %v5872_v38 }
0x1b7c   : > { %v4934_v61 = vadd.f32 %v5852_v15, %v4893_v20 }
0x1b7e   : > { %v4975_v62 = vadd.f32 %v5874_v52, %v4934_v61 }
0x1b93   : > { %v5891_v12 = vpop.f32.mrf.mxu0 }
0x1b94   : > { %v5913_v48 = vpop.f32.mrf.mxu1 }
0x1b95   : > { %v5892_v1 = vpop.f32.mrf.mxu0 }
0x1b96   : > { %v5914_v11 = vpop.f32.mrf.mxu1  ;;  %v5893_v9 = vadd.f32 %v5892_v1, %v5891_v12 }
0x1b97   : > { %v5894_v27 = vpop.f32.mrf.mxu0  ;;  %v5915_v42 = vadd.f32 %v5914_v11, %v5913_v48 }
0x1b98   : > { %v5916_v22 = vpop.f32.mrf.mxu1  ;;  %v5013_v51 = vadd.f32 %v5893_v9, %v4972_v59 }
0x1b99   : > { %v5895_v58 = vpop.f32.mrf.mxu0 }
0x1b9a   : > { %v5896_v2 = vadd.f32 %v5895_v58, %v5894_v27  ;;  %v5917_v3 = vpop.f32.mrf.mxu1  ;;  %v5054_v21 = vadd.f32 %v5915_v42, %v5013_v51 }
0x1b9b   : > { %v5918_v39 = vadd.f32 %v5917_v3, %v5916_v22 }
0x1b9c   : > { %v5016_v24 = vadd.f32 %v5896_v2, %v4975_v62 }
0x1b9e   : > { %v5057_v57 = vadd.f32 %v5918_v39, %v5016_v24 }
0x1bb3   : > { %v5935_v6 = vpop.f32.mrf.mxu0 }
0x1bb4   : > { %v5957_v4 = vpop.f32.mrf.mxu1 }
0x1bb5   : > { %v5936_v7 = vpop.f32.mrf.mxu0 }
0x1bb6   : > { %v5937_v63 = vadd.f32 %v5936_v7, %v5935_v6  ;;  %v5958_v25 = vpop.f32.mrf.mxu1 }
0x1bb7   : > { %v5938_v43 = vpop.f32.mrf.mxu0  ;;  %v5959_v28 = vadd.f32 %v5958_v25, %v5957_v4 }
0x1bb8   : > { %v5095_v60 = vadd.f32 %v5937_v63, %v5054_v21  ;;  %v5960_v19 = vpop.f32.mrf.mxu1 }
0x1bb9   : > { %v5939_v55 = vpop.f32.mrf.mxu0 }
0x1bba   : > { %v5136_v54 = vadd.f32 %v5959_v28, %v5095_v60  ;;  %v5940_v29 = vadd.f32 %v5939_v55, %v5938_v43  ;;  %v5961_v16 = vpop.f32.mrf.mxu1 }
0x1bbb   : > { %v5962_v31 = vadd.f32 %v5961_v16, %v5960_v19 }
0x1bbc   : > { %v5142_v17 = vadd.f32 %v5136_v54, %v7206_v13  ;;  %v5098_v30 = vadd.f32 %v5940_v29, %v5057_v57 }
0x1bbe   : > { %v5151_v47 = vadd.f32 %v5677_v40, %v5142_v17  ;;  %v5139_v23 = vadd.f32 %v5962_v31, %v5098_v30 }
0x1bc0   : > { %5153 = vst.msk [vmem:[#allocation2] sm:$0xff] %vm554_vm1, %v5151_v47  ;;  %v5143_v5 = vadd.f32 %v5139_v23, %v7211_v37  ;;  %5158 = sbr.rel (%p5678_p5) target bundleno = 7571 (0x1d93), region = 80 }
0x1bc2   : > { %v5152_v33 = vadd.f32 %v5677_v40, %v5143_v5 }
0x1bc4   : > { %5154 = vst.msk [vmem:[#allocation2 + $0x8] sm:$0xff] %vm554_vm1, %v5152_v33 }
0x1bc5   : > { %v5159_v0 = vsel %vm554_vm1, %v5151_v47, 0.0  ;;  %v5162_v18 = vsel %vm554_vm1, %v5152_v33, 0.0  ;;  %v5679_v9 = vld [vmem:[%s7548_s11] ss:$0 sm:$0xff]  ;;  %vm5220_vm8 = vcmask 1041409   ;;  %vm5263_vm9 = vcmask 523264  }
0x1bc6   : > { %5160 = vadd.xlane.f32.xlu0 %v5159_v0  ;;  %v5680_v59 = vld [vmem:[%s7549_s12] ss:$0 sm:$0xff]  ;;  %vm5265_vm10 = vcmask 785408  }
0x1bca   : > { %5163 = vadd.xlane.f32.xlu0 %v5162_v18 }
0x1c4f   : > { %v5161_v13 = vpop.xlane.xlu0 %5160 }
0x1c50   : > { %v5165_v26 = vmul.f32 0.03125, %v5161_v13 }
0x1c52   : > { %v5167_v34 = vsub.f32 %v5151_v47, %v5165_v26 }
0x1c53   : > { %v5164_v35 = vpop.xlane.xlu0 %5163 }
0x1c54   : > { %v5166_v45 = vmul.f32 0.03125, %v5164_v35  ;;  %v5169_v36 = vmul.f32 %v5167_v34, %v5167_v34  ;;  %v5204_v22 = vmul.f32 %v5679_v9, %v5167_v34 }
0x1c56   : > { %v5168_v14 = vsub.f32 %v5152_v33, %v5166_v45  ;;  %v5171_v37 = vsel %vm554_vm1, %v5169_v36, 0.0 }
0x1c57   : > { %5172 = vadd.xlane.f32.xlu1 %v5171_v37 }
0x1c58   : > { %v5170_v38 = vmul.f32 %v5168_v14, %v5168_v14  ;;  %v5205_v52 = vmul.f32 %v5679_v9, %v5168_v14 }
0x1c5a   : > { %v5174_v41 = vsel %vm554_vm1, %v5170_v38, 0.0 }
0x1c5b   : > { %5175 = vadd.xlane.f32.xlu1 %v5174_v41 }
0x1ce0   : > { %v5173_v12 = vpop.xlane.xlu1 %5172 }
0x1ce1   : > { %v5177_v8 = vmul.f32 0.032258064, %v5173_v12 }
0x1ce3   : > { %6514 = vrsqrt.f32 %v5177_v8  ;;  %vm5181_vm4 = vcmp.eq.f32.partialorder %v5177_v8, inf  ;;  %v5184_v32 = vand.u32 2147483648, %v5177_v8  ;;  %vm5183_vm5 = vcmp.eq.f32.partialorder %v5177_v8, 0.0 }
0x1ce4   : > { %v5176_v44 = vpop.xlane.xlu1 %5175 }
0x1ce5   : > { %v5178_v46 = vmul.f32 0.032258064, %v5176_v44 }
0x1ce7   : > { %6516 = vrsqrt.f32 %v5178_v46  ;;  %vm5188_vm6 = vcmp.eq.f32.partialorder %v5178_v46, inf  ;;  %v5191_v10 = vand.u32 2147483648, %v5178_v46  ;;  %vm5190_vm7 = vcmp.eq.f32.partialorder %v5178_v46, 0.0 }
0x1cf0   : > { %v6515_v48 = vpop.eup %6514 }
0x1cf1   : > { %v5180_v1 = vmul.f32 %v6515_v48, %v5177_v8 }
0x1cf3   : > { %v5182_v49 = vsel %vm5181_vm4, %v5177_v8, %v5180_v1 }
0x1cf4   : > { %v6517_v50 = vpop.eup %6516  ;;  %v5185_v53 = vsel %vm5183_vm5, %v5184_v32, %v5182_v49 }
0x1cf5   : > { %v5193_v11 = vadd.f32 1e-06, %v5185_v53  ;;  %v5187_v27 = vmul.f32 %v6517_v50, %v5178_v46 }
0x1cf7   : > { %6518 = vrcp.f32 %v5193_v11  ;;  %v5189_v15 = vsel %vm5188_vm6, %v5178_v46, %v5187_v27 }
0x1cf8   : > { %v5192_v20 = vsel %vm5190_vm7, %v5191_v10, %v5189_v15 }
0x1cf9   : > { %v5194_v56 = vadd.f32 1e-06, %v5192_v20 }
0x1cfb   : > { %6520 = vrcp.f32 %v5194_v56 }
0x1d04   : > { %v6519_v58 = vpop.eup %6518 }
0x1d05   : > { %v5206_v61 = vmul.f32 %v6519_v58, %v5204_v22 }
0x1d07   : > { %v5215_v51 = vadd.f32 %v5680_v59, %v5206_v61 }
0x1d08   : > { %v6521_v2 = vpop.eup %6520 }
0x1d09   : > { %v5207_v3 = vmul.f32 %v6521_v2, %v5205_v52  ;;  %v5223_v62 = vrot.slane %v5215_v51, 1  ;;  %v5244_v42 = vrot.slane %v5215_v51, 5  ;;  %v5234_v4 = vrot.slane %v5215_v51, 3 }
0x1d0a   : > { %v5228_v7 = vrot.slane %v5215_v51, 2  ;;  %v5250_v21 = vrot.slane %v5215_v51, 6  ;;  %v5256_v24 = vrot.slane %v5215_v51, 7  ;;  %v5240_v63 = vrot.slane %v5215_v51, 4 }
0x1d0b   : > { %v5216_v6 = vadd.f32 %v5680_v59, %v5207_v3 }
0x1d0d   : > { %v5224_v25 = vsel %vm5220_vm8, %v5216_v6, %v5223_v62  ;;  %v5245_v43 = vrot.slane %v5216_v6, 4  ;;  %v5235_v39 = vrot.slane %v5216_v6, 2  ;;  %v5229_v60 = vrot.slane %v5216_v6, 1 }
0x1d0e   : > { %5225 = vrot.lane.b32.xlu0 %v5224_v25, %s6567_s21  ;;  %v5251_v28 = vrot.slane %v5216_v6, 5  ;;  %v5257_v19 = vrot.slane %v5216_v6, 6  ;;  %v5219_v55 = vrot.slane %v5216_v6, 7  ;;  %v5241_v57 = vrot.slane %v5216_v6, 3 }
0x1d0f   : > { %v5246_v54 = vsel %vm5220_vm8, %v5245_v43, %v5244_v42  ;;  %v5236_v29 = vsel %vm5220_vm8, %v5235_v39, %v5234_v4  ;;  %v5230_v16 = vsel %vm5220_vm8, %v5229_v60, %v5228_v7 }
0x1d10   : > { %5247 = vrot.lane.b32.xlu1 %v5246_v54, %s6567_s21  ;;  %v5252_v40 = vsel %vm5220_vm8, %v5251_v28, %v5250_v21  ;;  %v5258_v17 = vsel %vm5220_vm8, %v5257_v19, %v5256_v24  ;;  %v5221_v30 = vsel %vm5220_vm8, %v5219_v55, %v5215_v51  ;;  %v5242_v31 = vsel %vm5220_vm8, %v5241_v57, %v5240_v63 }
0x1d12   : > { %5237 = vrot.lane.b32.xlu0 %v5236_v29, %s6568_s20 }
0x1d14   : > { %5231 = vrot.lane.b32.xlu1 %v5230_v16, %s6569_s17 }
0x1d18   : > { %5253 = vrot.lane.b32.xlu1 %v5252_v40, %s6569_s17 }
0x1d1c   : > { %5259 = vrot.lane.b32.xlu1 %v5258_v17, %s6568_s20 }
0x1d80   : > { %v5226_v5 = vpop.permute.xlu0 %5225 }
0x1d81   : > { %v5262_v0 = vsel %vm554_vm1, %v5221_v30, %v5226_v5 }
0x1d82   : > { %v5248_v47 = vpop.permute.xlu1 %5247 }
0x1d83   : > { %v5267_v13 = vsel %vm554_vm1, %v5242_v31, %v5248_v47 }
0x1d84   : > { %v5238_v26 = vpop.permute.xlu0 %5237 }
0x1d86   : > { %v5232_v23 = vpop.permute.xlu1 %5231 }
0x1d87   : > { %v5264_v18 = vsel %vm5263_vm9, %v5262_v0, %v5232_v23 }
0x1d88   : > { %v5266_v45 = vsel %vm5265_vm10, %v5264_v18, %v5238_v26 }
0x1d8a   : > { %v5254_v33 = vpop.permute.xlu1 %5253 }
0x1d8b   : > { %v5268_v34 = vsel %vm5263_vm9, %v5267_v13, %v5254_v33 }
0x1d8e   : > { %v5260_v35 = vpop.permute.xlu1 %5259 }
0x1d8f   : > { %v5269_v36 = vsel %vm5265_vm10, %v5268_v34, %v5260_v35 }
0x1d90   : > { %v5272_v14 = vcombine.low %v5266_v45, %v5269_v36 }
0x1d92   : > { %5681 = vst.sshfl [vmem:[#allocation3] sm:$0x33 pattern:$0x76325410] %v5272_v14 }
0x1d93 PF: > { %p6223_p6 = scmp.eq.s32.totalorder %s6647_s26, 1  ;;  %s6570_s28 = smov [#allocation3]  }
0x1d94   : > { %s5289_s19 = sshll.u32 %s6570_s28, 4  ;;  %s5290_s19 = int_to_ptr.vmem [resolvable:$true] %s5289_s19 }
0x1d95   : > { %s6522_s22 = scalar_lea.vmem %s5290_s19, 64  ;;  %p6529_p10 = scmp.lt.s32.totalorder %s5290_s19, %s5290_s19 }
0x1d96   : > { %p6523_p7 = scmp.ne.s32.totalorder %s5290_s19, %s6522_s22  ;;  %p6530_p11 = scmp.lt.s32.totalorder %s6522_s22, %s6522_s22 }
0x1d98   : > { %p6524_p8 = pnand %p6523_p7, %p6223_p6  ;;  %p6531_p12 = por %p6530_p11, %p6529_p10 }
0x1d9a   : > { %p6525_p9 = pneg %p6524_p8 }
0x1d9c   : > { %p6532_p13 = pnand %p6531_p12, %p6525_p9 }
0x1d9e   : > { %6535 = shalt.err (!%p6532_p13)
}
0x1d9f   : > { %s7558_s16 = sld [smem:[#allocation9_spill]] }
0x1da5   : > { %6220 = dma.vmem_to_hbm [thread:$0]  (%p6223_p6), %s5290_s19, 64, %s7558_s16, [#allocation4]  }
0x1da6   : > { %6551 = dma.done.wait (%p6223_p6), [#allocation4], 64  }
0x1da7   : > { %6553 = vsyncadd (%p6223_p6), [#allocation4], 4294967232 }
0x1da8 PF: > { %s7559_s29 = sld [smem:[#allocation6_spill]] }
0x1dae   : > { %s24_s25 = sadd.s32 1, %s7559_s29  }
0x1daf   : > { %p21_p0 = scmp.ge.s32.totalorder %s24_s25, 4  }
0x1db1   :  { %23 = sbr.rel (!%p21_p0) target bundleno = 5 (0x5), region = 132 }
0x1db6   :  { %5302 = vsyncpa [#allocation4], 1 }
0x1db7   :  { %5304 = vsyncpa [#allocation4 + $0x1], 1 }

</bundles_post_ra>
